<compile_context>
chip_gen: v6e
topology: v6e:2x2x1
jax: 0.10.0
libtpu: 0.0.40
codegen_flags: <defaults>
</compile_context>

<pallas_src>
import math
from functools import partial

import numpy as np
import jax
import jax.numpy as jnp
from jax.experimental import pallas as pl
from jax.experimental.pallas import tpu as pltpu


# --------------------------------------------------------------------------------------
# In-kernel helpers
# --------------------------------------------------------------------------------------
def _erf(x):
    # Abramowitz & Stegun 7.1.26 rational approximation, |err| <= 1.5e-7.
    # TODO(synk): switch to jax.lax.erf once erf lowering is guaranteed in Mosaic; this
    # polynomial preserves torch's exact (erf-based) GELU semantics to ~1e-7.
    a1, a2, a3, a4, a5 = 0.254829592, -0.284496736, 1.421413741, -1.453152027, 1.061405429
    p = 0.3275911
    ax = jnp.abs(x)
    t = 1.0 / (1.0 + p * ax)
    poly = ((((a5 * t + a4) * t + a3) * t + a2) * t + a1) * t
    y = 1.0 - poly * jnp.exp(-(ax * ax))
    return jnp.where(x < 0.0, -y, y)


def _gelu_exact(x):
    return 0.5 * x * (1.0 + _erf(x * (1.0 / math.sqrt(2.0))))


# --------------------------------------------------------------------------------------
# Fused kernel: Linear + bias + LayerNorm + GELU on one row-tile
# --------------------------------------------------------------------------------------
def _mlp_block_kernel(x_ref, w_ref, b_ref, g_ref, beta_ref, o_ref, *, eps):
    # x_ref: (tm, C_in) native dtype | w_ref: (C_in, C_out) bf16 | b/g/beta: (1, C_out) f32
    x = x_ref[...].astype(jnp.bfloat16)                      # cast in-VMEM, no extra HBM pass
    y = jnp.dot(x, w_ref[...], preferred_element_type=jnp.float32)   # MXU, f32 accumulation
    y = y + b_ref[...]

    # single-pass LayerNorm statistics (f32)
    mu = jnp.mean(y, axis=-1, keepdims=True)
    ms = jnp.mean(y * y, axis=-1, keepdims=True)
    var = jnp.maximum(ms - mu * mu, 0.0)
    yhat = (y - mu) * jax.lax.rsqrt(var + eps)
    yhat = yhat * g_ref[...] + beta_ref[...]

    o_ref[...] = _gelu_exact(yhat).astype(o_ref.dtype)       # bf16 store (masked on ragged tile)


def _round_up(v, m):
    return ((v + m - 1) // m) * m


def _vmem_estimate(tm, c_in, c_out, x_bytes):
    # double-buffered activation in / bf16 out + resident bf16 weights + small vectors
    return 2 * tm * (c_in * x_bytes + c_out * 2) + 2 * c_in * c_out * 2 + 6 * c_out * 4


def mlp_block_forward(x, w_bf16, b_f32, gamma_f32, beta_f32, *, eps=1e-5, block_rows=1024):
    """x: (..., C_in) -> (..., C_out) bf16 via one fused pallas_call."""
    *lead, c_in = x.shape
    c_out = w_bf16.shape[1]

    xf = x.reshape(-1, c_in)                    # no dtype cast here (done inside the kernel)
    n = xf.shape[0]
    x_bytes = xf.dtype.itemsize

    # Row tile: multiple of 16 (bf16 sublane packing), within VMEM budget, >= 2 tiles if
    # N allows so both TensorCores get work on v7x.
    tm = min(block_rows, _round_up(n, 16))
    while tm > 16 and _vmem_estimate(tm, c_in, c_out, x_bytes) > 24 * (1 << 20):
        tm = _round_up(tm // 2, 16)
    if n > 16 and pl.cdiv(n, tm) < 2:
        tm = max(16, _round_up(pl.cdiv(n, 2), 16))

    grid = (pl.cdiv(n, tm),)
    kernel = partial(_mlp_block_kernel, eps=eps)

    cost = pl.CostEstimate(
        flops=2 * n * c_in * c_out,
        transcendentals=n * c_out,                                   # exp in erf
        bytes_accessed=n * c_in * x_bytes + c_in * c_out * 2 + 3 * c_out * 4 + n * c_out * 2,
    )

    out = pl.pallas_call(
        kernel,
        out_shape=jax.ShapeDtypeStruct((n, c_out), jnp.bfloat16),    # bf16 writeback
        grid=grid,
        in_specs=[
            pl.BlockSpec((tm, c_in), lambda i: (i, 0)),              # activations: row tiles
            pl.BlockSpec((c_in, c_out), lambda i: (0, 0)),           # weights: resident
            pl.BlockSpec((1, c_out), lambda i: (0, 0)),              # bias
            pl.BlockSpec((1, c_out), lambda i: (0, 0)),              # LN gamma
            pl.BlockSpec((1, c_out), lambda i: (0, 0)),              # LN beta
        ],
        out_specs=pl.BlockSpec((tm, c_out), lambda i: (i, 0)),
        compiler_params=pltpu.CompilerParams(dimension_semantics=("parallel",)),
        cost_estimate=cost,
    )(xf, w_bf16, b_f32, gamma_f32, beta_f32)

    return out.reshape(*lead, c_out)


# --------------------------------------------------------------------------------------
# Module wrapper (holds pre-cast parameters; norm_fn in LION is nn.LayerNorm)
# --------------------------------------------------------------------------------------
class MLPBlock:
    def __init__(self, input_channel, out_channel, *, key, eps=1e-5):
        kw, kb, kg, kbt = jax.random.split(key, 4)
        bound = 1.0 / math.sqrt(input_channel)
        # master params in f32, stored pre-cast in the dtypes the kernel consumes
        self.w_f32 = jax.random.uniform(kw, (input_channel, out_channel), jnp.float32, -bound, bound)
        self.b = jax.random.uniform(kb, (1, out_channel), jnp.float32, -bound, bound)
        self.gamma = 1.0 + 0.1 * jax.random.normal(kg, (1, out_channel), jnp.float32)
        self.beta = 0.1 * jax.random.normal(kbt, (1, out_channel), jnp.float32)
        self.w = self.w_f32.astype(jnp.bfloat16)             # pre-cast once, not per call
        self.eps = eps

    def __call__(self, x):
        return mlp_block_forward(x, self.w, self.b, self.gamma, self.beta, eps=self.eps)


# --------------------------------------------------------------------------------------
# Plain-JAX reference (torch semantics: Linear -> LayerNorm -> exact GELU)
# --------------------------------------------------------------------------------------
def _reference(x, w_bf16, b, gamma, beta, eps):
    *lead, c_in = x.shape
    xf = x.reshape(-1, c_in).astype(jnp.bfloat16)
    y = jnp.dot(xf, w_bf16, preferred_element_type=jnp.float32) + b
    mu = jnp.mean(y, axis=-1, keepdims=True)
    var = jnp.mean(jnp.square(y - mu), axis=-1, keepdims=True)
    yh = (y - mu) * jax.lax.rsqrt(var + eps) * gamma + beta
    out = jax.nn.gelu(yh, approximate=False)
    return out.reshape(*lead, w_bf16.shape[1])


# --------------------------------------------------------------------------------------
if __name__ == "__main__":
    key = jax.random.PRNGKey(0)
    kx, kp = jax.random.split(key)

    # small shapes; N = 600 is not a multiple of the row tile -> exercises the ragged
    # masked-store path and the 2-tile (both TensorCores) split.
    B, L, C_in, C_out = 2, 300, 128, 256
    x = jax.random.normal(kx, (B, L, C_in), jnp.float32)

    block = MLPBlock(C_in, C_out, key=kp)
    out = jax.block_until_ready(block(x))

    ref = jax.block_until_ready(
        _reference(x, block.w, block.b, block.gamma, block.beta, block.eps))

    assert out.shape == (B, L, C_out)
    assert out.dtype == jnp.bfloat16
    out_f32 = np.asarray(out, dtype=np.float32)
    ref_f32 = np.asarray(ref, dtype=np.float32)
    err = float(np.max(np.abs(out_f32 - ref_f32)))
    # bf16 output quantization (~0.4% rel) dominates the tolerance
    assert np.allclose(out_f32, ref_f32, atol=2e-2, rtol=2e-2), err

    print("KERNEL_OK")
</pallas_src>

<mosaic_0001>
module attributes {stable_mosaic.version = 11 : i64} {
  func.func @_mlp_block_kernel(%arg0: i32, %arg1: memref<304x128xf32, #tpu.memory_space<vmem>>, %arg2: memref<128x256xbf16, #tpu.memory_space<vmem>>, %arg3: memref<1x256xf32, #tpu.memory_space<vmem>>, %arg4: memref<1x256xf32, #tpu.memory_space<vmem>>, %arg5: memref<1x256xf32, #tpu.memory_space<vmem>>, %arg6: memref<304x256xbf16, #tpu.memory_space<vmem>>) attributes {dimension_semantics = [#tpu.dimension_semantics<parallel>], iteration_bounds = array<i64: 2>, scalar_prefetch = 0 : i64, scratch_operands = 0 : i64, tpu.core_type = #tpu.core_type<tc>, window_params = [{transform_indices = @transform_0, window_bounds = array<i64: 304, 128>}, {pipeline_mode = #tpu.pipeline_mode<synchronous>, transform_indices = @transform_1, window_bounds = array<i64: 128, 256>}, {pipeline_mode = #tpu.pipeline_mode<synchronous>, transform_indices = @transform_2, window_bounds = array<i64: 1, 256>}, {pipeline_mode = #tpu.pipeline_mode<synchronous>, transform_indices = @transform_3, window_bounds = array<i64: 1, 256>}, {pipeline_mode = #tpu.pipeline_mode<synchronous>, transform_indices = @transform_4, window_bounds = array<i64: 1, 256>}, {transform_indices = @transform_5, window_bounds = array<i64: 304, 256>}]} {
    %c0 = arith.constant 0 : index
    %c0_0 = arith.constant 0 : index
    %0 = vector.load %arg1[%c0, %c0_0] : memref<304x128xf32, #tpu.memory_space<vmem>>, vector<304x128xf32>
    %1 = arith.truncf %0 : vector<304x128xf32> to vector<304x128xbf16>
    %c0_1 = arith.constant 0 : index
    %c0_2 = arith.constant 0 : index
    %2 = vector.load %arg2[%c0_1, %c0_2] : memref<128x256xbf16, #tpu.memory_space<vmem>>, vector<128x256xbf16>
    %cst = arith.constant dense<0.000000e+00> : vector<304x256xf32>
    %3 = tpu.matmul %1, %2, %cst {dimension_numbers = #tpu.dot_dimension_numbers<[1], [0], [0], [1], [0, 0, 1, 1], [], []>} : vector<304x128xbf16>, vector<128x256xbf16>, vector<304x256xf32> -> vector<304x256xf32>
    %c0_3 = arith.constant 0 : index
    %c0_4 = arith.constant 0 : index
    %4 = vector.load %arg3[%c0_3, %c0_4] : memref<1x256xf32, #tpu.memory_space<vmem>>, vector<1x256xf32>
    %5 = vector.broadcast %4 : vector<1x256xf32> to vector<304x256xf32>
    %6 = arith.addf %3, %5 : vector<304x256xf32>
    %cst_5 = arith.constant dense<0.000000e+00> : vector<304xf32>
    %7 = vector.multi_reduction <add>, %6, %cst_5 [1] : vector<304x256xf32> to vector<304xf32>
    %8 = vector.shape_cast %7 : vector<304xf32> to vector<304x1xf32>
    %cst_6 = arith.constant 2.560000e+02 : f32
    %9 = vector.broadcast %cst_6 : f32 to vector<304x1xf32>
    %10 = arith.divf %8, %9 : vector<304x1xf32>
    %11 = arith.mulf %6, %6 : vector<304x256xf32>
    %cst_7 = arith.constant dense<0.000000e+00> : vector<304xf32>
    %12 = vector.multi_reduction <add>, %11, %cst_7 [1] : vector<304x256xf32> to vector<304xf32>
    %13 = vector.shape_cast %12 : vector<304xf32> to vector<304x1xf32>
    %cst_8 = arith.constant 2.560000e+02 : f32
    %14 = vector.broadcast %cst_8 : f32 to vector<304x1xf32>
    %15 = arith.divf %13, %14 : vector<304x1xf32>
    %16 = arith.mulf %10, %10 : vector<304x1xf32>
    %17 = arith.subf %15, %16 : vector<304x1xf32>
    %cst_9 = arith.constant 0.000000e+00 : f32
    %18 = vector.broadcast %cst_9 : f32 to vector<304x1xf32>
    %19 = arith.maximumf %17, %18 : vector<304x1xf32>
    %20 = vector.broadcast %10 : vector<304x1xf32> to vector<304x256xf32>
    %21 = arith.subf %6, %20 : vector<304x256xf32>
    %cst_10 = arith.constant 9.99999974E-6 : f32
    %22 = vector.broadcast %cst_10 : f32 to vector<304x1xf32>
    %23 = arith.addf %19, %22 : vector<304x1xf32>
    %24 = math.rsqrt %23 : vector<304x1xf32>
    %25 = vector.broadcast %24 : vector<304x1xf32> to vector<304x256xf32>
    %26 = arith.mulf %21, %25 : vector<304x256xf32>
    %c0_11 = arith.constant 0 : index
    %c0_12 = arith.constant 0 : index
    %27 = vector.load %arg4[%c0_11, %c0_12] : memref<1x256xf32, #tpu.memory_space<vmem>>, vector<1x256xf32>
    %28 = vector.broadcast %27 : vector<1x256xf32> to vector<304x256xf32>
    %29 = arith.mulf %26, %28 : vector<304x256xf32>
    %c0_13 = arith.constant 0 : index
    %c0_14 = arith.constant 0 : index
    %30 = vector.load %arg5[%c0_13, %c0_14] : memref<1x256xf32, #tpu.memory_space<vmem>>, vector<1x256xf32>
    %31 = vector.broadcast %30 : vector<1x256xf32> to vector<304x256xf32>
    %32 = arith.addf %29, %31 : vector<304x256xf32>
    %cst_15 = arith.constant 5.000000e-01 : f32
    %33 = vector.broadcast %cst_15 : f32 to vector<304x256xf32>
    %34 = arith.mulf %33, %32 : vector<304x256xf32>
    %cst_16 = arith.constant 0.707106769 : f32
    %35 = vector.broadcast %cst_16 : f32 to vector<304x256xf32>
    %36 = arith.mulf %32, %35 : vector<304x256xf32>
    %37 = math.absf %36 : vector<304x256xf32>
    %cst_17 = arith.constant 0.327591091 : f32
    %38 = vector.broadcast %cst_17 : f32 to vector<304x256xf32>
    %39 = arith.mulf %38, %37 : vector<304x256xf32>
    %cst_18 = arith.constant 1.000000e+00 : f32
    %40 = vector.broadcast %cst_18 : f32 to vector<304x256xf32>
    %41 = arith.addf %40, %39 : vector<304x256xf32>
    %cst_19 = arith.constant 1.000000e+00 : f32
    %42 = vector.broadcast %cst_19 : f32 to vector<304x256xf32>
    %43 = arith.divf %42, %41 : vector<304x256xf32>
    %cst_20 = arith.constant 1.06140542 : f32
    %44 = vector.broadcast %cst_20 : f32 to vector<304x256xf32>
    %45 = arith.mulf %44, %43 : vector<304x256xf32>
    %cst_21 = arith.constant -1.45315206 : f32
    %46 = vector.broadcast %cst_21 : f32 to vector<304x256xf32>
    %47 = arith.addf %45, %46 : vector<304x256xf32>
    %48 = arith.mulf %47, %43 : vector<304x256xf32>
    %cst_22 = arith.constant 1.42141378 : f32
    %49 = vector.broadcast %cst_22 : f32 to vector<304x256xf32>
    %50 = arith.addf %48, %49 : vector<304x256xf32>
    %51 = arith.mulf %50, %43 : vector<304x256xf32>
    %cst_23 = arith.constant -0.284496725 : f32
    %52 = vector.broadcast %cst_23 : f32 to vector<304x256xf32>
    %53 = arith.addf %51, %52 : vector<304x256xf32>
    %54 = arith.mulf %53, %43 : vector<304x256xf32>
    %cst_24 = arith.constant 0.254829586 : f32
    %55 = vector.broadcast %cst_24 : f32 to vector<304x256xf32>
    %56 = arith.addf %54, %55 : vector<304x256xf32>
    %57 = arith.mulf %56, %43 : vector<304x256xf32>
    %58 = arith.mulf %37, %37 : vector<304x256xf32>
    %cst_25 = arith.constant 0.000000e+00 : f32
    %59 = vector.broadcast %cst_25 : f32 to vector<304x256xf32>
    %60 = arith.subf %59, %58 : vector<304x256xf32>
    %61 = math.exp %60 : vector<304x256xf32>
    %62 = arith.mulf %57, %61 : vector<304x256xf32>
    %cst_26 = arith.constant 1.000000e+00 : f32
    %63 = vector.broadcast %cst_26 : f32 to vector<304x256xf32>
    %64 = arith.subf %63, %62 : vector<304x256xf32>
    %cst_27 = arith.constant 0.000000e+00 : f32
    %65 = vector.broadcast %cst_27 : f32 to vector<304x256xf32>
    %66 = arith.cmpf olt, %36, %65 : vector<304x256xf32>
    %cst_28 = arith.constant 0.000000e+00 : f32
    %67 = vector.broadcast %cst_28 : f32 to vector<304x256xf32>
    %68 = arith.subf %67, %64 : vector<304x256xf32>
    %69 = arith.select %66, %68, %64 : vector<304x256xi1>, vector<304x256xf32>
    %cst_29 = arith.constant 1.000000e+00 : f32
    %70 = vector.broadcast %cst_29 : f32 to vector<304x256xf32>
    %71 = arith.addf %70, %69 : vector<304x256xf32>
    %72 = arith.mulf %34, %71 : vector<304x256xf32>
    %73 = arith.truncf %72 : vector<304x256xf32> to vector<304x256xbf16>
    %c0_30 = arith.constant 0 : index
    %c0_31 = arith.constant 0 : index
    %74 = vector.load %arg6[%c0_30, %c0_31] : memref<304x256xbf16, #tpu.memory_space<vmem>>, vector<304x256xbf16>
    tpu.vector_store %arg6[%c0_30, %c0_31], %73 {strides = array<i32>} : memref<304x256xbf16, #tpu.memory_space<vmem>>, vector<304x256xbf16>,
    return
  }
  func.func @transform_0(%arg0: i32) -> (i32, i32) {
    %c0_i32 = arith.constant 0 : i32
    %c0_i32_0 = arith.constant 0 : i32
    return %arg0, %c0_i32 : i32, i32
  }
  func.func @transform_1(%arg0: i32) -> (i32, i32) {
    %c0_i32 = arith.constant 0 : i32
    %c0_i32_0 = arith.constant 0 : i32
    %c0_i32_1 = arith.constant 0 : i32
    return %c0_i32, %c0_i32_0 : i32, i32
  }
  func.func @transform_2(%arg0: i32) -> (i32, i32) {
    %c0_i32 = arith.constant 0 : i32
    %c0_i32_0 = arith.constant 0 : i32
    %c0_i32_1 = arith.constant 0 : i32
    return %c0_i32, %c0_i32_0 : i32, i32
  }
  func.func @transform_3(%arg0: i32) -> (i32, i32) {
    %c0_i32 = arith.constant 0 : i32
    %c0_i32_0 = arith.constant 0 : i32
    %c0_i32_1 = arith.constant 0 : i32
    return %c0_i32, %c0_i32_0 : i32, i32
  }
  func.func @transform_4(%arg0: i32) -> (i32, i32) {
    %c0_i32 = arith.constant 0 : i32
    %c0_i32_0 = arith.constant 0 : i32
    %c0_i32_1 = arith.constant 0 : i32
    return %c0_i32, %c0_i32_0 : i32, i32
  }
  func.func @transform_5(%arg0: i32) -> (i32, i32) {
    %c0_i32 = arith.constant 0 : i32
    %c0_i32_0 = arith.constant 0 : i32
    return %arg0, %c0_i32 : i32, i32
  }
}

</mosaic_0001>

<bundles_post_ra>
// kernel: tpu_custom_call.1
= control target key start
LH: loop header
LB: loop body
LE: loop exit
PB: predicated region body
PF: predicated region fallthrough
CT: control target
= control target key end

     0   :  { %10 = vsyncpa [#allocation3], 0  ;;  %s7524_s0 = inlined_call_operand.hbm [shape: f32[600,128], index: 0, kind: input, shape index: {}]   ;;  %s7525_s1 = inlined_call_operand.hbm [shape: bf16[128,256], index: 1, kind: input, shape index: {}]   ;;  %s7526_s2 = inlined_call_operand.vmem [shape: f32[1,256], index: 2, kind: input, shape index: {}]   ;;  %s7527_s3 = inlined_call_operand.vmem [shape: f32[1,256], index: 3, kind: input, shape index: {}]   ;;  %s7528_s4 = inlined_call_operand.vmem [shape: f32[1,256], index: 4, kind: input, shape index: {}]   ;;  %s7529_s5 = inlined_call_operand.hbm [shape: bf16[600,256], index: 5, kind: output, shape index: {}]  }
   0x1   :  { %12 = vsyncpa [#allocation3 + $0x1], 0 }
   0x2   :  { %13 = vsyncpa [#allocation6], 0 }
   0x3   :  { %14 = vsyncpa [#allocation4], 0 }
   0x4   :  { %16 = vsyncpa [#allocation4 + $0x1], 0  ;;  %s4744_s18 = smov 0   ;;  %s4746_s19 = smov 0  }
   0x5   :  { %s4748_s20 = smov 0   ;;  %s4750_s21 = smov 0  }
   0x6 LB: > { %s4765_s22 = sadd.s32 4294967295, %s4702_s21   ;;  %s3986_s23 = sadd.s32 4294967294, %s4702_s21   ;;  %s4702_s21 = sphi %s4750_s21, %s7805_s21   ;;  %s4698_s20 = sphi %s4748_s20, %s7804_s20   ;;  %s4694_s19 = sphi %s4746_s19, %s7803_s19   ;;  %s4690_s18 = sphi %s4744_s18, %s7802_s18  }
   0x7   : > { %s4769_s24 = sadd.s32 1, %s4702_s21   ;;  %s29_s25 = sadd.s32 1, %s4698_s20 }
   0x8   : > { %s26_s26 = ssub.s32 %s4702_s21, %s4769_s24  ;;  %p36_p0 = scmp.ne.s32.totalorder %s4698_s20, %s4694_s19 }
   0x9   : > { %p27_p1 = scmp.eq.s32.totalorder %s26_s26, 0  ;;  %p37_p2 = scmp.eq.s32.totalorder %s4702_s21, 0 }
   0xa   : > { %p42_p3 = scmp.ne.s32.totalorder %s4694_s19, %s4690_s18  ;;  %p43_p4 = scmp.eq.s32.totalorder %s4765_s22, 0 }
   0xb   : > { %s4781_s27 = scalar_select %p27_p1, %s4698_s20, %s29_s25  }
   0xc   : > { %p4783_p5 = por %p37_p2, %p36_p0  ;;  %p4789_p6 = por %p43_p4, %p42_p3 }
   0xd   : > { %p150_p7 = scmp.eq.s32.totalorder %s4765_s22, 1  ;;  %p156_p8 = scmp.eq.s32.totalorder %s3986_s23, 1 }
   0xe   : > { %s7641_s29 = scalar_select %p4789_p6, 1, 0 }
   0xf   : > { %p3987_p9 = scmp.ge.s32.totalorder %s4702_s21, 1  ;;  %p163_p10 = scmp.lt.s32.totalorder %s4702_s21, 3 }
  0x10   : > { %p4796_p11 = por %p150_p7, %p36_p0  ;;  %p4800_p12 = por %p156_p8, %p42_p3 }
  0x11   : > { %p4804_p13 = pnand %p3987_p9, %p163_p10  ;;  %s4704_s8 = smov [#allocation5]  }
  0x12   : > { %s7642_s30 = scalar_select %p4796_p11, 1, 0 }
  0x13   : > { %s7643_s6 = scalar_select %p4800_p12, 1, 0 }
  0x14   : > { %p4127_p1 = pneg %p4804_p13  ;;  %s175_s9 = sshll.u32 %s4704_s8, 4  ;;  %s176_s9 = int_to_ptr.vmem [resolvable:$true] %s175_s9 }
  0x15   : > { %s4593_s10 = scalar_lea.vmem %s176_s9, 2048  ;;  %p4601_p8 = scmp.lt.s32.totalorder %s176_s9, %s176_s9 }
  0x16   : > { %p4128_p2 = pnand %p4127_p1, %p43_p4  ;;  %p4594_p7 = scmp.ne.s32.totalorder %s176_s9, %s4593_s10 }
  0x17   : > { %p4602_p6 = scmp.lt.s32.totalorder %s4593_s10, %s4593_s10 }
  0x18   : > { %p4584_p0 = pneg %p4128_p2 }
  0x19   : > { %p4603_p12 = por %p4602_p6, %p4601_p8 }
  0x1a   : > { %p4596_p11 = pnand %p4594_p7, %p4584_p0 }
  0x1c   : > { %p4597_p3 = pneg %p4596_p11 }
  0x1e   : > { %p4604_p9 = pnand %p4603_p12, %p4597_p3 }
  0x20   : > { %4607 = shalt.err (!%p4604_p9)
}
  0x21   : > { %s4705_s11 = smov 128   ;;  %s4706_s12 = smov 8  }
  0x22   : > { %4130 = dma.hbm_to_vmem [thread:$0]  (!%p4128_p2), %s7525_s1, 2048, %s176_s9, [#allocation6], %s4705_s11, %s4705_s11, %s4706_s12  }
  0x23   : > { %p7531_p10 = scmp.ge.s32.totalorder %s4702_s21, 2 }
  0x25   : > { %194 = sbr.rel (%p7531_p10) target bundleno = 76 (0x4c), region = 32 }
  0x2a   : > { %197 = sbr.rel (!%p4783_p5) target bundleno = 76 (0x4c), region = 36  ;;  %s198_s15 = sand.u32 (%p4783_p5), 1, %s4698_s20  }
  0x2b   : > { %s203_s16 = smul.u32 (%p4783_p5), 38, %s4702_s21  ;;  %s4825_s8 = scalar_lea.sflag (%p4783_p5), [#allocation3], %s198_s15 }
  0x2c   : > { %s4119_s17 = smul.u32 (%p4783_p5), 304, %s198_s15 }
  0x2d   : > { %s204_s23 = ssub.s32 (%p4783_p5), 75, %s203_s16 }
  0x2e   : > { %p205_p6 = scmp.lt.s32.totalorder (%p4783_p5), %s204_s23, 38  ;;  %s202_s9 = scalar_lea.vmem (%p4783_p5), [#allocation2], %s4119_s17 }
  0x30   : > { %s7807_s23 = smov (!%p205_p6, %s204_s23), 38 }
  0x31   : > { %s4822_s25 = sshll.u32 %s7807_s23, 7 }
  0x32   : > { %s209_s26 = ssub.s32 4864, %s4822_s25 }
  0x33   : > { %210 = vsyncadd %s4825_s8, %s209_s26  ;;  %p3991_p5 = scmp.ne.s32.totalorder %s4822_s25, 0  ;;  %s4060_s28 = smul.u32 4864, %s4702_s21 }
  0x34   : > { %s215_s10 = sshll.u32 %s202_s9, 4  ;;  %s4612_s17 = scalar_lea.hbm %s7524_s0, 9600  ;;  %s4835_s10 = int_to_ptr.vmem [resolvable:$true] %s215_s10 }
  0x35   : > { %s4833_s13 = scalar_lea.hbm %s7524_s0, %s4060_s28 }
  0x36   : > { %s4608_s14 = scalar_lea.hbm %s4833_s13, %s4822_s25  ;;  %p4613_p2 = scmp.lt.s32.totalorder %s4833_s13, %s7524_s0 }
  0x37   : > { %p4609_p11 = scmp.ne.s32.totalorder %s4833_s13, %s4608_s14  ;;  %p4614_p0 = scmp.lt.s32.totalorder %s4612_s17, %s4608_s14 }
  0x39   : > { %p4610_p12 = pnand %p4609_p11, %p3991_p5  ;;  %p4615_p7 = por %p4614_p0, %p4613_p2 }
  0x3b   : > { %p4611_p1 = pneg %p4610_p12 }
  0x3d   : > { %p4616_p3 = pnand %p4615_p7, %p4611_p1 }
  0x3f   : > { %4619 = shalt.err (!%p4616_p3)
}
  0x40   : > { %s4620_s9 = scalar_lea.vmem %s4835_s10, %s4822_s25  ;;  %s4707_s28 = smov [#allocation2]  }
  0x41   : > { %p4621_p8 = scmp.ne.s32.totalorder %s4835_s10, %s4620_s9  ;;  %s4624_s11 = sshll.u32 %s4707_s28, 4  ;;  %s4625_s11 = int_to_ptr.vmem [resolvable:$false] %s4624_s11 }
  0x42   : > { %s4626_s12 = scalar_lea.vmem %s4625_s11, 9728  ;;  %p4627_p11 = scmp.lt.s32.totalorder %s4835_s10, %s4625_s11 }
  0x43   : > { %p4622_p9 = pnand %p4621_p8, %p3991_p5  ;;  %p4628_p12 = scmp.lt.s32.totalorder %s4626_s12, %s4620_s9 }
  0x45   : > { %p4623_p6 = pneg %p4622_p9  ;;  %p4629_p10 = por %p4628_p12, %p4627_p11 }
  0x47   : > { %p4630_p2 = pnand %p4629_p10, %p4623_p6 }
  0x49   : > { %4633 = shalt.err (!%p4630_p2)
}
  0x4a   : > { %s4708_s14 = smov 128   ;;  %s4709_s15 = smov 8  }
  0x4b   : > { %221 = dma.hbm_to_vmem [thread:$0]  (%p3991_p5), %s4833_s13, %s4822_s25, %s4835_s10, %s4825_s8, %s4708_s14, %s4708_s14, %s4709_s15  }
  0x4c PF: > { %227 = sbr.rel (%p4804_p13) target bundleno = 1173 (0x495), region = 40 }
  0x51   : > { %s4864_s16 = sand.u32 1, %s4694_s19   ;;  %p7645_p10 = scmp.ne.s32.totalorder %s7641_s29, 0 }
  0x52   : > { %s4120_s17 = smul.u32 304, %s4864_s16  ;;  %s230_s23 = scalar_lea.sflag [#allocation3], %s4864_s16 }
  0x54   : > { %s4870_s26 = scalar_lea.vmem [#allocation2], %s4120_s17 }
  0x55   : > { %4677 = dma.done.wait (%p7645_p10), %s230_s23, 4864  }
  0x56   : > { %4679 = vsyncadd (%p7645_p10), %s230_s23, 4294962432 }
  0x57   : > { %4681 = dma.done.wait (%p43_p4), [#allocation6], 2048  }
  0x58   : > { %4683 = vsyncadd (%p43_p4), [#allocation6], 4294965248  ;;  %v4710_v0 = vmov 0   ;;  %v4178_v1 = vld [vmem:[#allocation5 + $0x74] ss:$8 sps:$4 sm:$0xff]   ;;  %s5649_s9 = scalar_lea.vmem [#allocation7], %s4120_s17 }
  0x59   : > { %473 = vmatprep.mubr.bf16.mxu0 %v4710_v0  ;;  %573 = vmatprep.mubr.bf16.mxu1 %v4710_v0  ;;  %v4180_v2 = vld [vmem:[#allocation5 + $0x70] ss:$8 sps:$4 sm:$0xff]   ;;  %v4181_v3 = vld [vmem:[#allocation5 + $0x64] ss:$8 sps:$4 sm:$0xff]   ;;  %v4183_v4 = vld [vmem:[#allocation5 + $0x60] ss:$8 sps:$4 sm:$0xff]  }
  0x5a   : > { %441 = vmatprep.subr.bf16.mxu0 %v4178_v1  ;;  %4103 = vmatprep.subr.bf16.mxu1 %v4178_v1  ;;  %v4184_v5 = vld [vmem:[#allocation5 + $0x54] ss:$8 sps:$4 sm:$0xff]   ;;  %v4186_v6 = vld [vmem:[#allocation5 + $0x50] ss:$8 sps:$4 sm:$0xff]   ;;  %v4187_v7 = vld [vmem:[#allocation5 + $0x44] ss:$8 sps:$4 sm:$0xff]  }
  0x5b   : > { %442 = vmatpush1.bf16.msra.mxu0 %v4180_v2  ;;  %4111 = vmatpush1.bf16.msra.mxu1 %v4180_v2  ;;  %v4189_v8 = vld [vmem:[#allocation5 + $0x40] ss:$8 sps:$4 sm:$0xff]   ;;  %v4190_v9 = vld [vmem:[#allocation5 + $0x34] ss:$8 sps:$4 sm:$0xff]   ;;  %v4192_v10 = vld [vmem:[#allocation5 + $0x30] ss:$8 sps:$4 sm:$0xff]  }
  0x5c   : > { %443 = vmatprep.subr.bf16.mxu0 %v4181_v3  ;;  %4104 = vmatprep.subr.bf16.mxu1 %v4181_v3  ;;  %v4193_v11 = vld [vmem:[#allocation5 + $0x24] ss:$8 sps:$4 sm:$0xff]   ;;  %v4195_v12 = vld [vmem:[#allocation5 + $0x20] ss:$8 sps:$4 sm:$0xff]   ;;  %v4196_v13 = vld [vmem:[#allocation5 + $0x14] ss:$8 sps:$4 sm:$0xff]  }
  0x5d   : > { %v4198_v14 = vld [vmem:[#allocation5 + $0x10] ss:$8 sps:$4 sm:$0xff]   ;;  %v4199_v15 = vld [vmem:[#allocation5 + $0x4] ss:$8 sps:$4 sm:$0xff]   ;;  %v4201_v16 = vld [vmem:[#allocation5] ss:$8 sps:$4 sm:$0xff]  }
  0x5e   : > { %v276_v17 = vld [vmem:[%s4870_s26] sm:$0xff]  ;;  %v277_v18 = vld [vmem:[%s4870_s26 + $0x8] sm:$0xff]  ;;  %v278_v23 = vld [vmem:[%s4870_s26 + $0x10] sm:$0xff]  ;;  %s3882_s28 = scalar_lea.sflag [#allocation4], %s4864_s16  ;;  %p7799_p4 = scmp.ne.s32.totalorder %s7642_s30, 0 }
  0x5f   : > { %444 = vmatpush1.bf16.msra.mxu0 %v4183_v4  ;;  %4112 = vmatpush1.bf16.msra.mxu1 %v4183_v4  ;;  %v296_v19 = vld [vmem:[%s4870_s26 + $0xa0] sm:$0xff]  ;;  %v297_v20 = vld [vmem:[%s4870_s26 + $0xa8] sm:$0xff]  ;;  %v314_v21 = vpack.c.bf16 %v277_v18, %v276_v17  ;;  %v279_v24 = vld [vmem:[%s4870_s26 + $0x18] sm:$0xff]  ;;  %s3889_s11 = smul.u32 (%p7799_p4), 38, %s4765_s22 }
  0x60   : > { %445 = vmatprep.subr.bf16.mxu0 %v4184_v5  ;;  %4105 = vmatprep.subr.bf16.mxu1 %v4184_v5  ;;  %v324_v22 = vpack.c.bf16 %v297_v20, %v296_v19  ;;  %v298_v25 = vld [vmem:[%s4870_s26 + $0xb0] sm:$0xff]  ;;  %v299_v26 = vld [vmem:[%s4870_s26 + $0xb8] sm:$0xff]  ;;  %v315_v27 = vpack.c.bf16 %v279_v24, %v278_v23  ;;  %v280_v29 = vld [vmem:[%s4870_s26 + $0x20] sm:$0xff] }
  0x61   : > { %v325_v28 = vpack.c.bf16 %v299_v26, %v298_v25  ;;  %v281_v30 = vld [vmem:[%s4870_s26 + $0x28] sm:$0xff]  ;;  %v300_v31 = vld [vmem:[%s4870_s26 + $0xc0] sm:$0xff]  ;;  %v282_v35 = vld [vmem:[%s4870_s26 + $0x30] sm:$0xff]  ;;  %s3890_s12 = ssub.s32 (%p7799_p4), 75, %s3889_s11 }
  0x62   : > { %v301_v32 = vld [vmem:[%s4870_s26 + $0xc8] sm:$0xff]  ;;  %v316_v33 = vpack.c.bf16 %v281_v30, %v280_v29  ;;  %v283_v36 = vld [vmem:[%s4870_s26 + $0x38] sm:$0xff]  ;;  %v302_v37 = vld [vmem:[%s4870_s26 + $0xd0] sm:$0xff]  ;;  %p3891_p13 = scmp.lt.s32.totalorder (%p7799_p4), %s3890_s12, 38 }
  0x63   : > { %446 = vmatpush1.bf16.msra.mxu0 %v4186_v6  ;;  %4113 = vmatpush1.bf16.msra.mxu1 %v4186_v6  ;;  %v326_v34 = vpack.c.bf16 %v301_v32, %v300_v31  ;;  %v303_v38 = vld [vmem:[%s4870_s26 + $0xd8] sm:$0xff]  ;;  %v317_v39 = vpack.c.bf16 %v283_v36, %v282_v35  ;;  %v284_v41 = vld [vmem:[%s4870_s26 + $0x40] sm:$0xff]  ;;  %v285_v42 = vld [vmem:[%s4870_s26 + $0x48] sm:$0xff] }
  0x64   : > { %447 = vmatprep.subr.bf16.mxu0 %v4187_v7  ;;  %4106 = vmatprep.subr.bf16.mxu1 %v4187_v7  ;;  %v327_v40 = vpack.c.bf16 %v303_v38, %v302_v37  ;;  %v304_v43 = vld [vmem:[%s4870_s26 + $0xe0] sm:$0xff]  ;;  %v305_v44 = vld [vmem:[%s4870_s26 + $0xe8] sm:$0xff]  ;;  %v318_v45 = vpack.c.bf16 %v285_v42, %v284_v41  ;;  %v286_v47 = vld [vmem:[%s4870_s26 + $0x50] sm:$0xff] }
  0x65   : > { %v328_v46 = vpack.c.bf16 %v305_v44, %v304_v43  ;;  %v287_v48 = vld [vmem:[%s4870_s26 + $0x58] sm:$0xff]  ;;  %v306_v49 = vld [vmem:[%s4870_s26 + $0xf0] sm:$0xff]  ;;  %v288_v53 = vld [vmem:[%s4870_s26 + $0x60] sm:$0xff] }
  0x66   : > { %v307_v50 = vld [vmem:[%s4870_s26 + $0xf8] sm:$0xff]  ;;  %v319_v51 = vpack.c.bf16 %v287_v48, %v286_v47  ;;  %v289_v54 = vld [vmem:[%s4870_s26 + $0x68] sm:$0xff]  ;;  %v308_v55 = vld [vmem:[%s4870_s26 + $0x100] sm:$0xff] }
  0x67   : > { %448 = vmatpush1.bf16.msra.mxu0 %v4189_v8  ;;  %4114 = vmatpush1.bf16.msra.mxu1 %v4189_v8  ;;  %v329_v52 = vpack.c.bf16 %v307_v50, %v306_v49  ;;  %v309_v56 = vld [vmem:[%s4870_s26 + $0x108] sm:$0xff]  ;;  %v320_v57 = vpack.c.bf16 %v289_v54, %v288_v53  ;;  %v290_v59 = vld [vmem:[%s4870_s26 + $0x70] sm:$0xff]  ;;  %v291_v60 = vld [vmem:[%s4870_s26 + $0x78] sm:$0xff] }
  0x68   : > { %449 = vmatprep.subr.bf16.mxu0 %v4190_v9  ;;  %4107 = vmatprep.subr.bf16.mxu1 %v4190_v9  ;;  %v330_v58 = vpack.c.bf16 %v309_v56, %v308_v55  ;;  %v310_v61 = vld [vmem:[%s4870_s26 + $0x110] sm:$0xff]  ;;  %v311_v62 = vld [vmem:[%s4870_s26 + $0x118] sm:$0xff]  ;;  %v321_v63 = vpack.c.bf16 %v291_v60, %v290_v59  ;;  %v292_v2 = vld [vmem:[%s4870_s26 + $0x80] sm:$0xff] }
  0x69   : > { %v331_v1 = vpack.c.bf16 %v311_v62, %v310_v61  ;;  %v293_v3 = vld [vmem:[%s4870_s26 + $0x88] sm:$0xff]  ;;  %v312_v4 = vld [vmem:[%s4870_s26 + $0x120] sm:$0xff]  ;;  %v294_v8 = vld [vmem:[%s4870_s26 + $0x90] sm:$0xff] }
  0x6a   : > { %v313_v5 = vld [vmem:[%s4870_s26 + $0x128] sm:$0xff]  ;;  %v322_v6 = vpack.c.bf16 %v293_v3, %v292_v2  ;;  %v295_v9 = vld [vmem:[%s4870_s26 + $0x98] sm:$0xff] }
  0x6b   : > { %450 = vmatpush1.bf16.msra.mxu0 %v4192_v10  ;;  %4115 = vmatpush1.bf16.msra.mxu1 %v4192_v10  ;;  %v332_v7 = vpack.c.bf16 %v313_v5, %v312_v4  ;;  %v323_v10 = vpack.c.bf16 %v295_v9, %v294_v8 }
  0x6c   : > { %451 = vmatprep.subr.bf16.mxu0 %v4193_v11  ;;  %4108 = vmatprep.subr.bf16.mxu1 %v4193_v11  ;;  %v351_v11 = vlaneseq }
  0x6f   : > { %452 = vmatpush1.bf16.msra.mxu0 %v4195_v12  ;;  %4116 = vmatpush1.bf16.msra.mxu1 %v4195_v12  ;;  %v352_v12 = vshrl.u32 %v351_v11, 7 }
  0x70   : > { %453 = vmatprep.subr.bf16.mxu0 %v4196_v13  ;;  %4109 = vmatprep.subr.bf16.mxu1 %v4196_v13 }
  0x71   : > { %v4937_v13 = vsub.s32 0, %v352_v12 }
  0x73   : > { %454 = vmatpush1.bf16.msra.mxu0 %v4198_v14  ;;  %4117 = vmatpush1.bf16.msra.mxu1 %v4198_v14  ;;  %v4939_v14 = vsub.s32 1, %v352_v12 }
  0x74   : > { %455 = vmatprep.subr.bf16.mxu0 %v4199_v15  ;;  %4110 = vmatprep.subr.bf16.mxu1 %v4199_v15  ;;  %v349_v15 = vld [vmem:[%s7526_s2] sm:$0x3] }
  0x75   : > { %v4948_v17 = vrot.slane %v349_v15, %v4939_v14 }
  0x77   : > { %456 = vmatpush1.bf16.msra.mxu0 %v4201_v16  ;;  %4118 = vmatpush1.bf16.msra.mxu1 %v4201_v16  ;;  %v4945_v16 = vrot.slane %v349_v15, %v4937_v13 }
  0x7a   : > { %474 = vmatmul.mubr.bf16.vlgmr.msra.gmra.mxu0 %v314_v21  ;;  %574 = vmatmul.mubr.bf16.vlgmr.msra.gmra.mxu1 %v324_v22 }
  0x7b   : > { %483 = vmatprep.mubr.bf16.mxu0 %v4710_v0  ;;  %583 = vmatprep.mubr.bf16.mxu1 %v4710_v0 }
  0x82   : > { %484 = vmatmul.mubr.bf16.gmra.mxu0 %v315_v27  ;;  %584 = vmatmul.mubr.bf16.gmra.mxu1 %v325_v28 }
  0x83   : > { %493 = vmatprep.mubr.bf16.mxu0 %v4710_v0  ;;  %593 = vmatprep.mubr.bf16.mxu1 %v4710_v0 }
  0x8a   : > { %494 = vmatmul.mubr.bf16.gmra.mxu0 %v316_v33  ;;  %594 = vmatmul.mubr.bf16.gmra.mxu1 %v326_v34 }
  0x8b   : > { %503 = vmatprep.mubr.bf16.mxu0 %v4710_v0  ;;  %603 = vmatprep.mubr.bf16.mxu1 %v4710_v0 }
  0x92   : > { %504 = vmatmul.mubr.bf16.gmra.mxu0 %v317_v39  ;;  %604 = vmatmul.mubr.bf16.gmra.mxu1 %v327_v40 }
  0x93   : > { %513 = vmatprep.mubr.bf16.mxu0 %v4710_v0  ;;  %613 = vmatprep.mubr.bf16.mxu1 %v4710_v0 }
  0x9a   : > { %514 = vmatmul.mubr.bf16.gmra.mxu0 %v318_v45  ;;  %614 = vmatmul.mubr.bf16.gmra.mxu1 %v328_v46 }
  0x9b   : > { %523 = vmatprep.mubr.bf16.mxu0 %v4710_v0  ;;  %623 = vmatprep.mubr.bf16.mxu1 %v4710_v0 }
  0xa2   : > { %524 = vmatmul.mubr.bf16.gmra.mxu0 %v319_v51  ;;  %624 = vmatmul.mubr.bf16.gmra.mxu1 %v329_v52 }
  0xa3   : > { %533 = vmatprep.mubr.bf16.mxu0 %v4710_v0  ;;  %633 = vmatprep.mubr.bf16.mxu1 %v4710_v0 }
  0xaa   : > { %534 = vmatmul.mubr.bf16.gmra.mxu0 %v320_v57  ;;  %634 = vmatmul.mubr.bf16.gmra.mxu1 %v330_v58 }
  0xab   : > { %543 = vmatprep.mubr.bf16.mxu0 %v4710_v0  ;;  %643 = vmatprep.mubr.bf16.mxu1 %v4710_v0 }
  0xb2   : > { %544 = vmatmul.mubr.bf16.gmra.mxu0 %v321_v63  ;;  %644 = vmatmul.mubr.bf16.gmra.mxu1 %v331_v1 }
  0xb3   : > { %553 = vmatprep.mubr.bf16.mxu0 %v4710_v0  ;;  %653 = vmatprep.mubr.bf16.mxu1 %v4710_v0 }
  0xba   : > { %554 = vmatmul.mubr.bf16.gmra.mxu0 %v322_v6  ;;  %654 = vmatmul.mubr.bf16.gmra.mxu1 %v332_v7 }
  0xbb   : > { %563 = vmatprep.mubr.bf16.mxu0 %v4710_v0 }
  0xc2   : > { %564 = vmatmul.mubr.bf16.gmra.mxu0 %v323_v10 }
 0x13a   : > { %v475_v0 = vpop.f32.mrf.mxu0  ;;  %v575_v18 = vpop.f32.mrf.mxu1 }
 0x13b   : > { %v4951_v19 = vadd.f32 %v475_v0, %v4945_v16  ;;  %v4962_v27 = vadd.f32 %v575_v18, %v4945_v16 }
 0x13c   : > { %v477_v20 = vpop.f32.mrf.mxu0  ;;  %v577_v21 = vpop.f32.mrf.mxu1 }
 0x13d   : > { %v4954_v22 = vadd.f32 %v477_v20, %v4948_v17  ;;  %v4957_v25 = vadd.f32 %v577_v21, %v4948_v17  ;;  %v817_v35 = vmul.f32 %v4951_v19, %v4951_v19  ;;  %v857_v50 = vmul.f32 %v4962_v27, %v4962_v27 }
 0x13e   : > { %v479_v23 = vpop.f32.mrf.mxu0  ;;  %v579_v24 = vpop.f32.mrf.mxu1 }
 0x13f   : > { %v664_v26 = vadd.f32 %v4954_v22, %v4951_v19  ;;  %v4965_v30 = vadd.f32 %v479_v23, %v4945_v16  ;;  %v4968_v31 = vadd.f32 %v579_v24, %v4945_v16  ;;  %v724_v37 = vadd.f32 %v4957_v25, %v4962_v27 }
 0x140   : > { %v481_v28 = vpop.f32.mrf.mxu0  ;;  %v581_v29 = vpop.f32.mrf.mxu1  ;;  %v818_v39 = vmul.f32 %v4954_v22, %v4954_v22  ;;  %v858_v46 = vmul.f32 %v4957_v25, %v4957_v25 }
 0x141   : > { %v4971_v32 = vadd.f32 %v481_v28, %v4948_v17  ;;  %v4974_v33 = vadd.f32 %v581_v29, %v4948_v17  ;;  %665 = vadd.xlane.f32.xlu0 %v664_v26  ;;  %v819_v42 = vmul.f32 %v4965_v30, %v4965_v30  ;;  %v859_v49 = vmul.f32 %v4968_v31, %v4968_v31 }
 0x142   : > { %v485_v34 = vpop.f32.mrf.mxu0  ;;  %v585_v41 = vpop.f32.mrf.mxu1  ;;  %v893_v44 = vadd.f32 %v818_v39, %v817_v35  ;;  %v953_v54 = vadd.f32 %v858_v46, %v857_v50 }
 0x143   : > { %v727_v36 = vadd.f32 %v4974_v33, %v4968_v31  ;;  %v820_v38 = vmul.f32 %v4971_v32, %v4971_v32  ;;  %v860_v45 = vmul.f32 %v4974_v33, %v4974_v33  ;;  %v4997_v51 = vadd.f32 %v485_v34, %v4945_v16 }
 0x144   : > { %v487_v40 = vpop.f32.mrf.mxu0  ;;  %v587_v48 = vpop.f32.mrf.mxu1  ;;  %v5003_v57 = vadd.f32 %v585_v41, %v4945_v16  ;;  %v667_v58 = vadd.f32 %v4971_v32, %v4965_v30 }
 0x145   : > { %728 = vadd.xlane.f32.xlu1 %v727_v36  ;;  %725 = vadd.xlane.f32.xlu0 %v724_v37  ;;  %v896_v43 = vadd.f32 %v820_v38, %v819_v42  ;;  %v5000_v52 = vadd.f32 %v487_v40, %v4948_v17  ;;  %v956_v53 = vadd.f32 %v860_v45, %v859_v49 }
 0x146   : > { %v489_v47 = vpop.f32.mrf.mxu0  ;;  %v589_v56 = vpop.f32.mrf.mxu1  ;;  %v5014_v61 = vadd.f32 %v587_v48, %v4948_v17  ;;  %v821_v3 = vmul.f32 %v4997_v51, %v4997_v51  ;;  %v861_v10 = vmul.f32 %v5003_v57, %v5003_v57 }
 0x147   : > { %v5008_v59 = vadd.f32 %v489_v47, %v4945_v16  ;;  %v670_v62 = vadd.f32 %v5000_v52, %v4997_v51  ;;  %v5019_v2 = vadd.f32 %v589_v56, %v4945_v16  ;;  %v822_v7 = vmul.f32 %v5000_v52, %v5000_v52 }
 0x148   : > { %v491_v55 = vpop.f32.mrf.mxu0  ;;  %v591_v63 = vpop.f32.mrf.mxu1  ;;  %v730_v6 = vadd.f32 %v5014_v61, %v5003_v57  ;;  %v862_v11 = vmul.f32 %v5014_v61, %v5014_v61 }
 0x149   : > { %897 = vadd.xlane.f32.xlu1 %v896_v43  ;;  %894 = vadd.xlane.f32.xlu0 %v893_v44  ;;  %v5011_v60 = vadd.f32 %v491_v55, %v4948_v17  ;;  %v5024_v4 = vadd.f32 %v591_v63, %v4948_v17  ;;  %v899_v15 = vadd.f32 %v822_v7, %v821_v3 }
 0x14a   : > { %v495_v1 = vpop.f32.mrf.mxu0  ;;  %v595_v9 = vpop.f32.mrf.mxu1  ;;  %v823_v0 = vmul.f32 %v5008_v59, %v5008_v59  ;;  %v959_v23 = vadd.f32 %v862_v11, %v861_v10  ;;  %v863_v24 = vmul.f32 %v5019_v2, %v5019_v2 }
 0x14b   : > { %7646 = vst [vmem:[#allocation11_spill] sm:$0xff] %v5024_v4  ;;  %v673_v5 = vadd.f32 %v5011_v60, %v5008_v59  ;;  %v733_v12 = vadd.f32 %v5024_v4, %v5019_v2  ;;  %v824_v18 = vmul.f32 %v5011_v60, %v5011_v60  ;;  %v5045_v26 = vadd.f32 %v495_v1, %v4945_v16 }
 0x14c   : > { %v497_v8 = vpop.f32.mrf.mxu0  ;;  %v597_v21 = vpop.f32.mrf.mxu1  ;;  %v864_v34 = vmul.f32 %v5024_v4, %v5024_v4  ;;  %v5053_v37 = vadd.f32 %v595_v9, %v4945_v16 }
 0x14d   : > { %957 = vadd.xlane.f32.xlu1 %v956_v53  ;;  %954 = vadd.xlane.f32.xlu0 %v953_v54  ;;  %7647 = vst [vmem:[#allocation12_spill] sm:$0xff] %v5045_v26  ;;  %v5048_v28 = vadd.f32 %v497_v8, %v4948_v17  ;;  %v902_v29 = vadd.f32 %v824_v18, %v823_v0 }
 0x14e   : > { %v499_v20 = vpop.f32.mrf.mxu0  ;;  %v599_v36 = vpop.f32.mrf.mxu1  ;;  %7649 = vst [vmem:[#allocation14_spill] sm:$0xff] %v5053_v37  ;;  %v5056_v38 = vadd.f32 %v597_v21, %v4948_v17  ;;  %v962_v41 = vadd.f32 %v864_v34, %v863_v24  ;;  %v825_v46 = vmul.f32 %v5045_v26, %v5045_v26  ;;  %v865_v55 = vmul.f32 %v5053_v37, %v5053_v37 }
 0x14f   : > { %7648 = vst [vmem:[#allocation13_spill] sm:$0xff] %v5048_v28  ;;  %v5059_v39 = vadd.f32 %v499_v20, %v4945_v16  ;;  %v676_v42 = vadd.f32 %v5048_v28, %v5045_v26  ;;  %v5067_v45 = vadd.f32 %v599_v36, %v4945_v16  ;;  %v826_v50 = vmul.f32 %v5048_v28, %v5048_v28 }
 0x150   : > { %v501_v35 = vpop.f32.mrf.mxu0  ;;  %7650 = vst [vmem:[#allocation15_spill] sm:$0xff] %v5056_v38  ;;  %v601_v43 = vpop.f32.mrf.mxu1  ;;  %v736_v49 = vadd.f32 %v5056_v38, %v5053_v37  ;;  %v866_v56 = vmul.f32 %v5056_v38, %v5056_v38 }
 0x151   : > { %671 = vadd.xlane.f32.xlu1 %v670_v62  ;;  %668 = vadd.xlane.f32.xlu0 %v667_v58  ;;  %7651 = vst [vmem:[#allocation16_spill] sm:$0xff] %v5059_v39  ;;  %v5062_v40 = vadd.f32 %v501_v35, %v4948_v17  ;;  %7653 = vst [vmem:[#allocation18_spill] sm:$0xff] %v5067_v45  ;;  %v5072_v47 = vadd.f32 %v601_v43, %v4948_v17 }
 0x152   : > { %v505_v44 = vpop.f32.mrf.mxu0  ;;  %v605_v54 = vpop.f32.mrf.mxu1  ;;  %v905_v62 = vadd.f32 %v826_v50, %v825_v46  ;;  %v827_v63 = vmul.f32 %v5059_v39, %v5059_v39  ;;  %v867_v7 = vmul.f32 %v5067_v45, %v5067_v45 }
 0x153   : > { %7652 = vst [vmem:[#allocation17_spill] sm:$0xff] %v5062_v40  ;;  %7654 = vst [vmem:[#allocation19_spill] sm:$0xff] %v5072_v47  ;;  %v679_v48 = vadd.f32 %v5062_v40, %v5059_v39  ;;  %v739_v58 = vadd.f32 %v5072_v47, %v5067_v45  ;;  %v828_v1 = vmul.f32 %v5062_v40, %v5062_v40 }
 0x154   : > { %v507_v53 = vpop.f32.mrf.mxu0  ;;  %v5093_v8 = vadd.f32 %v505_v44, %v4945_v16  ;;  %v868_v11 = vmul.f32 %v5072_v47, %v5072_v47  ;;  %v5101_v0 = vadd.f32 %v605_v54, %v4945_v16 }
 0x155   : > { %674 = vadd.xlane.f32.xlu1 %v673_v5  ;;  %731 = vadd.xlane.f32.xlu0 %v730_v6  ;;  %v607_v5 = vpop.f32.mrf.mxu1  ;;  %v965_v6 = vadd.f32 %v866_v56, %v865_v55  ;;  %v5096_v9 = vadd.f32 %v507_v53, %v4948_v17  ;;  %v908_v10 = vadd.f32 %v828_v1, %v827_v63 }
 0x156   : > { %v509_v3 = vpop.f32.mrf.mxu0  ;;  %7655 = vst [vmem:[#allocation20_spill] sm:$0xff] %v5093_v8  ;;  %7657 = vst [vmem:[#allocation22_spill] sm:$0xff] %v5101_v0  ;;  %v5104_v18 = vadd.f32 %v607_v5, %v4948_v17  ;;  %v829_v36 = vmul.f32 %v5093_v8, %v5093_v8 }
 0x157   : > { %7656 = vst [vmem:[#allocation21_spill] sm:$0xff] %v5096_v9  ;;  %v5107_v20 = vadd.f32 %v509_v3, %v4945_v16  ;;  %v682_v24 = vadd.f32 %v5096_v9, %v5093_v8  ;;  %v830_v44 = vmul.f32 %v5096_v9, %v5096_v9 }
 0x158   : > { %7658 = vst [vmem:[#allocation23_spill] sm:$0xff] %v5104_v18  ;;  %v742_v43 = vadd.f32 %v5104_v18, %v5101_v0  ;;  %v870_v50 = vmul.f32 %v5104_v18, %v5104_v18 }
 0x159   : > { %734 = vadd.xlane.f32.xlu1 %v733_v12  ;;  %900 = vadd.xlane.f32.xlu0 %v899_v15  ;;  %v511_v12 = vpop.f32.mrf.mxu0  ;;  %v609_v15 = vpop.f32.mrf.mxu1  ;;  %7659 = vst [vmem:[#allocation24_spill] sm:$0xff] %v5107_v20  ;;  %v911_v54 = vadd.f32 %v830_v44, %v829_v36  ;;  %v831_v55 = vmul.f32 %v5107_v20, %v5107_v20 }
 0x15a   : > { %v5110_v21 = vadd.f32 %v511_v12, %v4948_v17  ;;  %v5115_v35 = vadd.f32 %v609_v15, %v4945_v16 }
 0x15b   : > { %v515_v34 = vpop.f32.mrf.mxu0 }
 0x15c   : > { %7660 = vst [vmem:[#allocation25_spill] sm:$0xff] %v5110_v21  ;;  %7661 = vst [vmem:[#allocation26_spill] sm:$0xff] %v5115_v35  ;;  %v832_v56 = vmul.f32 %v5110_v21, %v5110_v21  ;;  %v871_v1 = vmul.f32 %v5115_v35, %v5115_v35  ;;  %v5141_v3 = vadd.f32 %v515_v34, %v4945_v16 }
 0x15d   : > { %903 = vadd.xlane.f32.xlu1 %v902_v29  ;;  %960 = vadd.xlane.f32.xlu0 %v959_v23  ;;  %v968_v23 = vadd.f32 %v868_v11, %v867_v7  ;;  %v611_v29 = vpop.f32.mrf.mxu1  ;;  %v517_v46 = vpop.f32.mrf.mxu0 }
 0x15e   : > { %7663 = vst [vmem:[#allocation28_spill] sm:$0xff] %v5141_v3  ;;  %v5144_v5 = vadd.f32 %v517_v46, %v4948_v17  ;;  %v833_v44 = vmul.f32 %v5141_v3, %v5141_v3 }
 0x160   : > { %7664 = vst [vmem:[#allocation29_spill] sm:$0xff] %v5144_v5  ;;  %v688_v34 = vadd.f32 %v5144_v5, %v5141_v3 }
 0x161   : > { %963 = vadd.xlane.f32.xlu1 %v962_v41  ;;  %677 = vadd.xlane.f32.xlu0 %v676_v42  ;;  %v5120_v41 = vadd.f32 %v611_v29, %v4948_v17  ;;  %v685_v42 = vadd.f32 %v5110_v21, %v5107_v20 }
 0x163   : > { %7662 = vst [vmem:[#allocation27_spill] sm:$0xff] %v5120_v41  ;;  %v745_v53 = vadd.f32 %v5120_v41, %v5115_v35  ;;  %v872_v7 = vmul.f32 %v5120_v41, %v5120_v41 }
 0x165   : > { %680 = vadd.xlane.f32.xlu1 %v679_v48  ;;  %737 = vadd.xlane.f32.xlu0 %v736_v49  ;;  %v615_v48 = vpop.f32.mrf.mxu1  ;;  %v869_v49 = vmul.f32 %v5101_v0, %v5101_v0  ;;  %v974_v29 = vadd.f32 %v872_v7, %v871_v1 }
 0x166   : > { %v5149_v12 = vadd.f32 %v615_v48, %v4945_v16 }
 0x167   : > { %v971_v63 = vadd.f32 %v870_v50, %v869_v49  ;;  %v834_v50 = vmul.f32 %v5144_v5, %v5144_v5 }
 0x168   : > { %7665 = vst [vmem:[#allocation30_spill] sm:$0xff] %v5149_v12 }
 0x169   : > { %740 = vadd.xlane.f32.xlu1 %v739_v58  ;;  %906 = vadd.xlane.f32.xlu0 %v905_v62  ;;  %v519_v58 = vpop.f32.mrf.mxu0  ;;  %v617_v62 = vpop.f32.mrf.mxu1 }
 0x16a   : > { %v5152_v15 = vadd.f32 %v617_v62, %v4948_v17  ;;  %v917_v62 = vadd.f32 %v834_v50, %v833_v44 }
 0x16b   : > { %v619_v11 = vpop.f32.mrf.mxu1 }
 0x16c   : > { %7666 = vst [vmem:[#allocation31_spill] sm:$0xff] %v5152_v15  ;;  %v748_v49 = vadd.f32 %v5152_v15, %v5149_v12 }
 0x16d   : > { %909 = vadd.xlane.f32.xlu1 %v908_v10  ;;  %966 = vadd.xlane.f32.xlu0 %v965_v6  ;;  %v914_v6 = vadd.f32 %v832_v56, %v831_v55  ;;  %v521_v10 = vpop.f32.mrf.mxu0  ;;  %v621_v36 = vpop.f32.mrf.mxu1  ;;  %v873_v55 = vmul.f32 %v5149_v12, %v5149_v12  ;;  %v874_v56 = vmul.f32 %v5152_v15, %v5152_v15 }
 0x16e   : > { %v5168_v46 = vadd.f32 %v621_v36, %v4948_v17 }
 0x170   : > { %7670 = vst [vmem:[#allocation35_spill] sm:$0xff] %v5168_v46  ;;  %v876_v44 = vmul.f32 %v5168_v46, %v5168_v46 }
 0x171   : > { %969 = vadd.xlane.f32.xlu1 %v968_v23  ;;  %683 = vadd.xlane.f32.xlu0 %v682_v24  ;;  %v5155_v23 = vadd.f32 %v519_v58, %v4945_v16  ;;  %v5158_v24 = vadd.f32 %v521_v10, %v4948_v17  ;;  %v977_v10 = vadd.f32 %v874_v56, %v873_v55 }
 0x173   : > { %7667 = vst [vmem:[#allocation32_spill] sm:$0xff] %v5155_v23  ;;  %7668 = vst [vmem:[#allocation33_spill] sm:$0xff] %v5158_v24  ;;  %v691_v48 = vadd.f32 %v5158_v24, %v5155_v23  ;;  %v836_v1 = vmul.f32 %v5158_v24, %v5158_v24 }
 0x175   : > { %686 = vadd.xlane.f32.xlu1 %v685_v42  ;;  %743 = vadd.xlane.f32.xlu0 %v742_v43  ;;  %v525_v42 = vpop.f32.mrf.mxu0  ;;  %v5163_v43 = vadd.f32 %v619_v11, %v4945_v16 }
 0x177   : > { %7669 = vst [vmem:[#allocation34_spill] sm:$0xff] %v5163_v43  ;;  %v751_v58 = vadd.f32 %v5168_v46, %v5163_v43  ;;  %v875_v11 = vmul.f32 %v5163_v43, %v5163_v43 }
 0x179   : > { %746 = vadd.xlane.f32.xlu1 %v745_v53  ;;  %912 = vadd.xlane.f32.xlu0 %v911_v54  ;;  %v527_v53 = vpop.f32.mrf.mxu0  ;;  %v625_v54 = vpop.f32.mrf.mxu1  ;;  %v980_v56 = vadd.f32 %v876_v44, %v875_v11 }
 0x17a   : > { %v5197_v50 = vadd.f32 %v625_v54, %v4945_v16 }
 0x17b   : > { %v627_v7 = vpop.f32.mrf.mxu1 }
 0x17c   : > { %7673 = vst [vmem:[#allocation38_spill] sm:$0xff] %v5197_v50  ;;  %v5200_v55 = vadd.f32 %v627_v7, %v4948_v17 }
 0x17d   : > { %915 = vadd.xlane.f32.xlu1 %v914_v6  ;;  %972 = vadd.xlane.f32.xlu0 %v971_v63  ;;  %v835_v63 = vmul.f32 %v5155_v23, %v5155_v23  ;;  %v529_v6 = vpop.f32.mrf.mxu0 }
 0x17e   : > { %7674 = vst [vmem:[#allocation39_spill] sm:$0xff] %v5200_v55 }
 0x17f   : > { %v920_v36 = vadd.f32 %v836_v1, %v835_v63 }
 0x181   : > { %975 = vadd.xlane.f32.xlu1 %v974_v29  ;;  %689 = vadd.xlane.f32.xlu0 %v688_v34  ;;  %v5189_v29 = vadd.f32 %v525_v42, %v4945_v16  ;;  %v5192_v34 = vadd.f32 %v527_v53, %v4948_v17  ;;  %v5203_v42 = vadd.f32 %v529_v6, %v4945_v16 }
 0x183   : > { %7671 = vst [vmem:[#allocation36_spill] sm:$0xff] %v5189_v29  ;;  %7672 = vst [vmem:[#allocation37_spill] sm:$0xff] %v5192_v34  ;;  %v837_v1 = vmul.f32 %v5189_v29, %v5189_v29  ;;  %v838_v11 = vmul.f32 %v5192_v34, %v5192_v34 }
 0x184   : > { %7675 = vst [vmem:[#allocation40_spill] sm:$0xff] %v5203_v42 }
 0x185   : > { %692 = vadd.xlane.f32.xlu1 %v691_v48  ;;  %749 = vadd.xlane.f32.xlu0 %v748_v49  ;;  %v531_v48 = vpop.f32.mrf.mxu0  ;;  %v629_v49 = vpop.f32.mrf.mxu1 }
 0x186   : > { %v5206_v53 = vadd.f32 %v531_v48, %v4948_v17  ;;  %v5211_v54 = vadd.f32 %v629_v49, %v4945_v16  ;;  %v877_v48 = vmul.f32 %v5197_v50, %v5197_v50  ;;  %v878_v49 = vmul.f32 %v5200_v55, %v5200_v55 }
 0x187   : > { %v535_v63 = vpop.f32.mrf.mxu0 }
 0x188   : > { %7676 = vst [vmem:[#allocation41_spill] sm:$0xff] %v5206_v53  ;;  %7677 = vst [vmem:[#allocation42_spill] sm:$0xff] %v5211_v54  ;;  %v697_v7 = vadd.f32 %v5206_v53, %v5203_v42 }
 0x189   : > { %752 = vadd.xlane.f32.xlu1 %v751_v58  ;;  %918 = vadd.xlane.f32.xlu0 %v917_v62  ;;  %v694_v58 = vadd.f32 %v5192_v34, %v5189_v29  ;;  %v631_v62 = vpop.f32.mrf.mxu1  ;;  %v840_v34 = vmul.f32 %v5206_v53, %v5206_v53 }
 0x18a   : > { %v5216_v6 = vadd.f32 %v631_v62, %v4948_v17  ;;  %v839_v62 = vmul.f32 %v5203_v42, %v5203_v42 }
 0x18b   : > { %v635_v44 = vpop.f32.mrf.mxu1 }
 0x18c   : > { %7678 = vst [vmem:[#allocation43_spill] sm:$0xff] %v5216_v6 }
 0x18d   : > { %921 = vadd.xlane.f32.xlu1 %v920_v36  ;;  %978 = vadd.xlane.f32.xlu0 %v977_v10  ;;  %v754_v10 = vadd.f32 %v5200_v55, %v5197_v50  ;;  %v537_v36 = vpop.f32.mrf.mxu0  ;;  %v637_v46 = vpop.f32.mrf.mxu1  ;;  %v5237_v55 = vadd.f32 %v535_v63, %v4945_v16 }
 0x18e   : > { %v5240_v50 = vadd.f32 %v537_v36, %v4948_v17 }
 0x18f   : > { %v539_v29 = vpop.f32.mrf.mxu0  ;;  %7679 = vst [vmem:[#allocation44_spill] sm:$0xff] %v5237_v55  ;;  %v639_v53 = vpop.f32.mrf.mxu1 }
 0x190   : > { %7680 = vst [vmem:[#allocation45_spill] sm:$0xff] %v5240_v50  ;;  %v5251_v63 = vadd.f32 %v539_v29, %v4945_v16 }
 0x191   : > { %981 = vadd.xlane.f32.xlu1 %v980_v56  ;;  %695 = vadd.xlane.f32.xlu0 %v694_v58  ;;  %v757_v56 = vadd.f32 %v5216_v6, %v5211_v54  ;;  %v923_v58 = vadd.f32 %v838_v11, %v837_v1  ;;  %v926_v1 = vadd.f32 %v840_v34, %v839_v62  ;;  %v541_v42 = vpop.f32.mrf.mxu0 }
 0x192   : > { %v880_v11 = vmul.f32 %v5216_v6, %v5216_v6  ;;  %7683 = vst [vmem:[#allocation48_spill] sm:$0xff] %v5251_v63  ;;  %v5254_v36 = vadd.f32 %v541_v42, %v4948_v17 }
 0x193   : > { %v545_v62 = vpop.f32.mrf.mxu0 }
 0x194   : > { %7684 = vst [vmem:[#allocation49_spill] sm:$0xff] %v5254_v36  ;;  %v703_v42 = vadd.f32 %v5254_v36, %v5251_v63 }
 0x195   : > { %698 = vadd.xlane.f32.xlu1 %v697_v7  ;;  %755 = vadd.xlane.f32.xlu0 %v754_v10  ;;  %v983_v7 = vadd.f32 %v878_v49, %v877_v48  ;;  %v879_v10 = vmul.f32 %v5211_v54, %v5211_v54  ;;  %v5248_v48 = vadd.f32 %v637_v46, %v4948_v17 }
 0x196   : > { %v700_v49 = vadd.f32 %v5240_v50, %v5237_v55  ;;  %v841_v46 = vmul.f32 %v5237_v55, %v5237_v55  ;;  %v843_v55 = vmul.f32 %v5251_v63, %v5251_v63 }
 0x197   : > { %7682 = vst [vmem:[#allocation47_spill] sm:$0xff] %v5248_v48  ;;  %v986_v34 = vadd.f32 %v880_v11, %v879_v10  ;;  %v842_v10 = vmul.f32 %v5240_v50, %v5240_v50  ;;  %v844_v50 = vmul.f32 %v5254_v36, %v5254_v36 }
 0x199   : > { %758 = vadd.xlane.f32.xlu1 %v757_v56  ;;  %924 = vadd.xlane.f32.xlu0 %v923_v58  ;;  %v5245_v56 = vadd.f32 %v635_v44, %v4945_v16  ;;  %v641_v58 = vpop.f32.mrf.mxu1  ;;  %v5259_v44 = vadd.f32 %v639_v53, %v4945_v16 }
 0x19a   : > { %v5264_v29 = vadd.f32 %v641_v58, %v4948_v17  ;;  %v929_v58 = vadd.f32 %v842_v10, %v841_v46  ;;  %v932_v46 = vadd.f32 %v844_v50, %v843_v55 }
 0x19b   : > { %7681 = vst [vmem:[#allocation46_spill] sm:$0xff] %v5245_v56  ;;  %7685 = vst [vmem:[#allocation50_spill] sm:$0xff] %v5259_v44  ;;  %v645_v11 = vpop.f32.mrf.mxu1  ;;  %v881_v53 = vmul.f32 %v5245_v56, %v5245_v56 }
 0x19c   : > { %7686 = vst [vmem:[#allocation51_spill] sm:$0xff] %v5264_v29  ;;  %v884_v10 = vmul.f32 %v5264_v29, %v5264_v29 }
 0x19d   : > { %927 = vadd.xlane.f32.xlu1 %v926_v1  ;;  %984 = vadd.xlane.f32.xlu0 %v983_v7  ;;  %v760_v7 = vadd.f32 %v5248_v48, %v5245_v56  ;;  %v547_v1 = vpop.f32.mrf.mxu0  ;;  %v647_v54 = vpop.f32.mrf.mxu1 }
 0x19e   : > { %v5288_v56 = vadd.f32 %v547_v1, %v4948_v17 }
 0x19f   : > { %v549_v6 = vpop.f32.mrf.mxu0  ;;  %v649_v36 = vpop.f32.mrf.mxu1 }
 0x1a0   : > { %7688 = vst [vmem:[#allocation53_spill] sm:$0xff] %v5288_v56 }
 0x1a1   : > { %987 = vadd.xlane.f32.xlu1 %v986_v34  ;;  %701 = vadd.xlane.f32.xlu0 %v700_v49  ;;  %v882_v34 = vmul.f32 %v5248_v48, %v5248_v48  ;;  %v763_v49 = vadd.f32 %v5264_v29, %v5259_v44  ;;  %v5285_v48 = vadd.f32 %v545_v62, %v4945_v16  ;;  %v551_v63 = vpop.f32.mrf.mxu0 }
 0x1a2   : > { %v5299_v62 = vadd.f32 %v549_v6, %v4945_v16  ;;  %v5302_v1 = vadd.f32 %v551_v63, %v4948_v17 }
 0x1a3   : > { %7687 = vst [vmem:[#allocation52_spill] sm:$0xff] %v5285_v48  ;;  %v706_v55 = vadd.f32 %v5288_v56, %v5285_v48 }
 0x1a4   : > { %7691 = vst [vmem:[#allocation56_spill] sm:$0xff] %v5299_v62  ;;  %7692 = vst [vmem:[#allocation57_spill] sm:$0xff] %v5302_v1  ;;  %v709_v63 = vadd.f32 %v5302_v1, %v5299_v62  ;;  %v847_v29 = vmul.f32 %v5299_v62, %v5299_v62 }
 0x1a5   : > { %704 = vadd.xlane.f32.xlu1 %v703_v42  ;;  %761 = vadd.xlane.f32.xlu0 %v760_v7  ;;  %v989_v42 = vadd.f32 %v882_v34, %v881_v53  ;;  %v883_v7 = vmul.f32 %v5259_v44, %v5259_v44  ;;  %v5296_v53 = vadd.f32 %v647_v54, %v4948_v17  ;;  %v555_v34 = vpop.f32.mrf.mxu0 }
 0x1a6   : > { %v845_v54 = vmul.f32 %v5285_v48, %v5285_v48 }
 0x1a7   : > { %7690 = vst [vmem:[#allocation55_spill] sm:$0xff] %v5296_v53  ;;  %v992_v50 = vadd.f32 %v884_v10, %v883_v7 }
 0x1a9   : > { %764 = vadd.xlane.f32.xlu1 %v763_v49  ;;  %930 = vadd.xlane.f32.xlu0 %v929_v58  ;;  %v5293_v49 = vadd.f32 %v645_v11, %v4945_v16  ;;  %v651_v58 = vpop.f32.mrf.mxu1  ;;  %v5307_v11 = vadd.f32 %v649_v36, %v4945_v16 }
 0x1aa   : > { %v5312_v6 = vadd.f32 %v651_v58, %v4948_v17 }
 0x1ab   : > { %7689 = vst [vmem:[#allocation54_spill] sm:$0xff] %v5293_v49  ;;  %7693 = vst [vmem:[#allocation58_spill] sm:$0xff] %v5307_v11  ;;  %v766_v7 = vadd.f32 %v5296_v53, %v5293_v49  ;;  %v655_v10 = vpop.f32.mrf.mxu1 }
 0x1ac   : > { %7694 = vst [vmem:[#allocation59_spill] sm:$0xff] %v5312_v6  ;;  %v769_v58 = vadd.f32 %v5312_v6, %v5307_v11 }
 0x1ad   : > { %933 = vadd.xlane.f32.xlu1 %v932_v46  ;;  %990 = vadd.xlane.f32.xlu0 %v989_v42  ;;  %v557_v42 = vpop.f32.mrf.mxu0  ;;  %v846_v46 = vmul.f32 %v5288_v56, %v5288_v56  ;;  %v848_v56 = vmul.f32 %v5302_v1, %v5302_v1  ;;  %v657_v44 = vpop.f32.mrf.mxu1 }
 0x1ae   : > { %v5336_v43 = vadd.f32 %v557_v42, %v4948_v17 }
 0x1af   : > { %v559_v36 = vpop.f32.mrf.mxu0  ;;  %v935_v48 = vadd.f32 %v846_v46, %v845_v54  ;;  %v938_v54 = vadd.f32 %v848_v56, %v847_v29  ;;  %v888_v46 = vmul.f32 %v5312_v6, %v5312_v6  ;;  %v659_v62 = vpop.f32.mrf.mxu1 }
 0x1b0   : > { %7696 = vst [vmem:[#allocation61_spill] sm:$0xff] %v5336_v43 }
 0x1b1   : > { %993 = vadd.xlane.f32.xlu1 %v992_v50  ;;  %707 = vadd.xlane.f32.xlu0 %v706_v55  ;;  %v885_v50 = vmul.f32 %v5293_v49, %v5293_v49  ;;  %v886_v55 = vmul.f32 %v5296_v53, %v5296_v53  ;;  %v887_v49 = vmul.f32 %v5307_v11, %v5307_v11 }
 0x1b2   : > { %v5333_v53 = vadd.f32 %v555_v34, %v4945_v16  ;;  %v5347_v34 = vadd.f32 %v559_v36, %v4945_v16  ;;  %v5359_v36 = vadd.f32 %v659_v62, %v4945_v16 }
 0x1b3   : > { %v998_v56 = vadd.f32 %v888_v46, %v887_v49 }
 0x1b4   : > { %7695 = vst [vmem:[#allocation60_spill] sm:$0xff] %v5333_v53  ;;  %7699 = vst [vmem:[#allocation64_spill] sm:$0xff] %v5347_v34  ;;  %v712_v29 = vadd.f32 %v5336_v43, %v5333_v53 }
 0x1b5   : > { %710 = vadd.xlane.f32.xlu1 %v709_v63  ;;  %767 = vadd.xlane.f32.xlu0 %v766_v7  ;;  %v561_v63 = vpop.f32.mrf.mxu0  ;;  %v995_v7 = vadd.f32 %v886_v55, %v885_v50  ;;  %v5344_v50 = vadd.f32 %v657_v44, %v4948_v17  ;;  %v661_v55 = vpop.f32.mrf.mxu1  ;;  %v850_v44 = vmul.f32 %v5336_v43, %v5336_v43 }
 0x1b6   : > { %v5350_v42 = vadd.f32 %v561_v63, %v4948_v17  ;;  %7701 = vst [vmem:[#allocation66_spill] sm:$0xff] %v5359_v36  ;;  %v5362_v63 = vadd.f32 %v661_v55, %v4948_v17 }
 0x1b7   : > { %v565_v1 = vpop.f32.mrf.mxu0  ;;  %7698 = vst [vmem:[#allocation63_spill] sm:$0xff] %v5344_v50 }
 0x1b8   : > { %7700 = vst [vmem:[#allocation65_spill] sm:$0xff] %v5350_v42  ;;  %7702 = vst [vmem:[#allocation67_spill] sm:$0xff] %v5362_v63  ;;  %v715_v49 = vadd.f32 %v5350_v42, %v5347_v34  ;;  %v775_v55 = vadd.f32 %v5362_v63, %v5359_v36  ;;  %v852_v43 = vmul.f32 %v5350_v42, %v5350_v42 }
 0x1b9   : > { %770 = vadd.xlane.f32.xlu1 %v769_v58  ;;  %936 = vadd.xlane.f32.xlu0 %v935_v48  ;;  %v5341_v48 = vadd.f32 %v655_v10, %v4945_v16  ;;  %v567_v58 = vpop.f32.mrf.mxu0  ;;  %v849_v10 = vmul.f32 %v5333_v53, %v5333_v53 }
 0x1ba   : > { %v5374_v62 = vadd.f32 %v567_v58, %v4948_v17 }
 0x1bb   : > { %7697 = vst [vmem:[#allocation62_spill] sm:$0xff] %v5341_v48  ;;  %v941_v46 = vadd.f32 %v850_v44, %v849_v10 }
 0x1bc   : > { %7704 = vst [vmem:[#allocation69_spill] sm:$0xff] %v5374_v62  ;;  %v854_v42 = vmul.f32 %v5374_v62, %v5374_v62 }
 0x1bd   : > { %939 = vadd.xlane.f32.xlu1 %v938_v54  ;;  %996 = vadd.xlane.f32.xlu0 %v995_v7  ;;  %v772_v7 = vadd.f32 %v5344_v50, %v5341_v48  ;;  %v569_v54 = vpop.f32.mrf.mxu0 }
 0x1be   : > { %v5381_v10 = vadd.f32 %v569_v54, %v4945_v16  ;;  %v889_v54 = vmul.f32 %v5341_v48, %v5341_v48 }
 0x1bf   : > { %v571_v53 = vpop.f32.mrf.mxu0 }
 0x1c0   : > { %7705 = vst [vmem:[#allocation70_spill] sm:$0xff] %v5381_v10  ;;  %v5384_v44 = vadd.f32 %v571_v53, %v4948_v17  ;;  %v855_v17 = vmul.f32 %v5381_v10, %v5381_v10 }
 0x1c1   : > { %999 = vadd.xlane.f32.xlu1 %v998_v56  ;;  %713 = vadd.xlane.f32.xlu0 %v712_v29  ;;  %v851_v56 = vmul.f32 %v5347_v34, %v5347_v34  ;;  %v5371_v29 = vadd.f32 %v565_v1, %v4945_v16 }
 0x1c2   : > { %7706 = vst [vmem:[#allocation71_spill] sm:$0xff] %v5384_v44  ;;  %v721_v16 = vadd.f32 %v5384_v44, %v5381_v10  ;;  %v892_v10 = vmul.f32 %v5362_v63, %v5362_v63 }
 0x1c3   : > { %7703 = vst [vmem:[#allocation68_spill] sm:$0xff] %v5371_v29  ;;  %v944_v1 = vadd.f32 %v852_v43, %v851_v56  ;;  %v718_v58 = vadd.f32 %v5374_v62, %v5371_v29  ;;  %v856_v43 = vmul.f32 %v5384_v44, %v5384_v44  ;;  %v890_v56 = vmul.f32 %v5344_v50, %v5344_v50 }
 0x1c4   : > { %v891_v62 = vmul.f32 %v5359_v36, %v5359_v36 }
 0x1c5   : > { %716 = vadd.xlane.f32.xlu1 %v715_v49  ;;  %773 = vadd.xlane.f32.xlu0 %v772_v7  ;;  %v853_v7 = vmul.f32 %v5371_v29, %v5371_v29  ;;  %v950_v48 = vadd.f32 %v856_v43, %v855_v17  ;;  %v1001_v50 = vadd.f32 %v890_v56, %v889_v54 }
 0x1c6   : > { %v1004_v36 = vadd.f32 %v892_v10, %v891_v62 }
 0x1c7   : > { %v947_v53 = vadd.f32 %v854_v42, %v853_v7 }
 0x1c9   : > { %776 = vadd.xlane.f32.xlu1 %v775_v55  ;;  %942 = vadd.xlane.f32.xlu0 %v941_v46 }
 0x1ca   : > { %v666_v49 = vpop.xlane.xlu0 %665 }
 0x1cb   : > { %v5392_v34 = vmul.f32 0.00390625, %v666_v49 }
 0x1cd   : > { %945 = vadd.xlane.f32.xlu1 %v944_v1  ;;  %719 = vadd.xlane.f32.xlu0 %v718_v58  ;;  %v1045_v42 = vmul.f32 %v5392_v34, %v5392_v34 }
 0x1ce   : > { %v729_v46 = vpop.xlane.xlu1 %728  ;;  %v726_v55 = vpop.xlane.xlu0 %725 }
 0x1cf   : > { %v5404_v1 = vmul.f32 0.00390625, %v729_v46  ;;  %v5410_v44 = vmul.f32 0.00390625, %v726_v55 }
 0x1d1   : > { %722 = vadd.xlane.f32.xlu1 %v721_v16  ;;  %948 = vadd.xlane.f32.xlu0 %v947_v53  ;;  %v1066_v46 = vmul.f32 %v5404_v1, %v5404_v1  ;;  %v1065_v55 = vmul.f32 %v5410_v44, %v5410_v44 }
 0x1d2   : > { %v898_v49 = vpop.xlane.xlu1 %897  ;;  %v895_v58 = vpop.xlane.xlu0 %894 }
 0x1d3   : > { %v1007_v7 = vmul.f32 0.00390625, %v895_v58  ;;  %v1008_v62 = vmul.f32 0.00390625, %v898_v49 }
 0x1d5   : > { %v1083_v16 = vsub.f32 %v1007_v7, %v1045_v42  ;;  %951 = vadd.xlane.f32.xlu1 %v950_v48  ;;  %1002 = vadd.xlane.f32.xlu0 %v1001_v50 }
 0x1d6   : > { %v958_v53 = vpop.xlane.xlu1 %957  ;;  %v955_v29 = vpop.xlane.xlu0 %954 }
 0x1d7   : > { %v1121_v6 = vmax.f32 %v1083_v16, 0.0  ;;  %v1028_v11 = vmul.f32 0.00390625, %v958_v53  ;;  %v1027_v63 = vmul.f32 0.00390625, %v955_v29  ;;  %v1387_v29 = vld [vmem:[%s7527_s3] sm:$0x3] }
 0x1d8   : > { %v1475_v53 = vld [vmem:[%s7528_s4] sm:$0x3] }
 0x1d9   : > { %v1235_v15 = vadd.f32 1e-05, %v1121_v6  ;;  %v1104_v12 = vsub.f32 %v1028_v11, %v1066_v46  ;;  %v1103_v58 = vsub.f32 %v1027_v63, %v1065_v55  ;;  %1005 = vadd.xlane.f32.xlu1 %v1004_v36  ;;  %v1159_v55 = vsub.f32 %v4951_v19, %v5392_v34 }
 0x1da   : > { %v672_v17 = vpop.xlane.xlu1 %671  ;;  %v669_v43 = vpop.xlane.xlu0 %668  ;;  %v5448_v19 = vrot.slane %v1475_v53, %v4939_v14 }
 0x1db   : > { %4202 = vrsqrt.f32 %v1235_v15  ;;  %v1142_v48 = vmax.f32 %v1104_v12, 0.0  ;;  %v1141_v50 = vmax.f32 %v1103_v58, 0.0  ;;  %v5418_v54 = vmul.f32 0.00390625, %v669_v43 }
 0x1dc   : > { %v5422_v6 = vmul.f32 0.00390625, %v672_v17  ;;  %v1160_v58 = vsub.f32 %v4954_v22, %v5392_v34  ;;  %v5437_v17 = vrot.slane %v1387_v29, %v4937_v13  ;;  %v5440_v43 = vrot.slane %v1387_v29, %v4939_v14  ;;  %7710 = vst [vmem:[#allocation75_spill] sm:$0xff] %v5448_v19 }
 0x1dd   : > { %v1256_v56 = vadd.f32 1e-05, %v1142_v48  ;;  %v1255_v42 = vadd.f32 1e-05, %v1141_v50  ;;  %v1046_v10 = vmul.f32 %v5418_v54, %v5418_v54 }
 0x1de   : > { %v675_v7 = vpop.xlane.xlu1 %674  ;;  %v732_v16 = vpop.xlane.xlu0 %731  ;;  %v1047_v12 = vmul.f32 %v5422_v6, %v5422_v6  ;;  %7707 = vst [vmem:[#allocation72_spill] sm:$0xff] %v5437_v17  ;;  %7708 = vst [vmem:[#allocation73_spill] sm:$0xff] %v5440_v43 }
 0x1df   : > { %4204 = vrsqrt.f32 %v1256_v56  ;;  %v1084_v11 = vsub.f32 %v1008_v62, %v1046_v10  ;;  %v5442_v56 = vmul.f32 0.00390625, %v675_v7  ;;  %v5445_v10 = vrot.slane %v1475_v53, %v4937_v13 }
 0x1e0   : > { %4206 = vrsqrt.f32 %v1255_v42  ;;  %v1199_v7 = vsub.f32 %v4962_v27, %v5410_v44  ;;  %v1200_v13 = vsub.f32 %v4957_v25, %v5410_v44 }
 0x1e1   : > { %v1122_v49 = vmax.f32 %v1084_v11, 0.0  ;;  %7709 = vst [vmem:[#allocation74_spill] sm:$0xff] %v5445_v10 }
 0x1e2   : > { %v735_v36 = vpop.xlane.xlu1 %734  ;;  %v901_v63 = vpop.xlane.xlu0 %900 }
 0x1e3   : > { %v1009_v15 = vmul.f32 0.00390625, %v901_v63  ;;  %v1236_v50 = vadd.f32 1e-05, %v1122_v49  ;;  %v1201_v63 = vsub.f32 %v4968_v31, %v5404_v1  ;;  %v1048_v31 = vmul.f32 %v5442_v56, %v5442_v56 }
 0x1e5   : > { %v1085_v46 = vsub.f32 %v1009_v15, %v1047_v12  ;;  %v1202_v12 = vsub.f32 %v4974_v33, %v5404_v1  ;;  %v5456_v15 = vmul.f32 0.00390625, %v732_v16  ;;  %4208 = vrsqrt.f32 %v1236_v50 }
 0x1e6   : > { %v904_v62 = vpop.xlane.xlu1 %903  ;;  %v961_v34 = vpop.xlane.xlu0 %960 }
 0x1e7   : > { %v1123_v42 = vmax.f32 %v1085_v46, 0.0  ;;  %v1010_v49 = vmul.f32 0.00390625, %v904_v62  ;;  %v1029_v33 = vmul.f32 0.00390625, %v961_v34 }
 0x1e8   : > { %v4203_v48 = vpop.eup %4202 }
 0x1e9   : > { %v1311_v11 = vmul.f32 %v4203_v48, %v1159_v55  ;;  %v1312_v22 = vmul.f32 %v4203_v48, %v1160_v58  ;;  %v1237_v53 = vadd.f32 1e-05, %v1123_v42  ;;  %v1067_v48 = vmul.f32 %v5456_v15, %v5456_v15 }
 0x1eb   : > { %v1399_v14 = vmul.f32 %v5437_v17, %v1311_v11  ;;  %v1400_v29 = vmul.f32 %v5440_v43, %v1312_v22  ;;  %v1086_v11 = vsub.f32 %v1010_v49, %v1048_v31  ;;  %4210 = vrsqrt.f32 %v1237_v53 }
 0x1ec   : > { %v4205_v46 = vpop.eup %4204  ;;  %v1161_v49 = vsub.f32 %v4965_v30, %v5418_v54  ;;  %v5485_v31 = vmul.f32 0.00390625, %v735_v36 }
 0x1ed   : > { %v4207_v1 = vpop.eup %4206  ;;  %v1487_v27 = vadd.f32 %v5445_v10, %v1399_v14  ;;  %v1488_v16 = vadd.f32 %v5448_v19, %v1400_v29  ;;  %v1353_v55 = vmul.f32 %v4205_v46, %v1201_v63  ;;  %v1354_v58 = vmul.f32 %v4205_v46, %v1202_v12  ;;  %v964_v29 = vpop.xlane.xlu1 %963 }
 0x1ee   : > { %v1351_v25 = vmul.f32 %v4207_v1, %v1199_v7  ;;  %v1352_v62 = vmul.f32 %v4207_v1, %v1200_v13  ;;  %v1105_v63 = vsub.f32 %v1029_v33, %v1067_v48  ;;  %v1162_v48 = vsub.f32 %v4971_v32, %v5418_v54 }
 0x1ef   : > { %v5470_v50 = vmul.f32 0.70710677, %v1487_v27  ;;  %v5472_v42 = vmul.f32 0.70710677, %v1488_v16  ;;  %v1441_v22 = vmul.f32 %v5437_v17, %v1353_v55  ;;  %v1442_v34 = vmul.f32 %v5440_v43, %v1354_v58 }
 0x1f0   : > { %v1439_v14 = vmul.f32 %v5437_v17, %v1351_v25  ;;  %v1440_v1 = vmul.f32 %v5440_v43, %v1352_v62  ;;  %v1124_v55 = vmax.f32 %v1086_v11, 0.0  ;;  %v5499_v11 = vmul.f32 %v5485_v31, %v5485_v31 }
 0x1f1   : > { %v1715_v12 = vand.u32 2147483647, %v5470_v50  ;;  %v1716_v7 = vand.u32 2147483647, %v5472_v42  ;;  %v1529_v46 = vadd.f32 %v5445_v10, %v1441_v22  ;;  %v1530_v13 = vadd.f32 %v5448_v19, %v1442_v34 }
 0x1f2   : > { %v1143_v22 = vmax.f32 %v1105_v63, 0.0  ;;  %v1527_v30 = vadd.f32 %v5445_v10, %v1439_v14  ;;  %v1528_v5 = vadd.f32 %v5448_v19, %v1440_v1  ;;  %v5502_v32 = vadd.f32 1e-05, %v1124_v55 }
 0x1f3   : > { %v1791_v53 = vmul.f32 0.3275911, %v1715_v12  ;;  %v1792_v33 = vmul.f32 0.3275911, %v1716_v7  ;;  %v5488_v58 = vmul.f32 0.70710677, %v1529_v46  ;;  %v2779_v24 = vmul.f32 %v1715_v12, %v1715_v12 }
 0x1f4   : > { %v5490_v25 = vmul.f32 0.70710677, %v1530_v13  ;;  %v2780_v36 = vmul.f32 %v1716_v7, %v1716_v7  ;;  %v5504_v54 = vmul.f32 0.00390625, %v964_v29  ;;  %v5506_v14 = vadd.f32 1e-05, %v1143_v22  ;;  %v4209_v7 = vpop.eup %4208 }
 0x1f5   : > { %v1867_v34 = vadd.f32 1.0, %v1791_v53  ;;  %v1868_v44 = vadd.f32 1.0, %v1792_v33  ;;  %v1757_v23 = vand.u32 2147483647, %v5488_v58  ;;  %v5508_v53 = vmul.f32 0.5, %v1487_v27 }
 0x1f6   : > { %v1758_v62 = vand.u32 2147483647, %v5490_v25  ;;  %v2855_v33 = vsub.f32 0.0, %v2779_v24  ;;  %v5510_v41 = vmul.f32 0.70710677, %v1527_v30  ;;  %v2856_v35 = vsub.f32 0.0, %v2780_v36 }
 0x1f7   : > { %4212 = vrcp.f32 %v1867_v34  ;;  %v1833_v63 = vmul.f32 0.3275911, %v1757_v23  ;;  %v2821_v3 = vmul.f32 %v1757_v23, %v1757_v23  ;;  %v5512_v55 = vmul.f32 0.5, %v1488_v16 }
 0x1f8   : > { %4214 = vrcp.f32 %v1868_v44  ;;  %v1834_v12 = vmul.f32 0.3275911, %v1758_v62  ;;  %v2822_v1 = vmul.f32 %v1758_v62, %v1758_v62  ;;  %v5514_v29 = vmul.f32 0.5, %v1529_v46  ;;  %v4211_v23 = vpop.eup %4210 }
 0x1f9   : > { %v1909_v34 = vadd.f32 1.0, %v1833_v63  ;;  %v5516_v44 = vmul.f32 0.70710677, %v1528_v5  ;;  %v1755_v22 = vand.u32 2147483647, %v5510_v41  ;;  %v5519_v0 = vmul.f32 0.5, %v1530_v13 }
 0x1fa   : > { %v1910_v18 = vadd.f32 1.0, %v1834_v12  ;;  %v1313_v27 = vmul.f32 %v4209_v7, %v1161_v49  ;;  %v1314_v24 = vmul.f32 %v4209_v7, %v1162_v48  ;;  %v2897_v21 = vsub.f32 0.0, %v2821_v3 }
 0x1fb   : > { %4216 = vrcp.f32 %v1909_v34  ;;  %v1756_v36 = vand.u32 2147483647, %v5516_v44  ;;  %v1831_v63 = vmul.f32 0.3275911, %v1755_v22  ;;  %v2931_v62 = vmul.f32 1.442695, %v2855_v33 }
 0x1fc   : > { %4218 = vrcp.f32 %v1910_v18  ;;  %v2933_v16 = vmul.f32 1.442695, %v2856_v35  ;;  %v2898_v12 = vsub.f32 0.0, %v2822_v1  ;;  %v1401_v46 = vmul.f32 %v5437_v17, %v1313_v27 }
 0x1fd   : > { %v1832_v20 = vmul.f32 0.3275911, %v1756_v36  ;;  %v1907_v9 = vadd.f32 1.0, %v1831_v63  ;;  %v2819_v8 = vmul.f32 %v1755_v22, %v1755_v22  ;;  %v2820_v47 = vmul.f32 %v1756_v36, %v1756_v36 }
 0x1fe   : > { %v5523_v13 = vmul.f32 0.5, %v1527_v30  ;;  %v1402_v49 = vmul.f32 %v5440_v43, %v1314_v24  ;;  %v5527_v48 = vadd.f32 %v5445_v10, %v1401_v46  ;;  %v7711_v18 = vsub.f32 %v4997_v51, %v5422_v6 }
 0x1ff   : > { %v3015_v7 = vmul.f32 1.442695, %v2897_v21  ;;  %v1908_v35 = vadd.f32 1.0, %v1832_v20  ;;  %4220 = vrcp.f32 %v1907_v9  ;;  %v7712_v33 = vsub.f32 %v5000_v52, %v5422_v6 }
 0x200   : > { %v1315_v3 = vmul.f32 %v4211_v23, %v7711_v18  ;;  %4222 = vpow2.f32 %v2931_v62  ;;  %v3017_v1 = vmul.f32 1.442695, %v2898_v12  ;;  %v5536_v30 = vadd.f32 %v5448_v19, %v1402_v49 }
 0x201   : > { %v1316_v34 = vmul.f32 %v4211_v23, %v7712_v33  ;;  %v5539_v22 = vmul.f32 0.70710677, %v5527_v48  ;;  %4224 = vrcp.f32 %v1908_v35  ;;  %v2895_v27 = vsub.f32 0.0, %v2819_v8 }
 0x202   : > { %v2896_v24 = vsub.f32 0.0, %v2820_v47  ;;  %v1403_v51 = vmul.f32 %v5437_v17, %v1315_v3  ;;  %4226 = vpow2.f32 %v2933_v16  ;;  %v5544_v9 = vmul.f32 0.5, %v1528_v5 }
 0x203   : > { %v5547_v52 = vmul.f32 0.70710677, %v5536_v30  ;;  %v1717_v20 = vand.u32 2147483647, %v5539_v22  ;;  %4228 = vpow2.f32 %v3015_v7  ;;  %v1404_v8 = vmul.f32 %v5440_v43, %v1316_v34 }
 0x204   : > { %v5542_v21 = vpop.eup %4212  ;;  %v5555_v47 = vadd.f32 %v5445_v10, %v1403_v51  ;;  %4230 = vpow2.f32 %v3017_v1  ;;  %v3011_v12 = vmul.f32 1.442695, %v2895_v27  ;;  %v3013_v46 = vmul.f32 1.442695, %v2896_v24 }
 0x205   : > { %v5550_v6 = vpop.eup %4214  ;;  %v2095_v23 = vmul.f32 1.0614054, %v5542_v21  ;;  %v1718_v5 = vand.u32 2147483647, %v5547_v52  ;;  %v1793_v63 = vmul.f32 0.3275911, %v1717_v20  ;;  %v2781_v62 = vmul.f32 %v1717_v20, %v1717_v20 }
 0x206   : > { %v2096_v36 = vmul.f32 1.0614054, %v5550_v6  ;;  %v5563_v51 = vadd.f32 %v5448_v19, %v1404_v8  ;;  %v5566_v45 = vmul.f32 0.70710677, %v5555_v47  ;;  %vm3235_vm0 = vcmp.lt.f32.partialorder %v5470_v50, 0.0 }
 0x207   : > { %v2171_v16 = vadd.f32 -1.4531521, %v2095_v23  ;;  %v1794_v18 = vmul.f32 0.3275911, %v1718_v5  ;;  %v1869_v3 = vadd.f32 1.0, %v1793_v63  ;;  %v2782_v35 = vmul.f32 %v1718_v5, %v1718_v5 }
 0x208   : > { %v2172_v49 = vadd.f32 -1.4531521, %v2096_v36  ;;  %v5559_v7 = vpop.eup %4216  ;;  %v2857_v34 = vsub.f32 0.0, %v2781_v62  ;;  %7713 = vst [vmem:[#allocation76_spill] sm:$0xff] %v5563_v51  ;;  %v5575_v40 = vmul.f32 0.70710677, %v5563_v51 }
 0x209   : > { %v2247_v33 = vmul.f32 %v5542_v21, %v2171_v16  ;;  %v5568_v20 = vpop.eup %4218  ;;  %v2137_v27 = vmul.f32 1.0614054, %v5559_v7  ;;  %v1870_v24 = vadd.f32 1.0, %v1794_v18  ;;  %4232 = vrcp.f32 %v1869_v3 }
 0x20a   : > { %v2248_v1 = vmul.f32 %v5550_v6, %v2172_v49  ;;  %v2138_v36 = vmul.f32 1.0614054, %v5568_v20  ;;  %4234 = vpow2.f32 %v3011_v12  ;;  %v2858_v5 = vsub.f32 0.0, %v2782_v35 }
 0x20b   : > { %v2323_v23 = vadd.f32 1.4214138, %v2247_v33  ;;  %v2213_v62 = vadd.f32 -1.4531521, %v2137_v27  ;;  %4236 = vrcp.f32 %v1870_v24  ;;  %v2935_v8 = vmul.f32 1.442695, %v2857_v34 }
 0x20c   : > { %v2324_v63 = vadd.f32 1.4214138, %v2248_v1  ;;  %v2214_v38 = vadd.f32 -1.4531521, %v2138_v36  ;;  %v2937_v37 = vmul.f32 1.442695, %v2858_v5  ;;  %v5577_v49 = vpop.eup %4220  ;;  %4238 = vpow2.f32 %v3013_v46 }
 0x20d   : > { %v2399_v16 = vmul.f32 %v5542_v21, %v2323_v23  ;;  %v2289_v3 = vmul.f32 %v5559_v7, %v2213_v62  ;;  %v1719_v12 = vand.u32 2147483647, %v5566_v45  ;;  %v4223_v35 = vpop.eup %4222  ;;  %v2135_v1 = vmul.f32 1.0614054, %v5577_v49 }
 0x20e   : > { %v2400_v18 = vmul.f32 %v5550_v6, %v2324_v63  ;;  %v2290_v34 = vmul.f32 %v5568_v20, %v2214_v38  ;;  %4240 = vpow2.f32 %v2935_v8  ;;  %v5584_v27 = vpop.eup %4224  ;;  %v5587_v36 = vand.u32 2147483647, %v5575_v40 }
 0x20f   : > { %v2475_v33 = vadd.f32 -0.28449672, %v2399_v16  ;;  %v2365_v23 = vadd.f32 1.4214138, %v2289_v3  ;;  %4242 = vpow2.f32 %v2937_v37  ;;  %v4227_v5 = vpop.eup %4226  ;;  %v2136_v62 = vmul.f32 1.0614054, %v5584_v27 }
 0x210   : > { %v2476_v24 = vadd.f32 -0.28449672, %v2400_v18  ;;  %v2366_v63 = vadd.f32 1.4214138, %v2290_v34  ;;  %v2211_v16 = vadd.f32 -1.4531521, %v2135_v1  ;;  %v4229_v39 = vpop.eup %4228 }
 0x211   : > { %v2551_v46 = vmul.f32 %v5542_v21, %v2475_v33  ;;  %v2441_v8 = vmul.f32 %v5559_v7, %v2365_v23  ;;  %v1795_v28 = vmul.f32 0.3275911, %v1719_v12  ;;  %v1796_v18 = vmul.f32 0.3275911, %v5587_v36  ;;  %v4231_v4 = vpop.eup %4230 }
 0x212   : > { %v2552_v38 = vmul.f32 %v5550_v6, %v2476_v24  ;;  %v2442_v37 = vmul.f32 %v5568_v20, %v2366_v63  ;;  %v2212_v26 = vadd.f32 -1.4531521, %v2136_v62  ;;  %v2287_v51 = vmul.f32 %v5577_v49, %v2211_v16 }
 0x213   : > { %v2627_v3 = vadd.f32 0.2548296, %v2551_v46  ;;  %v2517_v34 = vadd.f32 -0.28449672, %v2441_v8  ;;  %v1871_v1 = vadd.f32 1.0, %v1795_v28  ;;  %v1872_v19 = vadd.f32 1.0, %v1796_v18 }
 0x214   : > { %v2628_v33 = vadd.f32 0.2548296, %v2552_v38  ;;  %vm3236_vm1 = vcmp.lt.f32.partialorder %v5472_v42, 0.0  ;;  %v2518_v23 = vadd.f32 -0.28449672, %v2442_v37  ;;  %v2288_v10 = vmul.f32 %v5584_v27, %v2212_v26 }
 0x215   : > { %v2703_v24 = vmul.f32 %v5542_v21, %v2627_v3  ;;  %v2363_v46 = vadd.f32 1.4214138, %v2287_v51  ;;  %v2593_v62 = vmul.f32 %v5559_v7, %v2517_v34  ;;  %4244 = vrcp.f32 %v1871_v1 }
 0x216   : > { %v2704_v63 = vmul.f32 %v5550_v6, %v2628_v33  ;;  %v5602_v16 = vmul.f32 %v1719_v12, %v1719_v12  ;;  %v5604_v38 = vpop.eup %4232  ;;  %v2594_v28 = vmul.f32 %v5568_v20, %v2518_v23  ;;  %v2364_v18 = vadd.f32 1.4214138, %v2288_v10 }
 0x217   : > { %v3083_v8 = vmul.f32 %v4223_v35, %v2703_v24  ;;  %v2439_v21 = vmul.f32 %v5577_v49, %v2363_v46  ;;  %v4235_v3 = vpop.eup %4234  ;;  %v2669_v43 = vadd.f32 0.2548296, %v2593_v62  ;;  %v2097_v26 = vmul.f32 1.0614054, %v5604_v38 }
 0x218   : > { %v3084_v37 = vmul.f32 %v4227_v5, %v2704_v63  ;;  %4246 = vrcp.f32 %v1872_v19  ;;  %v5609_v6 = vpop.eup %4236  ;;  %v2670_v33 = vadd.f32 0.2548296, %v2594_v28  ;;  %vm3277_vm2 = vcmp.lt.f32.partialorder %v5488_v58, 0.0 }
 0x219   : > { %v3159_v51 = vsub.f32 1.0, %v3083_v8  ;;  %v2440_v12 = vmul.f32 %v5584_v27, %v2364_v18  ;;  %v2515_v35 = vadd.f32 -0.28449672, %v2439_v21  ;;  %v2745_v10 = vmul.f32 %v5559_v7, %v2669_v43  ;;  %v4239_v24 = vpop.eup %4238 }
 0x21a   : > { %v3160_v34 = vsub.f32 1.0, %v3084_v37  ;;  %vm3278_vm3 = vcmp.lt.f32.partialorder %v5490_v25, 0.0  ;;  %v2098_v5 = vmul.f32 1.0614054, %v5609_v6  ;;  %v2173_v1 = vadd.f32 -1.4531521, %v2097_v26 }
 0x21b   : > { %v3311_v23 = vsub.f32 0.0, %v3159_v51  ;;  %v2746_v19 = vmul.f32 %v5568_v20, %v2670_v33  ;;  %v2516_v46 = vadd.f32 -0.28449672, %v2440_v12  ;;  %v2591_v63 = vmul.f32 %v5577_v49, %v2515_v35  ;;  %v5618_v62 = vpop.eup %4240 }
 0x21c   : > { %v3312_v8 = vsub.f32 0.0, %v3160_v34  ;;  %v3125_v28 = vmul.f32 %v4229_v39, %v2745_v10  ;;  %v2174_v18 = vadd.f32 -1.4531521, %v2098_v5  ;;  %v2249_v21 = vmul.f32 %v5604_v38, %v2173_v1  ;;  %v5621_v43 = vpop.eup %4242 }
 0x21d   : > { %v3387_v7 = vsel %vm3235_vm0, %v3311_v23, %v3159_v51  ;;  %v3126_v37 = vmul.f32 %v4231_v4, %v2746_v19  ;;  %v2592_v26 = vmul.f32 %v5584_v27, %v2516_v46  ;;  %v2667_v17 = vadd.f32 0.2548296, %v2591_v63 }
 0x21e   : > { %v3388_v20 = vsel %vm3236_vm1, %v3312_v8, %v3160_v34  ;;  %v3463_v33 = vadd.f32 1.0, %v3387_v7  ;;  %v3201_v12 = vsub.f32 1.0, %v3125_v28  ;;  %v2250_v35 = vmul.f32 %v5609_v6, %v2174_v18 }
 0x21f   : > { %v3464_v39 = vadd.f32 1.0, %v3388_v20  ;;  %v3202_v10 = vsub.f32 1.0, %v3126_v37  ;;  %v2668_v5 = vadd.f32 0.2548296, %v2592_v26  ;;  %v2743_v1 = vmul.f32 %v5577_v49, %v2667_v17 }
 0x220   : > { %vm3275_vm4 = vcmp.lt.f32.partialorder %v5510_v41, 0.0  ;;  %v3539_v50 = vmul.f32 %v3463_v33, %v5508_v53  ;;  %v3353_v4 = vsub.f32 0.0, %v3201_v12  ;;  %vm3276_vm5 = vcmp.lt.f32.partialorder %v5516_v44, 0.0 }
 0x221   : > { %v2325_v51 = vadd.f32 1.4214138, %v2249_v21  ;;  %v2326_v23 = vadd.f32 1.4214138, %v2250_v35  ;;  %v3540_v42 = vmul.f32 %v3464_v39, %v5512_v55  ;;  %v3354_v34 = vsub.f32 0.0, %v3202_v10 }
 0x222   : > { %v2744_v19 = vmul.f32 %v5584_v27, %v2668_v5  ;;  %v3123_v46 = vmul.f32 %v4235_v3, %v2743_v1  ;;  %v3429_v63 = vsel %vm3277_vm2, %v3353_v4, %v3201_v12  ;;  %v2784_v53 = vmul.f32 %v5587_v36, %v5587_v36  ;;  %v5641_v8 = vpop.eup %4244 }
 0x223   : > { %v2401_v17 = vmul.f32 %v5604_v38, %v2325_v51  ;;  %v2402_v49 = vmul.f32 %v5609_v6, %v2326_v23  ;;  %v4061_v28 = vpack.c.bf16 %v3540_v42, %v3539_v50  ;;  %v3430_v55 = vsel %vm3278_vm3, %v3354_v34, %v3202_v10 }
 0x224   : > { %v3505_v18 = vadd.f32 1.0, %v3429_v63  ;;  %v3124_v27 = vmul.f32 %v4239_v24, %v2744_v19  ;;  %v3506_v21 = vadd.f32 1.0, %v3430_v55  ;;  %v3199_v3 = vsub.f32 1.0, %v3123_v46  ;;  %v681_v19 = vpop.xlane.xlu1 %680 }
 0x225   : > { %v2477_v7 = vadd.f32 -0.28449672, %v2401_v17  ;;  %v2478_v58 = vadd.f32 -0.28449672, %v2402_v49  ;;  %v5645_v37 = vpop.eup %4246  ;;  %3843 = vst [vmem:[%s5649_s9] sm:$0xff] %v4061_v28  ;;  %v2099_v20 = vmul.f32 1.0614054, %v5641_v8 }
 0x226   : > { %v3581_v36 = vmul.f32 %v3505_v18, %v5514_v29  ;;  %v3200_v26 = vsub.f32 1.0, %v3124_v27  ;;  %v2859_v25 = vsub.f32 0.0, %v5602_v16  ;;  %v3582_v24 = vmul.f32 %v3506_v21, %v5519_v0  ;;  %v678_v16 = vpop.xlane.xlu0 %677 }
 0x227   : > { %v3351_v33 = vsub.f32 0.0, %v3199_v3  ;;  %v2553_v12 = vmul.f32 %v5604_v38, %v2477_v7  ;;  %v2554_v35 = vmul.f32 %v5609_v6, %v2478_v58  ;;  %v2100_v10 = vmul.f32 1.0614054, %v5645_v37 }
 0x228   : > { %v3352_v39 = vsub.f32 0.0, %v3200_v26  ;;  %v2175_v5 = vadd.f32 -1.4531521, %v2099_v20  ;;  %v2860_v1 = vsub.f32 0.0, %v2784_v53  ;;  %v4082_v50 = vpack.c.bf16 %v3582_v24, %v3581_v36 }
 0x229   : > { %v3427_v29 = vsel %vm3275_vm4, %v3351_v33, %v3199_v3  ;;  %v2629_v4 = vadd.f32 0.2548296, %v2553_v12  ;;  %v2630_v51 = vadd.f32 0.2548296, %v2554_v35  ;;  %v2176_v42 = vadd.f32 -1.4531521, %v2100_v10 }
 0x22a   : > { %v3428_v0 = vsel %vm3276_vm5, %v3352_v39, %v3200_v26  ;;  %v3503_v23 = vadd.f32 1.0, %v3427_v29  ;;  %v2251_v34 = vmul.f32 %v5641_v8, %v2175_v5  ;;  %3864 = vst [vmem:[%s5649_s9 + $0xa8] sm:$0xff] %v4082_v50  ;;  %v2939_v49 = vmul.f32 1.442695, %v2859_v25  ;;  %v5676_v58 = vpop.xlane.xlu0 %737 }
 0x22b   : > { %v3504_v46 = vadd.f32 1.0, %v3428_v0  ;;  %v2705_v63 = vmul.f32 %v5604_v38, %v2629_v4  ;;  %v2706_v17 = vmul.f32 %v5609_v6, %v2630_v51  ;;  %v2252_v53 = vmul.f32 %v5645_v37, %v2176_v42 }
 0x22c   : > { %v3579_v41 = vmul.f32 %v3503_v23, %v5523_v13  ;;  %v2327_v28 = vadd.f32 1.4214138, %v2251_v34  ;;  %v2941_v55 = vmul.f32 1.442695, %v2860_v1  ;;  %4248 = vpow2.f32 %v2939_v49 }
 0x22d   : > { %v3580_v44 = vmul.f32 %v3504_v46, %v5544_v9  ;;  %v3085_v18 = vmul.f32 %v5618_v62, %v2705_v63  ;;  %v3086_v27 = vmul.f32 %v5621_v43, %v2706_v17  ;;  %v2328_v21 = vadd.f32 1.4214138, %v2252_v53  ;;  %v5680_v43 = vpop.xlane.xlu1 %740 }
 0x22e   : > { %v2403_v38 = vmul.f32 %v5641_v8, %v2327_v28  ;;  %4250 = vpow2.f32 %v2941_v55  ;;  %v1106_v6 = vsub.f32 %v5504_v54, %v5499_v11  ;;  %vm3237_vm6 = vcmp.lt.f32.partialorder %v5539_v22, 0.0  ;;  %v907_v5 = vpop.xlane.xlu0 %906 }
 0x22f   : > { %v4081_v13 = vpack.c.bf16 %v3580_v44, %v3579_v41  ;;  %v3161_v3 = vsub.f32 1.0, %v3085_v18  ;;  %v3162_v7 = vsub.f32 1.0, %v3086_v27  ;;  %4252 = vrsqrt.f32 %v5502_v32 }
 0x230   : > { %v2404_v9 = vmul.f32 %v5645_v37, %v2328_v21  ;;  %v2479_v62 = vadd.f32 -0.28449672, %v2403_v38  ;;  %4254 = vrsqrt.f32 %v5506_v14  ;;  %v5684_v11 = vmul.f32 0.00390625, %v678_v16 }
 0x231   : > { %3863 = vst [vmem:[%s5649_s9 + $0xa0] sm:$0xff] %v4081_v13  ;;  %v3313_v36 = vsub.f32 0.0, %v3161_v3  ;;  %v3314_v26 = vsub.f32 0.0, %v3162_v7  ;;  %vm3238_vm7 = vcmp.lt.f32.partialorder %v5547_v52, 0.0  ;;  %v1144_v20 = vmax.f32 %v1106_v6, 0.0  ;;  %v910_v4 = vpop.xlane.xlu1 %909  ;;  %v7714_v13 = vld [vmem:[#allocation72_spill] sm:$0xff] }
 0x232   : > { %v2480_v54 = vadd.f32 -0.28449672, %v2404_v9  ;;  %v2555_v32 = vmul.f32 %v5641_v8, %v2479_v62  ;;  %v1565_v25 = vmul.f32 0.5, %v5527_v48  ;;  %v1566_v24 = vmul.f32 0.5, %v5536_v30 }
 0x233   : > { %v3389_v14 = vsel %vm3237_vm6, %v3313_v36, %v3161_v3  ;;  %v3390_v33 = vsel %vm3238_vm7, %v3314_v26, %v3162_v7  ;;  %v5691_v10 = vmul.f32 0.00390625, %v681_v19  ;;  %v1258_v29 = vadd.f32 1e-05, %v1144_v20  ;;  %v7715_v7 = vld [vmem:[#allocation73_spill] sm:$0xff]  ;;  %v7717_v20 = vld [vmem:[#allocation75_spill] sm:$0xff] }
 0x234   : > { %v3465_v12 = vadd.f32 1.0, %v3389_v14  ;;  %v3466_v35 = vadd.f32 1.0, %v3390_v33  ;;  %v2556_v22 = vmul.f32 %v5645_v37, %v2480_v54  ;;  %v2631_v39 = vadd.f32 0.2548296, %v2555_v32  ;;  %v7716_v54 = vld [vmem:[#allocation74_spill] sm:$0xff] }
 0x235   : > { %v1049_v16 = vmul.f32 %v5684_v11, %v5684_v11  ;;  %v1011_v0 = vmul.f32 0.00390625, %v907_v5  ;;  %v1165_v23 = vsub.f32 %v5008_v59, %v5442_v56  ;;  %v1050_v42 = vmul.f32 %v5691_v10, %v5691_v10 }
 0x236   : > { %v3541_v52 = vmul.f32 %v3465_v12, %v1565_v25  ;;  %v3542_v1 = vmul.f32 %v3466_v35, %v1566_v24  ;;  %v2632_v50 = vadd.f32 0.2548296, %v2556_v22  ;;  %v2707_v48 = vmul.f32 %v5641_v8, %v2631_v39  ;;  %v7718_v35 = vld [vmem:[#allocation11_spill] sm:$0xff] }
 0x237   : > { %v1012_v34 = vmul.f32 0.00390625, %v910_v4  ;;  %v1166_v46 = vsub.f32 %v5011_v60, %v5442_v56  ;;  %v1203_v8 = vsub.f32 %v5003_v57, %v5456_v15  ;;  %4256 = vrsqrt.f32 %v1258_v29  ;;  %v7720_v4 = vld [vmem:[#allocation12_spill] sm:$0xff] }
 0x238   : > { %v4062_v51 = vpack.c.bf16 %v3542_v1, %v3541_v52  ;;  %v2708_v30 = vmul.f32 %v5645_v37, %v2632_v50  ;;  %v1087_v37 = vsub.f32 %v1011_v0, %v1049_v16  ;;  %v1204_v17 = vsub.f32 %v5014_v61, %v5456_v15  ;;  %v967_v1 = vpop.xlane.xlu0 %966 }
 0x239   : > { %v4249_v19 = vpop.eup %4248  ;;  %v1205_v59 = vsub.f32 %v5019_v2, %v5485_v31  ;;  %v1088_v41 = vsub.f32 %v1012_v34, %v1050_v42  ;;  %v1567_v28 = vmul.f32 0.5, %v5555_v47  ;;  %vm3239_vm8 = vcmp.lt.f32.partialorder %v5566_v45, 0.0  ;;  %v7719_v45 = vld [vmem:[#allocation76_spill] sm:$0xff] }
 0x23a   : > { %3844 = vst [vmem:[%s5649_s9 + $0x8] sm:$0xff] %v4062_v51  ;;  %v3087_v49 = vmul.f32 %v4249_v19, %v2707_v48  ;;  %v1125_v60 = vmax.f32 %v1087_v37, 0.0  ;;  %vm3240_vm9 = vcmp.lt.f32.partialorder %v5575_v40, 0.0  ;;  %v1206_v22 = vsub.f32 %v7718_v35, %v5485_v31  ;;  %v7721_v51 = vld [vmem:[#allocation13_spill] sm:$0xff] }
 0x23b   : > { %v4251_v63 = vpop.eup %4250  ;;  %v1126_v27 = vmax.f32 %v1088_v41, 0.0  ;;  %v1568_v39 = vmul.f32 0.5, %v7719_v45  ;;  %v1167_v48 = vsub.f32 %v7720_v4, %v5684_v11  ;;  %v5749_v42 = vmul.f32 0.00390625, %v5676_v58 }
 0x23c   : > { %v4253_v53 = vpop.eup %4252  ;;  %v3088_v55 = vmul.f32 %v4251_v63, %v2708_v30  ;;  %v3163_v57 = vsub.f32 1.0, %v3087_v49  ;;  %v1239_v15 = vadd.f32 1e-05, %v1125_v60  ;;  %v1168_v30 = vsub.f32 %v7721_v51, %v5684_v11  ;;  %v970_v60 = vpop.xlane.xlu1 %969 }
 0x23d   : > { %v4255_v56 = vpop.eup %4254  ;;  %v1317_v44 = vmul.f32 %v4253_v53, %v1165_v23  ;;  %v1318_v18 = vmul.f32 %v4253_v53, %v1166_v46  ;;  %v1240_v40 = vadd.f32 1e-05, %v1126_v27  ;;  %v5756_v46 = vmul.f32 0.00390625, %v5680_v43  ;;  %v684_v27 = vpop.xlane.xlu0 %683 }
 0x23e   : > { %v3164_v21 = vsub.f32 1.0, %v3088_v55  ;;  %v1355_v38 = vmul.f32 %v4255_v56, %v1203_v8  ;;  %v1356_v61 = vmul.f32 %v4255_v56, %v1204_v17  ;;  %v3315_v6 = vsub.f32 0.0, %v3163_v57  ;;  %v7722_v17 = vld [vmem:[#allocation16_spill] sm:$0xff] }
 0x23f   : > { %v1405_v3 = vmul.f32 %v7714_v13, %v1317_v44  ;;  %v1406_v47 = vmul.f32 %v7715_v7, %v1318_v18  ;;  %4258 = vrsqrt.f32 %v1239_v15  ;;  %v1169_v49 = vsub.f32 %v7722_v17, %v5691_v10  ;;  %v7724_v44 = vld [vmem:[#allocation14_spill] sm:$0xff] }
 0x240   : > { %v3316_v9 = vsub.f32 0.0, %v3164_v21  ;;  %v1443_v62 = vmul.f32 %v7714_v13, %v1355_v38  ;;  %v1444_v36 = vmul.f32 %v7715_v7, %v1356_v61  ;;  %v3391_v26 = vsel %vm3239_vm8, %v3315_v6, %v3163_v57 }
 0x241   : > { %v5720_v32 = vadd.f32 %v7716_v54, %v1405_v3  ;;  %v5723_v25 = vadd.f32 %v7717_v20, %v1406_v47  ;;  %v3467_v14 = vadd.f32 1.0, %v3391_v26  ;;  %4260 = vrsqrt.f32 %v1240_v40  ;;  %v744_v4 = vpop.xlane.xlu0 %743 }
 0x242   : > { %v3392_v24 = vsel %vm3240_vm9, %v3316_v9, %v3164_v21  ;;  %v5726_v33 = vadd.f32 %v7716_v54, %v1443_v62  ;;  %v5729_v12 = vadd.f32 %v7717_v20, %v1444_v36  ;;  %v5772_v47 = vmul.f32 %v5749_v42, %v5749_v42 }
 0x243   : > { %v3468_v5 = vadd.f32 1.0, %v3392_v24  ;;  %v5735_v52 = vmul.f32 0.70710677, %v5720_v32  ;;  %v3543_v50 = vmul.f32 %v3467_v14, %v1567_v28  ;;  %v5738_v29 = vmul.f32 0.70710677, %v5723_v25  ;;  %v7723_v28 = vld [vmem:[#allocation17_spill] sm:$0xff] }
 0x244   : > { %v5746_v23 = vmul.f32 0.70710677, %v5726_v33  ;;  %v5753_v19 = vmul.f32 0.70710677, %v5729_v12  ;;  %v4257_v11 = vpop.eup %4256  ;;  %v1170_v55 = vsub.f32 %v7723_v28, %v5691_v10  ;;  %v5774_v36 = vmul.f32 0.00390625, %v967_v1 }
 0x245   : > { %v3544_v16 = vmul.f32 %v3468_v5, %v1568_v39  ;;  %v1721_v0 = vand.u32 2147483647, %v5735_v52  ;;  %v1722_v34 = vand.u32 2147483647, %v5738_v29  ;;  %v1357_v15 = vmul.f32 %v4257_v11, %v1205_v59  ;;  %v687_v39 = vpop.xlane.xlu1 %686 }
 0x246   : > { %v1759_v63 = vand.u32 2147483647, %v5746_v23  ;;  %v1760_v53 = vand.u32 2147483647, %v5753_v19  ;;  %v1358_v24 = vmul.f32 %v4257_v11, %v1206_v22  ;;  %v5778_v14 = vmul.f32 %v5756_v46, %v5756_v46 }
 0x247   : > { %v4063_v8 = vpack.c.bf16 %v3544_v16, %v3543_v50  ;;  %v1797_v37 = vmul.f32 0.3275911, %v1721_v0  ;;  %v1798_v41 = vmul.f32 0.3275911, %v1722_v34  ;;  %v2785_v58 = vmul.f32 %v1721_v0, %v1721_v0 }
 0x248   : > { %v2786_v56 = vmul.f32 %v1722_v34, %v1722_v34  ;;  %v1835_v57 = vmul.f32 0.3275911, %v1759_v63  ;;  %v1836_v38 = vmul.f32 0.3275911, %v1760_v53  ;;  %v2823_v61 = vmul.f32 %v1759_v63, %v1759_v63 }
 0x249   : > { %3845 = vst [vmem:[%s5649_s9 + $0x10] sm:$0xff] %v4063_v8  ;;  %v1873_v43 = vadd.f32 1.0, %v1797_v37  ;;  %v1874_v21 = vadd.f32 1.0, %v1798_v41  ;;  %v2824_v3 = vmul.f32 %v1760_v53, %v1760_v53  ;;  %v2861_v9 = vsub.f32 0.0, %v2785_v58 }
 0x24a   : > { %v1911_v6 = vadd.f32 1.0, %v1835_v57  ;;  %v1912_v62 = vadd.f32 1.0, %v1836_v38  ;;  %v2862_v40 = vsub.f32 0.0, %v2786_v56  ;;  %v5780_v2 = vmul.f32 0.00390625, %v970_v60 }
 0x24b   : > { %4262 = vrcp.f32 %v1873_v43  ;;  %v2899_v31 = vsub.f32 0.0, %v2823_v61  ;;  %v1445_v59 = vmul.f32 %v7714_v13, %v1357_v15  ;;  %v5783_v45 = vmul.f32 0.00390625, %v684_v27 }
 0x24c   : > { %4264 = vrcp.f32 %v1874_v21  ;;  %v4259_v26 = vpop.eup %4258  ;;  %v2900_v5 = vsub.f32 0.0, %v2824_v3  ;;  %v1446_v1 = vmul.f32 %v7715_v7, %v1358_v24  ;;  %v2943_v22 = vmul.f32 1.442695, %v2861_v9 }
 0x24d   : > { %v1319_v35 = vmul.f32 %v4259_v26, %v1167_v48  ;;  %4266 = vrcp.f32 %v1911_v6  ;;  %v1320_v50 = vmul.f32 %v4259_v26, %v1168_v30  ;;  %v5787_v51 = vadd.f32 %v7716_v54, %v1445_v59 }
 0x24e   : > { %4268 = vrcp.f32 %v1912_v62  ;;  %v2945_v0 = vmul.f32 1.442695, %v2862_v40  ;;  %v5791_v34 = vadd.f32 %v7717_v20, %v1446_v1  ;;  %v5794_v11 = vmul.f32 0.00390625, %v687_v39  ;;  %v4261_v41 = vpop.eup %4260 }
 0x24f   : > { %v1407_v16 = vmul.f32 %v7714_v13, %v1319_v35  ;;  %v1408_v48 = vmul.f32 %v7715_v7, %v1320_v50  ;;  %v3019_v8 = vmul.f32 1.442695, %v2899_v31  ;;  %v5797_v37 = vmul.f32 0.70710677, %v5787_v51 }
 0x250   : > { %v5802_v63 = vmul.f32 0.00390625, %v744_v4  ;;  %v5805_v58 = vmul.f32 0.5, %v5720_v32  ;;  %v3021_v53 = vmul.f32 1.442695, %v2900_v5  ;;  %v5808_v60 = vmul.f32 0.70710677, %v5791_v34 }
 0x251   : > { %v5800_v30 = vadd.f32 %v7716_v54, %v1407_v16  ;;  %v5811_v43 = vadd.f32 %v7717_v20, %v1408_v48  ;;  %v5814_v56 = vmul.f32 0.5, %v5723_v25  ;;  %4270 = vpow2.f32 %v2943_v22 }
 0x252   : > { %v1761_v57 = vand.u32 2147483647, %v5797_v37  ;;  %4272 = vpow2.f32 %v2945_v0  ;;  %v5821_v32 = vmul.f32 0.5, %v5726_v33  ;;  %v1762_v21 = vand.u32 2147483647, %v5808_v60 }
 0x253   : > { %v5818_v27 = vmul.f32 0.70710677, %v5800_v30  ;;  %v5825_v38 = vmul.f32 0.70710677, %v5811_v43  ;;  %4274 = vpow2.f32 %v3019_v8  ;;  %v1321_v15 = vmul.f32 %v4261_v41, %v1169_v49 }
 0x254   : > { %v1837_v61 = vmul.f32 0.3275911, %v1761_v57  ;;  %4276 = vpow2.f32 %v3021_v53  ;;  %v1838_v6 = vmul.f32 0.3275911, %v1762_v21  ;;  %v1322_v33 = vmul.f32 %v4261_v41, %v1170_v55 }
 0x255   : > { %v1723_v25 = vand.u32 2147483647, %v5818_v27  ;;  %v1724_v3 = vand.u32 2147483647, %v5825_v38  ;;  %v2825_v26 = vmul.f32 %v1761_v57, %v1761_v57  ;;  %v2826_v40 = vmul.f32 %v1762_v21, %v1762_v21 }
 0x256   : > { %v1913_v62 = vadd.f32 1.0, %v1837_v61  ;;  %v1914_v17 = vadd.f32 1.0, %v1838_v6  ;;  %v5842_v5 = vmul.f32 0.5, %v5729_v12  ;;  %v1409_v1 = vmul.f32 %v7714_v13, %v1321_v15 }
 0x257   : > { %v1799_v24 = vmul.f32 0.3275911, %v1723_v25  ;;  %v1800_v49 = vmul.f32 0.3275911, %v1724_v3  ;;  %v2787_v35 = vmul.f32 %v1723_v25, %v1723_v25  ;;  %v2901_v22 = vsub.f32 0.0, %v2825_v26 }
 0x258   : > { %v5835_v9 = vpop.eup %4262  ;;  %4278 = vrcp.f32 %v1913_v62  ;;  %v2788_v16 = vmul.f32 %v1724_v3, %v1724_v3  ;;  %v1410_v0 = vmul.f32 %v7715_v7, %v1322_v33  ;;  %v2902_v41 = vsub.f32 0.0, %v2826_v40 }
 0x259   : > { %v5837_v31 = vpop.eup %4264  ;;  %v2101_v59 = vmul.f32 1.0614054, %v5835_v9  ;;  %v1875_v10 = vadd.f32 1.0, %v1799_v24  ;;  %4280 = vrcp.f32 %v1914_v17  ;;  %v1876_v55 = vadd.f32 1.0, %v1800_v49 }
 0x25a   : > { %v2102_v39 = vmul.f32 1.0614054, %v5837_v31  ;;  %v5845_v50 = vpop.eup %4266  ;;  %v2863_v53 = vsub.f32 0.0, %v2787_v35  ;;  %v2864_v61 = vsub.f32 0.0, %v2788_v16  ;;  %v5855_v6 = vadd.f32 %v7716_v54, %v1409_v1 }
 0x25b   : > { %v2177_v28 = vadd.f32 -1.4531521, %v2101_v59  ;;  %v5848_v48 = vpop.eup %4268  ;;  %v2139_v12 = vmul.f32 1.0614054, %v5845_v50  ;;  %4282 = vrcp.f32 %v1875_v10  ;;  %v5858_v62 = vmul.f32 0.5, %v5787_v51 }
 0x25c   : > { %v2178_v4 = vadd.f32 -1.4531521, %v2102_v39  ;;  %v2140_v21 = vmul.f32 1.0614054, %v5848_v48  ;;  %4284 = vrcp.f32 %v1876_v55  ;;  %v5861_v26 = vadd.f32 %v7717_v20, %v1410_v0 }
 0x25d   : > { %v2253_v8 = vmul.f32 %v5835_v9, %v2177_v28  ;;  %v2215_v15 = vadd.f32 -1.4531521, %v2139_v12  ;;  %v3023_v17 = vmul.f32 1.442695, %v2901_v22  ;;  %v3025_v49 = vmul.f32 1.442695, %v2902_v41 }
 0x25e   : > { %v2254_v57 = vmul.f32 %v5837_v31, %v2178_v4  ;;  %v2216_v33 = vadd.f32 -1.4531521, %v2140_v21  ;;  %7725 = vst [vmem:[#allocation72_spill] sm:$0xff] %v5861_v26  ;;  %v4271_v40 = vpop.eup %4270  ;;  %v2947_v28 = vmul.f32 1.442695, %v2863_v53  ;;  %vm3241_vm10 = vcmp.lt.f32.partialorder %v5735_v52, 0.0 }
 0x25f   : > { %v2329_v25 = vadd.f32 1.4214138, %v2253_v8  ;;  %v2291_v59 = vmul.f32 %v5845_v50, %v2215_v15  ;;  %v4273_v35 = vpop.eup %4272  ;;  %v2949_v55 = vmul.f32 1.442695, %v2864_v61  ;;  %v5868_v16 = vmul.f32 0.70710677, %v5855_v6 }
 0x260   : > { %v2330_v3 = vadd.f32 1.4214138, %v2254_v57  ;;  %v2292_v10 = vmul.f32 %v5848_v48, %v2216_v33  ;;  %v4275_v1 = vpop.eup %4274  ;;  %v5873_v41 = vmul.f32 0.70710677, %v5861_v26  ;;  %4286 = vpow2.f32 %v3023_v17 }
 0x261   : > { %v2405_v24 = vmul.f32 %v5835_v9, %v2329_v25  ;;  %v2367_v4 = vadd.f32 1.4214138, %v2291_v59  ;;  %7726 = vst [vmem:[#allocation73_spill] sm:$0xff] %v5868_v16  ;;  %v4277_v8 = vpop.eup %4276  ;;  %v5880_v61 = vand.u32 2147483647, %v5868_v16  ;;  %4288 = vpow2.f32 %v3025_v49 }
 0x262   : > { %v2406_v39 = vmul.f32 %v5837_v31, %v2330_v3  ;;  %v2368_v22 = vadd.f32 1.4214138, %v2292_v10  ;;  %7727 = vst [vmem:[#allocation74_spill] sm:$0xff] %v5873_v41  ;;  %v5885_v3 = vand.u32 2147483647, %v5873_v41  ;;  %4290 = vpow2.f32 %v2947_v28 }
 0x263   : > { %v2481_v51 = vadd.f32 -0.28449672, %v2405_v24  ;;  %v2443_v21 = vmul.f32 %v5845_v50, %v2367_v4  ;;  %4292 = vpow2.f32 %v2949_v55  ;;  %vm3242_vm11 = vcmp.lt.f32.partialorder %v5738_v29, 0.0 }
 0x264   : > { %v2482_v12 = vadd.f32 -0.28449672, %v2406_v39  ;;  %v2444_v15 = vmul.f32 %v5848_v48, %v2368_v22  ;;  %v1801_v39 = vmul.f32 0.3275911, %v5880_v61  ;;  %v1802_v28 = vmul.f32 0.3275911, %v5885_v3 }
 0x265   : > { %v2557_v53 = vmul.f32 %v5835_v9, %v2481_v51  ;;  %v5887_v33 = vpop.eup %4278  ;;  %v2519_v59 = vadd.f32 -0.28449672, %v2443_v21  ;;  %vm3279_vm12 = vcmp.lt.f32.partialorder %v5746_v23, 0.0  ;;  %vm3280_vm13 = vcmp.lt.f32.partialorder %v5753_v19, 0.0 }
 0x266   : > { %v2558_v25 = vmul.f32 %v5837_v31, %v2482_v12  ;;  %v5890_v10 = vpop.eup %4280  ;;  %v2520_v51 = vadd.f32 -0.28449672, %v2444_v15  ;;  %v2141_v4 = vmul.f32 1.0614054, %v5887_v33  ;;  %v5901_v18 = vadd.f32 1.0, %v1801_v39 }
 0x267   : > { %v2633_v24 = vadd.f32 0.2548296, %v2557_v53  ;;  %v2595_v12 = vmul.f32 %v5845_v50, %v2519_v59  ;;  %v2142_v22 = vmul.f32 1.0614054, %v5890_v10  ;;  %vm3281_vm14 = vcmp.lt.f32.partialorder %v5797_v37, 0.0 }
 0x268   : > { %v2634_v17 = vadd.f32 0.2548296, %v2558_v25  ;;  %v2596_v21 = vmul.f32 %v5848_v48, %v2520_v51  ;;  %v2217_v25 = vadd.f32 -1.4531521, %v2141_v4  ;;  %v5903_v15 = vpop.eup %4282  ;;  %4294 = vrcp.f32 %v5901_v18 }
 0x269   : > { %v2709_v49 = vmul.f32 %v5835_v9, %v2633_v24  ;;  %v2671_v57 = vadd.f32 0.2548296, %v2595_v12  ;;  %v2218_v9 = vadd.f32 -1.4531521, %v2142_v22  ;;  %v5905_v24 = vadd.f32 1.0, %v1802_v28  ;;  %v5907_v0 = vpop.eup %4284 }
 0x26a   : > { %v2710_v53 = vmul.f32 %v5837_v31, %v2634_v17  ;;  %v2672_v41 = vadd.f32 0.2548296, %v2596_v21  ;;  %v2293_v31 = vmul.f32 %v5887_v33, %v2217_v25  ;;  %v2103_v17 = vmul.f32 1.0614054, %v5903_v15 }
 0x26b   : > { %v3089_v55 = vmul.f32 %v4271_v40, %v2709_v49  ;;  %v2747_v39 = vmul.f32 %v5845_v50, %v2671_v57  ;;  %v2294_v40 = vmul.f32 %v5890_v10, %v2218_v9  ;;  %v2104_v4 = vmul.f32 1.0614054, %v5907_v0 }
 0x26c   : > { %v3090_v59 = vmul.f32 %v4273_v35, %v2710_v53  ;;  %v2748_v12 = vmul.f32 %v5848_v48, %v2672_v41  ;;  %v2369_v35 = vadd.f32 1.4214138, %v2293_v31  ;;  %v2179_v22 = vadd.f32 -1.4531521, %v2103_v17 }
 0x26d   : > { %v3165_v51 = vsub.f32 1.0, %v3089_v55  ;;  %v3127_v53 = vmul.f32 %v4275_v1, %v2747_v39  ;;  %v2370_v21 = vadd.f32 1.4214138, %v2294_v40  ;;  %v2180_v25 = vadd.f32 -1.4531521, %v2104_v4  ;;  %v4287_v41 = vpop.eup %4286 }
 0x26e   : > { %v3166_v49 = vsub.f32 1.0, %v3090_v59  ;;  %v3128_v26 = vmul.f32 %v4277_v8, %v2748_v12  ;;  %v2445_v55 = vmul.f32 %v5887_v33, %v2369_v35  ;;  %v2255_v50 = vmul.f32 %v5903_v15, %v2179_v22  ;;  %v4289_v8 = vpop.eup %4288 }
 0x26f   : > { %v3317_v28 = vsub.f32 0.0, %v3165_v51  ;;  %v3203_v9 = vsub.f32 1.0, %v3127_v53  ;;  %v2446_v59 = vmul.f32 %v5890_v10, %v2370_v21  ;;  %v2256_v48 = vmul.f32 %v5907_v0, %v2180_v25  ;;  %v4291_v22 = vpop.eup %4290 }
 0x270   : > { %v3318_v16 = vsub.f32 0.0, %v3166_v49  ;;  %v3204_v17 = vsub.f32 1.0, %v3128_v26  ;;  %v2521_v39 = vadd.f32 -0.28449672, %v2445_v55  ;;  %v2331_v35 = vadd.f32 1.4214138, %v2255_v50  ;;  %v4293_v21 = vpop.eup %4292 }
 0x271   : > { %v3393_v57 = vsel %vm3241_vm10, %v3317_v28, %v3165_v51  ;;  %v3355_v4 = vsub.f32 0.0, %v3203_v9  ;;  %v2522_v12 = vadd.f32 -0.28449672, %v2446_v59  ;;  %v2332_v53 = vadd.f32 1.4214138, %v2256_v48 }
 0x272   : > { %v3394_v1 = vsel %vm3242_vm11, %v3318_v16, %v3166_v49  ;;  %v3469_v31 = vadd.f32 1.0, %v3393_v57  ;;  %v3356_v51 = vsub.f32 0.0, %v3204_v17  ;;  %v2597_v28 = vmul.f32 %v5887_v33, %v2521_v39 }
 0x273   : > { %v3470_v40 = vadd.f32 1.0, %v3394_v1  ;;  %v3431_v29 = vsel %vm3279_vm12, %v3355_v4, %v3203_v9  ;;  %v2598_v26 = vmul.f32 %v5890_v10, %v2522_v12  ;;  %v2407_v16 = vmul.f32 %v5903_v15, %v2331_v35 }
 0x274   : > { %v3545_v52 = vmul.f32 %v3469_v31, %v5805_v58  ;;  %v3432_v49 = vsel %vm3280_vm13, %v3356_v51, %v3204_v17  ;;  %v3507_v55 = vadd.f32 1.0, %v3431_v29  ;;  %v2673_v58 = vadd.f32 0.2548296, %v2597_v28 }
 0x275   : > { %v3546_v25 = vmul.f32 %v3470_v40, %v5814_v56  ;;  %v2408_v50 = vmul.f32 %v5907_v0, %v2332_v53  ;;  %v3508_v59 = vadd.f32 1.0, %v3432_v49  ;;  %v2674_v48 = vadd.f32 0.2548296, %v2598_v26  ;;  %v913_v26 = vpop.xlane.xlu0 %912 }
 0x276   : > { %v2483_v1 = vadd.f32 -0.28449672, %v2407_v16  ;;  %v3583_v56 = vmul.f32 %v3507_v55, %v5821_v32  ;;  %v2749_v23 = vmul.f32 %v5887_v33, %v2673_v58  ;;  %4296 = vrcp.f32 %v5905_v24 }
 0x277   : > { %v4064_v57 = vpack.c.bf16 %v3546_v25, %v3545_v52  ;;  %v2484_v9 = vadd.f32 -0.28449672, %v2408_v50  ;;  %v3584_v31 = vmul.f32 %v3508_v59, %v5842_v5  ;;  %v2750_v19 = vmul.f32 %v5890_v10, %v2674_v48 }
 0x278   : > { %v2559_v17 = vmul.f32 %v5903_v15, %v2483_v1  ;;  %v1610_v39 = vmul.f32 0.5, %v5791_v34  ;;  %v3129_v40 = vmul.f32 %v4287_v41, %v2749_v23  ;;  %v7728_v5 = vsub.f32 %v5774_v36, %v5772_v47  ;;  %v747_v41 = vpop.xlane.xlu1 %746  ;;  %v5969_v1 = vpop.eup %4294 }
 0x279   : > { %3846 = vst [vmem:[%s5649_s9 + $0x18] sm:$0xff] %v4064_v57  ;;  %v2560_v32 = vmul.f32 %v5907_v0, %v2484_v9  ;;  %v4083_v33 = vpack.c.bf16 %v3584_v31, %v3583_v56  ;;  %v3130_v4 = vmul.f32 %v4289_v8, %v2750_v19  ;;  %v2789_v52 = vmul.f32 %v5880_v61, %v5880_v61 }
 0x27a   : > { %v2635_v18 = vadd.f32 0.2548296, %v2559_v17  ;;  %v1145_v12 = vmax.f32 %v7728_v5, 0.0  ;;  %v3205_v10 = vsub.f32 1.0, %v3129_v40  ;;  %v7729_v34 = vsub.f32 %v5780_v2, %v5778_v14 }
 0x27b   : > { %v2636_v35 = vadd.f32 0.2548296, %v2560_v32  ;;  %3865 = vst [vmem:[%s5649_s9 + $0xb0] sm:$0xff] %v4083_v33  ;;  %v3206_v51 = vsub.f32 1.0, %v3130_v4  ;;  %v1571_v28 = vmul.f32 0.5, %v5800_v30  ;;  %v2790_v36 = vmul.f32 %v5885_v3, %v5885_v3 }
 0x27c   : > { %v1146_v24 = vmax.f32 %v7729_v34, 0.0  ;;  %v2711_v8 = vmul.f32 %v5903_v15, %v2635_v18  ;;  %v1259_v53 = vadd.f32 1e-05, %v1145_v12  ;;  %v3357_v25 = vsub.f32 0.0, %v3205_v10  ;;  %v916_v50 = vpop.xlane.xlu1 %915 }
 0x27d   : > { %v2712_v47 = vmul.f32 %v5907_v0, %v2636_v35  ;;  %vm3282_vm15 = vcmp.lt.f32.partialorder %v5808_v60, 0.0  ;;  %v3358_v61 = vsub.f32 0.0, %v3206_v51  ;;  %v1572_v14 = vmul.f32 0.5, %v5811_v43 }
 0x27e   : > { %v1260_v29 = vadd.f32 1e-05, %v1146_v24  ;;  %v3091_v2 = vmul.f32 %v4291_v22, %v2711_v8  ;;  %v3433_v30 = vsel %vm3281_vm14, %v3357_v25, %v3205_v10  ;;  %v2865_v15 = vsub.f32 0.0, %v2789_v52 }
 0x27f   : > { %v3092_v16 = vmul.f32 %v4293_v21, %v2712_v47  ;;  %4298 = vrsqrt.f32 %v1259_v53  ;;  %v3434_v49 = vsel %vm3282_vm15, %v3358_v61, %v3206_v51  ;;  %v3509_v55 = vadd.f32 1.0, %v3433_v30  ;;  %v7730_v51 = vld [vmem:[#allocation15_spill] sm:$0xff] }
 0x280   : > { %v3167_v0 = vsub.f32 1.0, %v3091_v2  ;;  %4300 = vrsqrt.f32 %v1260_v29  ;;  %v3510_v58 = vadd.f32 1.0, %v3434_v49  ;;  %vm3243_vm0 = vcmp.lt.f32.partialorder %v5818_v27, 0.0  ;;  %v7731_v29 = vld [vmem:[#allocation18_spill] sm:$0xff] }
 0x281   : > { %v3168_v3 = vsub.f32 1.0, %v3092_v16  ;;  %v2866_v60 = vsub.f32 0.0, %v2790_v36  ;;  %v3585_v43 = vmul.f32 %v3509_v55, %v5858_v62  ;;  %v1051_v37 = vmul.f32 %v5783_v45, %v5783_v45  ;;  %v973_v62 = vpop.xlane.xlu0 %972 }
 0x282   : > { %v3319_v22 = vsub.f32 0.0, %v3167_v0  ;;  %v1013_v57 = vmul.f32 0.00390625, %v913_v26  ;;  %v3586_v21 = vmul.f32 %v3510_v58, %v1610_v39  ;;  %vm3244_vm1 = vcmp.lt.f32.partialorder %v5825_v38, 0.0  ;;  %v7733_v26 = vld [vmem:[#allocation20_spill] sm:$0xff]  ;;  %v976_v58 = vpop.xlane.xlu1 %975 }
 0x283   : > { %v3320_v59 = vsub.f32 0.0, %v3168_v3  ;;  %v2951_v48 = vmul.f32 1.442695, %v2865_v15  ;;  %v1052_v27 = vmul.f32 %v5794_v11, %v5794_v11  ;;  %v1014_v9 = vmul.f32 0.00390625, %v916_v50  ;;  %v5973_v31 = vpop.eup %4296 }
 0x284   : > { %v3395_v56 = vsel %vm3243_vm0, %v3319_v22, %v3167_v0  ;;  %v1089_v23 = vsub.f32 %v1013_v57, %v1051_v37  ;;  %v4084_v19 = vpack.c.bf16 %v3586_v21, %v3585_v43  ;;  %v2105_v39 = vmul.f32 1.0614054, %v5969_v1 }
 0x285   : > { %v3396_v17 = vsel %vm3244_vm1, %v3320_v59, %v3168_v3  ;;  %v3471_v40 = vadd.f32 1.0, %v3395_v56  ;;  %v2106_v32 = vmul.f32 1.0614054, %v5973_v31  ;;  %v2953_v33 = vmul.f32 1.442695, %v2866_v60 }
 0x286   : > { %v3472_v38 = vadd.f32 1.0, %v3396_v17  ;;  %v1090_v4 = vsub.f32 %v1014_v9, %v1052_v27  ;;  %3866 = vst [vmem:[%s5649_s9 + $0xb8] sm:$0xff] %v4084_v19  ;;  %v2181_v5 = vadd.f32 -1.4531521, %v2105_v39  ;;  %v1071_v12 = vmul.f32 %v5802_v63, %v5802_v63 }
 0x287   : > { %v3547_v18 = vmul.f32 %v3471_v40, %v1571_v28  ;;  %v1033_v10 = vmul.f32 0.00390625, %v973_v62  ;;  %v2182_v52 = vadd.f32 -1.4531521, %v2106_v32  ;;  %v5980_v34 = vmul.f32 0.00390625, %v747_v41  ;;  %v7735_v32 = vld [vmem:[#allocation72_spill] sm:$0xff] }
 0x288   : > { %v3548_v35 = vmul.f32 %v3472_v38, %v1572_v14  ;;  %v1127_v24 = vmax.f32 %v1089_v23, 0.0  ;;  %v1208_v8 = vsub.f32 %v7730_v51, %v5749_v42  ;;  %v2257_v53 = vmul.f32 %v5969_v1, %v2181_v5  ;;  %v7732_v14 = vld [vmem:[#allocation19_spill] sm:$0xff]  ;;  %v7736_v5 = vld [vmem:[#allocation21_spill] sm:$0xff] }
 0x289   : > { %4302 = vpow2.f32 %v2951_v48  ;;  %v1109_v25 = vsub.f32 %v1033_v10, %v1071_v12  ;;  %v2258_v28 = vmul.f32 %v5973_v31, %v2182_v52  ;;  %v1128_v36 = vmax.f32 %v1090_v4, 0.0  ;;  %v7737_v52 = vld [vmem:[#allocation24_spill] sm:$0xff] }
 0x28a   : > { %v4065_v47 = vpack.c.bf16 %v3548_v35, %v3547_v18  ;;  %4304 = vpow2.f32 %v2953_v33  ;;  %v1209_v61 = vsub.f32 %v7731_v29, %v5756_v46  ;;  %v1210_v41 = vsub.f32 %v7732_v14, %v5756_v46 }
 0x28b   : > { %v2333_v2 = vadd.f32 1.4214138, %v2257_v53  ;;  %v1171_v30 = vsub.f32 %v7733_v26, %v5783_v45  ;;  %v5994_v15 = vmul.f32 0.5, %v5855_v6  ;;  %v2334_v49 = vadd.f32 1.4214138, %v2258_v28 }
 0x28c   : > { %v4299_v16 = vpop.eup %4298  ;;  %3847 = vst [vmem:[%s5649_s9 + $0x20] sm:$0xff] %v4065_v47  ;;  %v1241_v55 = vadd.f32 1e-05, %v1127_v24  ;;  %v1072_v0 = vmul.f32 %v5980_v34, %v5980_v34  ;;  %v7734_v46 = vsub.f32 %v7724_v44, %v5749_v42  ;;  %v1147_v22 = vmax.f32 %v1109_v25, 0.0 }
 0x28d   : > { %v4301_v3 = vpop.eup %4300  ;;  %v2409_v60 = vmul.f32 %v5969_v1, %v2333_v2  ;;  %v1360_v43 = vmul.f32 %v4299_v16, %v1208_v8  ;;  %v2410_v37 = vmul.f32 %v5973_v31, %v2334_v49  ;;  %v1242_v21 = vadd.f32 1e-05, %v1128_v36  ;;  %v7738_v36 = vld [vmem:[#allocation73_spill] sm:$0xff]  ;;  %v7739_v2 = vld [vmem:[#allocation74_spill] sm:$0xff] }
 0x28e   : > { %v1359_v50 = vmul.f32 %v4299_v16, %v7734_v46  ;;  %v1361_v57 = vmul.f32 %v4301_v3, %v1209_v61  ;;  %v1362_v6 = vmul.f32 %v4301_v3, %v1210_v41  ;;  %v1034_v23 = vmul.f32 0.00390625, %v976_v58 }
 0x28f   : > { %v2485_v59 = vadd.f32 -0.28449672, %v2409_v60  ;;  %v1448_v56 = vmul.f32 %v7715_v7, %v1360_v43  ;;  %v2486_v27 = vadd.f32 -0.28449672, %v2410_v37  ;;  %4306 = vrsqrt.f32 %v1241_v55 }
 0x290   : > { %v1447_v48 = vmul.f32 %v7714_v13, %v1359_v50  ;;  %v1449_v9 = vmul.f32 %v7714_v13, %v1361_v57  ;;  %v1450_v62 = vmul.f32 %v7715_v7, %v1362_v6  ;;  %v1261_v17 = vadd.f32 1e-05, %v1147_v22 }
 0x291   : > { %v2561_v42 = vmul.f32 %v5969_v1, %v2485_v59  ;;  %v6012_v19 = vadd.f32 %v7717_v20, %v1448_v56  ;;  %v2562_v40 = vmul.f32 %v5973_v31, %v2486_v27  ;;  %4308 = vrsqrt.f32 %v1242_v21 }
 0x292   : > { %v6009_v44 = vadd.f32 %v7716_v54, %v1447_v48  ;;  %v6016_v39 = vadd.f32 %v7716_v54, %v1449_v9  ;;  %v6019_v38 = vadd.f32 %v7717_v20, %v1450_v62  ;;  %v1574_v33 = vmul.f32 0.5, %v7735_v32 }
 0x293   : > { %v2637_v4 = vadd.f32 0.2548296, %v2561_v42  ;;  %v1172_v12 = vsub.f32 %v7736_v5, %v5783_v45  ;;  %v2638_v10 = vadd.f32 0.2548296, %v2562_v40  ;;  %v6028_v35 = vmul.f32 0.70710677, %v6012_v19 }
 0x294   : > { %v6023_v18 = vmul.f32 0.70710677, %v6009_v44  ;;  %v1173_v24 = vsub.f32 %v7737_v52, %v5794_v11  ;;  %v1110_v51 = vsub.f32 %v1034_v23, %v1072_v0  ;;  %v6035_v25 = vmul.f32 0.70710677, %v6016_v39  ;;  %v7741_v23 = vld [vmem:[#allocation22_spill] sm:$0xff] }
 0x295   : > { %v2713_v8 = vmul.f32 %v5969_v1, %v2637_v4  ;;  %4310 = vrsqrt.f32 %v1261_v17  ;;  %v2714_v28 = vmul.f32 %v5973_v31, %v2638_v10  ;;  %vm3245_vm2 = vcmp.lt.f32.partialorder %v7738_v36, 0.0  ;;  %v7740_v31 = vld [vmem:[#allocation25_spill] sm:$0xff]  ;;  %v7742_v17 = vld [vmem:[#allocation23_spill] sm:$0xff]  ;;  %v7743_v10 = vld [vmem:[#allocation26_spill] sm:$0xff] }
 0x296   : > { %v1763_v53 = vand.u32 2147483647, %v6023_v18  ;;  %v4303_v47 = vpop.eup %4302  ;;  %v1764_v29 = vand.u32 2147483647, %v6028_v35  ;;  %v6041_v61 = vmul.f32 0.70710677, %v6019_v38  ;;  %v1174_v58 = vsub.f32 %v7740_v31, %v5794_v11 }
 0x297   : > { %v4305_v14 = vpop.eup %4304  ;;  %v3093_v41 = vmul.f32 %v4303_v47, %v2713_v8  ;;  %vm3246_vm3 = vcmp.lt.f32.partialorder %v7739_v2, 0.0  ;;  %v1765_v16 = vand.u32 2147483647, %v6035_v25  ;;  %v1148_v50 = vmax.f32 %v1110_v51, 0.0 }
 0x298   : > { %v1839_v1 = vmul.f32 0.3275911, %v1763_v53  ;;  %v3094_v49 = vmul.f32 %v4305_v14, %v2714_v28  ;;  %v1840_v55 = vmul.f32 0.3275911, %v1764_v29  ;;  %v1766_v0 = vand.u32 2147483647, %v6041_v61 }
 0x299   : > { %v3169_v3 = vsub.f32 1.0, %v3093_v41  ;;  %v1841_v46 = vmul.f32 0.3275911, %v1765_v16  ;;  %v2827_v37 = vmul.f32 %v1763_v53, %v1763_v53  ;;  %v2828_v21 = vmul.f32 %v1764_v29, %v1764_v29  ;;  %v7744_v41 = vld [vmem:[#allocation27_spill] sm:$0xff] }
 0x29a   : > { %v1915_v60 = vadd.f32 1.0, %v1839_v1  ;;  %v3170_v43 = vsub.f32 1.0, %v3094_v49  ;;  %v1916_v22 = vadd.f32 1.0, %v1840_v55  ;;  %v1842_v57 = vmul.f32 0.3275911, %v1766_v0 }
 0x29b   : > { %v3321_v6 = vsub.f32 0.0, %v3169_v3  ;;  %v1917_v59 = vadd.f32 1.0, %v1841_v46  ;;  %v1211_v27 = vsub.f32 %v7741_v23, %v5802_v63  ;;  %v2829_v62 = vmul.f32 %v1765_v16, %v1765_v16 }
 0x29c   : > { %4312 = vrcp.f32 %v1915_v60  ;;  %v3322_v48 = vsub.f32 0.0, %v3170_v43  ;;  %v1918_v56 = vadd.f32 1.0, %v1842_v57  ;;  %v4307_v9 = vpop.eup %4306  ;;  %v2830_v42 = vmul.f32 %v1766_v0, %v1766_v0 }
 0x29d   : > { %4314 = vrcp.f32 %v1916_v22  ;;  %v3397_v11 = vsel %vm3245_vm2, %v3321_v6, %v3169_v3  ;;  %v1212_v40 = vsub.f32 %v7742_v17, %v5802_v63  ;;  %v2903_v5 = vsub.f32 0.0, %v2827_v37 }
 0x29e   : > { %v3398_v32 = vsel %vm3246_vm3, %v3322_v48, %v3170_v43  ;;  %v3473_v4 = vadd.f32 1.0, %v3397_v11  ;;  %v1213_v52 = vsub.f32 %v7743_v10, %v5980_v34  ;;  %v4309_v51 = vpop.eup %4308  ;;  %v2904_v53 = vsub.f32 0.0, %v2828_v21 }
 0x29f   : > { %v3474_v8 = vadd.f32 1.0, %v3398_v32  ;;  %4316 = vrcp.f32 %v1917_v59  ;;  %v1262_v47 = vadd.f32 1e-05, %v1148_v50  ;;  %v2905_v36 = vsub.f32 0.0, %v2829_v62 }
 0x2a0   : > { %v3549_v28 = vmul.f32 %v3473_v4, %v5994_v15  ;;  %4318 = vrcp.f32 %v1918_v56  ;;  %v1323_v63 = vmul.f32 %v4307_v9, %v1171_v30  ;;  %v2906_v14 = vsub.f32 0.0, %v2830_v42 }
 0x2a1   : > { %v3550_v29 = vmul.f32 %v3474_v8, %v1574_v33  ;;  %v1214_v2 = vsub.f32 %v7744_v41, %v5980_v34  ;;  %v1324_v1 = vmul.f32 %v4307_v9, %v1172_v12  ;;  %v3027_v49 = vmul.f32 1.442695, %v2903_v5 }
 0x2a2   : > { %v4311_v16 = vpop.eup %4310  ;;  %v1411_v55 = vmul.f32 %v7714_v13, %v1323_v63  ;;  %v1325_v0 = vmul.f32 %v4309_v51, %v1173_v24  ;;  %v1326_v31 = vmul.f32 %v4309_v51, %v1174_v58  ;;  %v3029_v3 = vmul.f32 1.442695, %v2904_v53 }
 0x2a3   : > { %v4066_v15 = vpack.c.bf16 %v3550_v29, %v3549_v28  ;;  %v1412_v60 = vmul.f32 %v7715_v7, %v1324_v1  ;;  %4320 = vrsqrt.f32 %v1262_v47  ;;  %v3031_v45 = vmul.f32 1.442695, %v2905_v36 }
 0x2a4   : > { %v6067_v26 = vadd.f32 %v7716_v54, %v1411_v55  ;;  %v1413_v30 = vmul.f32 %v7714_v13, %v1325_v0  ;;  %v1414_v33 = vmul.f32 %v7715_v7, %v1326_v31  ;;  %v6073_v12 = vmul.f32 0.5, %v6009_v44 }
 0x2a5   : > { %3848 = vst [vmem:[%s5649_s9 + $0x28] sm:$0xff] %v4066_v15  ;;  %v3033_v46 = vmul.f32 1.442695, %v2906_v14  ;;  %v6076_v24 = vadd.f32 %v7717_v20, %v1412_v60  ;;  %v1363_v58 = vmul.f32 %v4311_v16, %v1211_v27  ;;  %v6079_v50 = vmul.f32 0.5, %v6012_v19 }
 0x2a6   : > { %4322 = vpow2.f32 %v3027_v49  ;;  %v6082_v43 = vmul.f32 0.70710677, %v6067_v26  ;;  %v6085_v22 = vadd.f32 %v7716_v54, %v1413_v30  ;;  %v6088_v37 = vmul.f32 0.5, %v6016_v39 }
 0x2a7   : > { %4324 = vpow2.f32 %v3029_v3  ;;  %v6091_v44 = vmul.f32 0.70710677, %v6076_v24  ;;  %v6094_v57 = vadd.f32 %v7717_v20, %v1414_v33  ;;  %v6099_v19 = vmul.f32 0.5, %v6019_v38 }
 0x2a8   : > { %4326 = vpow2.f32 %v3031_v45  ;;  %v1727_v21 = vand.u32 2147483647, %v6082_v43  ;;  %v1364_v59 = vmul.f32 %v4311_v16, %v1212_v40  ;;  %v1451_v23 = vmul.f32 %v7714_v13, %v1363_v58 }
 0x2a9   : > { %v6096_v6 = vpop.eup %4312  ;;  %4328 = vpow2.f32 %v3033_v46  ;;  %v1728_v56 = vand.u32 2147483647, %v6091_v44  ;;  %v6109_v38 = vmul.f32 0.70710677, %v6085_v22  ;;  %v6112_v40 = vmul.f32 0.70710677, %v6094_v57 }
 0x2aa   : > { %v6102_v48 = vpop.eup %4314  ;;  %v2143_v39 = vmul.f32 1.0614054, %v6096_v6  ;;  %v1803_v9 = vmul.f32 0.3275911, %v1727_v21  ;;  %v2791_v11 = vmul.f32 %v1727_v21, %v1727_v21  ;;  %v1452_v1 = vmul.f32 %v7715_v7, %v1364_v59 }
 0x2ab   : > { %v2144_v27 = vmul.f32 1.0614054, %v6102_v48  ;;  %v1804_v42 = vmul.f32 0.3275911, %v1728_v56  ;;  %v2792_v17 = vmul.f32 %v1728_v56, %v1728_v56  ;;  %v1729_v8 = vand.u32 2147483647, %v6109_v38 }
 0x2ac   : > { %v2219_v62 = vadd.f32 -1.4531521, %v2143_v39  ;;  %v6114_v32 = vpop.eup %4316  ;;  %v1879_v5 = vadd.f32 1.0, %v1803_v9  ;;  %v2867_v51 = vsub.f32 0.0, %v2791_v11  ;;  %v1730_v3 = vand.u32 2147483647, %v6112_v40 }
 0x2ad   : > { %v2220_v4 = vadd.f32 -1.4531521, %v2144_v27  ;;  %v6117_v53 = vpop.eup %4318  ;;  %v2145_v28 = vmul.f32 1.0614054, %v6114_v32  ;;  %v1880_v36 = vadd.f32 1.0, %v1804_v42  ;;  %v2868_v63 = vsub.f32 0.0, %v2792_v17 }
 0x2ae   : > { %v2295_v47 = vmul.f32 %v6096_v6, %v2219_v62  ;;  %v2146_v14 = vmul.f32 1.0614054, %v6117_v53  ;;  %4330 = vrcp.f32 %v1879_v5  ;;  %v2955_v55 = vmul.f32 1.442695, %v2867_v51 }
 0x2af   : > { %v2296_v29 = vmul.f32 %v6102_v48, %v2220_v4  ;;  %v2221_v49 = vadd.f32 -1.4531521, %v2145_v28  ;;  %4332 = vrcp.f32 %v1880_v36  ;;  %v6126_v60 = vadd.f32 %v7716_v54, %v1451_v23 }
 0x2b0   : > { %v2371_v16 = vadd.f32 1.4214138, %v2295_v47  ;;  %v4321_v0 = vpop.eup %4320  ;;  %v2222_v15 = vadd.f32 -1.4531521, %v2146_v14  ;;  %v2957_v33 = vmul.f32 1.442695, %v2868_v63  ;;  %v2793_v39 = vmul.f32 %v1729_v8, %v1729_v8 }
 0x2b1   : > { %v2372_v31 = vadd.f32 1.4214138, %v2296_v29  ;;  %v2297_v30 = vmul.f32 %v6114_v32, %v2221_v49  ;;  %v1805_v46 = vmul.f32 0.3275911, %v1729_v8  ;;  %v1806_v59 = vmul.f32 0.3275911, %v1730_v3 }
 0x2b2   : > { %v2447_v45 = vmul.f32 %v6096_v6, %v2371_v16  ;;  %v2298_v21 = vmul.f32 %v6117_v53, %v2222_v15  ;;  %v2794_v62 = vmul.f32 %v1730_v3, %v1730_v3  ;;  %v2869_v5 = vsub.f32 0.0, %v2793_v39 }
 0x2b3   : > { %v2448_v58 = vmul.f32 %v6102_v48, %v2372_v31  ;;  %v4323_v56 = vpop.eup %4322  ;;  %v2373_v9 = vadd.f32 1.4214138, %v2297_v30  ;;  %v1881_v11 = vadd.f32 1.0, %v1805_v46  ;;  %v1882_v4 = vadd.f32 1.0, %v1806_v59 }
 0x2b4   : > { %v2523_v27 = vadd.f32 -0.28449672, %v2447_v45  ;;  %v4325_v42 = vpop.eup %4324  ;;  %v2374_v17 = vadd.f32 1.4214138, %v2298_v21  ;;  %v2870_v36 = vsub.f32 0.0, %v2794_v62  ;;  %v6137_v15 = vadd.f32 %v7717_v20, %v1452_v1 }
 0x2b5   : > { %v2524_v23 = vadd.f32 -0.28449672, %v2448_v58  ;;  %v4327_v51 = vpop.eup %4326  ;;  %v2449_v28 = vmul.f32 %v6114_v32, %v2373_v9  ;;  %4334 = vrcp.f32 %v1881_v11  ;;  %v2959_v14 = vmul.f32 1.442695, %v2869_v5 }
 0x2b6   : > { %v2599_v47 = vmul.f32 %v6096_v6, %v2523_v27  ;;  %v4329_v63 = vpop.eup %4328  ;;  %v2450_v29 = vmul.f32 %v6117_v53, %v2374_v17  ;;  %4336 = vrcp.f32 %v1882_v4  ;;  %v2961_v31 = vmul.f32 1.442695, %v2870_v36 }
 0x2b7   : > { %v2600_v8 = vmul.f32 %v6102_v48, %v2524_v23  ;;  %v2525_v49 = vadd.f32 -0.28449672, %v2449_v28  ;;  %vm3283_vm4 = vcmp.lt.f32.partialorder %v6023_v18, 0.0  ;;  %4338 = vpow2.f32 %v2955_v55 }
 0x2b8   : > { %v2675_v16 = vadd.f32 0.2548296, %v2599_v47  ;;  %v2526_v45 = vadd.f32 -0.28449672, %v2450_v29  ;;  %v6143_v30 = vmul.f32 %v4321_v0, %v1213_v52  ;;  %vm3284_vm5 = vcmp.lt.f32.partialorder %v6028_v35, 0.0 }
 0x2b9   : > { %v2676_v3 = vadd.f32 0.2548296, %v2600_v8  ;;  %v2601_v58 = vmul.f32 %v6114_v32, %v2525_v49  ;;  %4340 = vpow2.f32 %v2957_v33  ;;  %v6151_v1 = vmul.f32 %v4321_v0, %v1214_v2 }
 0x2ba   : > { %v2751_v46 = vmul.f32 %v6096_v6, %v2675_v16  ;;  %v2602_v55 = vmul.f32 %v6117_v53, %v2526_v45  ;;  %4342 = vpow2.f32 %v2959_v14  ;;  %v6156_v10 = vmul.f32 0.70710677, %v6126_v60 }
 0x2bb   : > { %v2752_v21 = vmul.f32 %v6102_v48, %v2676_v3  ;;  %v6158_v52 = vpop.eup %4330  ;;  %v2677_v59 = vadd.f32 0.2548296, %v2601_v58  ;;  %4344 = vpow2.f32 %v2961_v31  ;;  %v6161_v33 = vmul.f32 0.70710677, %v6137_v15 }
 0x2bc   : > { %v3131_v6 = vmul.f32 %v4323_v56, %v2751_v46  ;;  %v6163_v39 = vpop.eup %4332  ;;  %v2678_v41 = vadd.f32 0.2548296, %v2602_v55  ;;  %vm3285_vm6 = vcmp.lt.f32.partialorder %v6035_v25, 0.0  ;;  %v2107_v2 = vmul.f32 1.0614054, %v6158_v52 }
 0x2bd   : > { %v3132_v34 = vmul.f32 %v4325_v42, %v2752_v21  ;;  %v1767_v48 = vand.u32 2147483647, %v6156_v10  ;;  %v2753_v27 = vmul.f32 %v6114_v32, %v2677_v59  ;;  %vm3286_vm7 = vcmp.lt.f32.partialorder %v6041_v61, 0.0 }
 0x2be   : > { %v3207_v0 = vsub.f32 1.0, %v3131_v6  ;;  %v2108_v56 = vmul.f32 1.0614054, %v6163_v39  ;;  %v1768_v9 = vand.u32 2147483647, %v6161_v33  ;;  %v2754_v62 = vmul.f32 %v6117_v53, %v2678_v41 }
 0x2bf   : > { %v3208_v11 = vsub.f32 1.0, %v3132_v34  ;;  %v2183_v42 = vadd.f32 -1.4531521, %v2107_v2  ;;  %v1843_v23 = vmul.f32 0.3275911, %v1767_v48  ;;  %v3133_v4 = vmul.f32 %v4327_v51, %v2753_v27 }
 0x2c0   : > { %v3359_v17 = vsub.f32 0.0, %v3207_v0  ;;  %v2184_v5 = vadd.f32 -1.4531521, %v2108_v56  ;;  %v1844_v47 = vmul.f32 0.3275911, %v1768_v9  ;;  %v3134_v36 = vmul.f32 %v4329_v63, %v2754_v62 }
 0x2c1   : > { %v3360_v28 = vsub.f32 0.0, %v3208_v11  ;;  %v2259_v8 = vmul.f32 %v6158_v52, %v2183_v42  ;;  %v1919_v32 = vadd.f32 1.0, %v1843_v23  ;;  %v3209_v14 = vsub.f32 1.0, %v3133_v4 }
 0x2c2   : > { %v3435_v29 = vsel %vm3283_vm4, %v3359_v17, %v3207_v0  ;;  %v2260_v16 = vmul.f32 %v6163_v39, %v2184_v5  ;;  %v1920_v49 = vadd.f32 1.0, %v1844_v47  ;;  %v6177_v31 = vpop.eup %4334  ;;  %v3210_v3 = vsub.f32 1.0, %v3134_v36 }
 0x2c3   : > { %v3436_v53 = vsel %vm3284_vm5, %v3360_v28, %v3208_v11  ;;  %v3511_v51 = vadd.f32 1.0, %v3435_v29  ;;  %v2335_v45 = vadd.f32 1.4214138, %v2259_v8  ;;  %v6181_v46 = vpop.eup %4336  ;;  %v3361_v58 = vsub.f32 0.0, %v3209_v14 }
 0x2c4   : > { %v3512_v63 = vadd.f32 1.0, %v3436_v53  ;;  %v2336_v21 = vadd.f32 1.4214138, %v2260_v16  ;;  %v2109_v18 = vmul.f32 1.0614054, %v6177_v31  ;;  %v3362_v6 = vsub.f32 0.0, %v3210_v3  ;;  %v4339_v41 = vpop.eup %4338 }
 0x2c5   : > { %v3587_v55 = vmul.f32 %v3511_v51, %v6073_v12  ;;  %v2411_v59 = vmul.f32 %v6158_v52, %v2335_v45  ;;  %v2110_v34 = vmul.f32 1.0614054, %v6181_v46  ;;  %v3437_v2 = vsel %vm3285_vm6, %v3361_v58, %v3209_v14 }
 0x2c6   : > { %v3588_v35 = vmul.f32 %v3512_v63, %v6079_v50  ;;  %v2412_v0 = vmul.f32 %v6163_v39, %v2336_v21  ;;  %v2185_v27 = vadd.f32 -1.4531521, %v2109_v18  ;;  %v4341_v56 = vpop.eup %4340  ;;  %v3438_v11 = vsel %vm3286_vm7, %v3362_v6, %v3210_v3 }
 0x2c7   : > { %v3513_v12 = vadd.f32 1.0, %v3437_v2  ;;  %v2487_v62 = vadd.f32 -0.28449672, %v2411_v59  ;;  %v2186_v42 = vadd.f32 -1.4531521, %v2110_v34  ;;  %v6193_v23 = vpop.eup %4342  ;;  %v3514_v4 = vadd.f32 1.0, %v3438_v11 }
 0x2c8   : > { %v4085_v17 = vpack.c.bf16 %v3588_v35, %v3587_v55  ;;  %v2488_v5 = vadd.f32 -0.28449672, %v2412_v0  ;;  %v2261_v50 = vmul.f32 %v6177_v31, %v2185_v27  ;;  %v6196_v25 = vpop.eup %4344  ;;  %4346 = vrcp.f32 %v1919_v32  ;;  %v6221_v35 = vpop.xlane.xlu0 %689 }
 0x2c9   : > { %v3589_v47 = vmul.f32 %v3513_v12, %v6088_v37  ;;  %v2563_v28 = vmul.f32 %v6158_v52, %v2487_v62  ;;  %v2262_v36 = vmul.f32 %v6181_v46, %v2186_v42  ;;  %v3590_v61 = vmul.f32 %v3514_v4, %v6099_v19 }
 0x2ca   : > { %3867 = vst [vmem:[%s5649_s9 + $0xc0] sm:$0xff] %v4085_v17  ;;  %v2564_v8 = vmul.f32 %v6163_v39, %v2488_v5  ;;  %v2337_v29 = vadd.f32 1.4214138, %v2261_v50  ;;  %4348 = vrcp.f32 %v1920_v49  ;;  %v2831_v53 = vmul.f32 %v1767_v48, %v1767_v48  ;;  %v693_v5 = vpop.xlane.xlu1 %692 }
 0x2cb   : > { %v2639_v14 = vadd.f32 0.2548296, %v2563_v28  ;;  %v2338_v16 = vadd.f32 1.4214138, %v2262_v36  ;;  %v2832_v51 = vmul.f32 %v1768_v9, %v1768_v9  ;;  %v4086_v3 = vpack.c.bf16 %v3590_v61, %v3589_v47 }
 0x2cc   : > { %v2640_v45 = vadd.f32 0.2548296, %v2564_v8  ;;  %v2413_v37 = vmul.f32 %v6177_v31, %v2337_v29  ;;  %v1453_v63 = vmul.f32 %v7714_v13, %v6143_v30  ;;  %v2907_v19 = vsub.f32 0.0, %v2831_v53  ;;  %v750_v61 = vpop.xlane.xlu0 %749 }
 0x2cd   : > { %v2715_v32 = vmul.f32 %v6158_v52, %v2639_v14  ;;  %v2414_v58 = vmul.f32 %v6181_v46, %v2338_v16  ;;  %3868 = vst [vmem:[%s5649_s9 + $0xc8] sm:$0xff] %v4086_v3  ;;  %v1454_v48 = vmul.f32 %v7715_v7, %v6151_v1  ;;  %v1575_v9 = vmul.f32 0.5, %v6067_v26 }
 0x2ce   : > { %v2716_v21 = vmul.f32 %v6163_v39, %v2640_v45  ;;  %v2489_v49 = vadd.f32 -0.28449672, %v2413_v37  ;;  %v2908_v6 = vsub.f32 0.0, %v2832_v51  ;;  %v6216_v52 = vadd.f32 %v7716_v54, %v1453_v63 }
 0x2cf   : > { %v3095_v18 = vmul.f32 %v4339_v41, %v2715_v32  ;;  %v2490_v55 = vadd.f32 -0.28449672, %v2414_v58  ;;  %v6219_v34 = vadd.f32 %v7717_v20, %v1454_v48  ;;  %v1576_v39 = vmul.f32 0.5, %v6076_v24  ;;  %v753_v48 = vpop.xlane.xlu1 %752 }
 0x2d0   : > { %v3096_v59 = vmul.f32 %v4341_v56, %v2716_v21  ;;  %v2565_v30 = vmul.f32 %v6177_v31, %v2489_v49  ;;  %v3035_v26 = vmul.f32 1.442695, %v2907_v19  ;;  %vm3247_vm8 = vcmp.lt.f32.partialorder %v6082_v43, 0.0 }
 0x2d1   : > { %v3171_v2 = vsub.f32 1.0, %v3095_v18  ;;  %v2566_v1 = vmul.f32 %v6181_v46, %v2490_v55  ;;  %vm3248_vm9 = vcmp.lt.f32.partialorder %v6091_v44, 0.0  ;;  %vm3249_vm10 = vcmp.lt.f32.partialorder %v6109_v38, 0.0  ;;  %v919_v55 = vpop.xlane.xlu0 %918 }
 0x2d2   : > { %v3172_v41 = vsub.f32 1.0, %v3096_v59  ;;  %v2641_v0 = vadd.f32 0.2548296, %v2565_v30  ;;  %v6229_v11 = vmul.f32 0.70710677, %v6216_v52  ;;  %4350 = vpow2.f32 %v3035_v26 }
 0x2d3   : > { %v3323_v27 = vsub.f32 0.0, %v3171_v2  ;;  %v2642_v56 = vadd.f32 0.2548296, %v2566_v1  ;;  %v3037_v62 = vmul.f32 1.442695, %v2908_v6  ;;  %vm3250_vm11 = vcmp.lt.f32.partialorder %v6112_v40, 0.0 }
 0x2d4   : > { %v3324_v12 = vsub.f32 0.0, %v3172_v41  ;;  %v2717_v24 = vmul.f32 %v6177_v31, %v2641_v0  ;;  %v6233_v42 = vmul.f32 0.70710677, %v6219_v34  ;;  %v1769_v4 = vand.u32 2147483647, %v6229_v11 }
 0x2d5   : > { %v3399_v17 = vsel %vm3247_vm8, %v3323_v27, %v3171_v2  ;;  %v2718_v43 = vmul.f32 %v6181_v46, %v2642_v56  ;;  %v6237_v50 = vpop.eup %4346  ;;  %4352 = vpow2.f32 %v3037_v62  ;;  %v1577_v6 = vmul.f32 0.5, %v6085_v22 }
 0x2d6   : > { %v3400_v47 = vsel %vm3248_vm9, %v3324_v12, %v3172_v41  ;;  %v3475_v28 = vadd.f32 1.0, %v3399_v17  ;;  %v3097_v36 = vmul.f32 %v6193_v23, %v2717_v24  ;;  %v1770_v31 = vand.u32 2147483647, %v6233_v42 }
 0x2d7   : > { %v6243_v8 = vpop.eup %4348  ;;  %v3476_v29 = vadd.f32 1.0, %v3400_v47  ;;  %v3098_v46 = vmul.f32 %v6196_v25, %v2718_v43  ;;  %v2147_v14 = vmul.f32 1.0614054, %v6237_v50  ;;  %v1845_v16 = vmul.f32 0.3275911, %v1769_v4 }
 0x2d8   : > { %v3551_v53 = vmul.f32 %v3475_v28, %v1575_v9  ;;  %v3173_v51 = vsub.f32 1.0, %v3097_v36  ;;  %v2148_v3 = vmul.f32 1.0614054, %v6243_v8  ;;  %v1846_v44 = vmul.f32 0.3275911, %v1770_v31  ;;  %v979_v28 = vpop.xlane.xlu0 %978 }
 0x2d9   : > { %v3552_v45 = vmul.f32 %v3476_v29, %v1576_v39  ;;  %v3174_v37 = vsub.f32 1.0, %v3098_v46  ;;  %v2223_v63 = vadd.f32 -1.4531521, %v2147_v14  ;;  %v1921_v23 = vadd.f32 1.0, %v1845_v16 }
 0x2da   : > { %v3325_v32 = vsub.f32 0.0, %v3173_v51  ;;  %v2224_v58 = vadd.f32 -1.4531521, %v2148_v3  ;;  %v1922_v19 = vadd.f32 1.0, %v1846_v44  ;;  %v1578_v2 = vmul.f32 0.5, %v6094_v57  ;;  %v922_v57 = vpop.xlane.xlu1 %921 }
 0x2db   : > { %v4067_v21 = vpack.c.bf16 %v3552_v45, %v3551_v53  ;;  %v3326_v49 = vsub.f32 0.0, %v3174_v37  ;;  %v2299_v25 = vmul.f32 %v6237_v50, %v2223_v63  ;;  %4354 = vrcp.f32 %v1921_v23 }
 0x2dc   : > { %v3401_v9 = vsel %vm3249_vm10, %v3325_v32, %v3173_v51  ;;  %v2300_v18 = vmul.f32 %v6243_v8, %v2224_v58  ;;  %4356 = vrcp.f32 %v1922_v19  ;;  %v2833_v0 = vmul.f32 %v1769_v4, %v1769_v4 }
 0x2dd   : > { %3849 = vst [vmem:[%s5649_s9 + $0x30] sm:$0xff] %v4067_v21  ;;  %v3402_v59 = vsel %vm3250_vm11, %v3326_v49, %v3174_v37  ;;  %v3477_v30 = vadd.f32 1.0, %v3401_v9  ;;  %v2375_v39 = vadd.f32 1.4214138, %v2299_v25  ;;  %v6258_v38 = vmul.f32 0.00390625, %v6221_v35 }
 0x2de   : > { %v3478_v1 = vadd.f32 1.0, %v3402_v59  ;;  %v2376_v26 = vadd.f32 1.4214138, %v2300_v18  ;;  %v2834_v12 = vmul.f32 %v1770_v31, %v1770_v31  ;;  %v6261_v22 = vmul.f32 0.00390625, %v693_v5  ;;  %v982_v25 = vpop.xlane.xlu1 %981 }
 0x2df   : > { %v3553_v41 = vmul.f32 %v3477_v30, %v1577_v6  ;;  %v2451_v40 = vmul.f32 %v6237_v50, %v2375_v39  ;;  %v6263_v62 = vmul.f32 0.00390625, %v750_v61  ;;  %v4351_v17 = vpop.eup %4350  ;;  %v2909_v36 = vsub.f32 0.0, %v2833_v0 }
 0x2e0   : > { %v3554_v27 = vmul.f32 %v3478_v1, %v1578_v2  ;;  %v2452_v56 = vmul.f32 %v6243_v8, %v2376_v26  ;;  %v1053_v35 = vmul.f32 %v6258_v38, %v6258_v38  ;;  %v1015_v29 = vmul.f32 0.00390625, %v919_v55 }
 0x2e1   : > { %v2527_v24 = vadd.f32 -0.28449672, %v2451_v40  ;;  %v2910_v5 = vsub.f32 0.0, %v2834_v12  ;;  %v1054_v61 = vmul.f32 %v6261_v22, %v6261_v22  ;;  %v1016_v46 = vmul.f32 0.00390625, %v922_v57 }
 0x2e2   : > { %v4068_v43 = vpack.c.bf16 %v3554_v27, %v3553_v41  ;;  %v2528_v47 = vadd.f32 -0.28449672, %v2452_v56  ;;  %v1091_v16 = vsub.f32 %v1015_v29, %v1053_v35  ;;  %v1073_v53 = vmul.f32 %v6263_v62, %v6263_v62  ;;  %v4353_v45 = vpop.eup %4352  ;;  %v696_v41 = vpop.xlane.xlu0 %695 }
 0x2e3   : > { %v2603_v4 = vmul.f32 %v6237_v50, %v2527_v24  ;;  %v1035_v51 = vmul.f32 0.00390625, %v979_v28  ;;  %v1092_v44 = vsub.f32 %v1016_v46, %v1054_v61  ;;  %v3039_v19 = vmul.f32 1.442695, %v2909_v36 }
 0x2e4   : > { %3850 = vst [vmem:[%s5649_s9 + $0x38] sm:$0xff] %v4068_v43  ;;  %v2604_v31 = vmul.f32 %v6243_v8, %v2528_v47  ;;  %v1129_v63 = vmax.f32 %v1091_v16, 0.0  ;;  %v3041_v21 = vmul.f32 1.442695, %v2910_v5  ;;  %v6281_v6 = vmul.f32 0.00390625, %v753_v48 }
 0x2e5   : > { %v2679_v14 = vadd.f32 0.2548296, %v2603_v4  ;;  %v1111_v23 = vsub.f32 %v1035_v51, %v1073_v53  ;;  %v1130_v49 = vmax.f32 %v1092_v44, 0.0  ;;  %vm3287_vm12 = vcmp.lt.f32.partialorder %v6156_v10, 0.0  ;;  %v7746_v44 = vld [vmem:[#allocation29_spill] sm:$0xff] }
 0x2e6   : > { %v2680_v3 = vadd.f32 0.2548296, %v2604_v31  ;;  %v1243_v59 = vadd.f32 1e-05, %v1129_v63  ;;  %v1074_v56 = vmul.f32 %v6281_v6, %v6281_v6  ;;  %vm3288_vm13 = vcmp.lt.f32.partialorder %v6161_v33, 0.0  ;;  %v756_v61 = vpop.xlane.xlu0 %755 }
 0x2e7   : > { %v2755_v37 = vmul.f32 %v6237_v50, %v2679_v14  ;;  %v1244_v39 = vadd.f32 1e-05, %v1130_v49  ;;  %v1149_v2 = vmax.f32 %v1111_v23, 0.0  ;;  %v1615_v28 = vmul.f32 0.5, %v6126_v60  ;;  %v7745_v60 = vld [vmem:[#allocation28_spill] sm:$0xff] }
 0x2e8   : > { %v6275_v32 = vpop.eup %4354  ;;  %v2756_v58 = vmul.f32 %v6243_v8, %v2680_v3  ;;  %4358 = vrsqrt.f32 %v1243_v59  ;;  %v1036_v8 = vmul.f32 0.00390625, %v982_v25  ;;  %v1616_v29 = vmul.f32 0.5, %v6137_v15  ;;  %v7747_v49 = vld [vmem:[#allocation32_spill] sm:$0xff] }
 0x2e9   : > { %v6278_v9 = vpop.eup %4356  ;;  %v3135_v18 = vmul.f32 %v4351_v17, %v2755_v37  ;;  %v2149_v55 = vmul.f32 1.0614054, %v6275_v32  ;;  %4360 = vrsqrt.f32 %v1244_v39  ;;  %v1263_v57 = vadd.f32 1e-05, %v1149_v2  ;;  %v699_v17 = vpop.xlane.xlu1 %698 }
 0x2ea   : > { %v3136_v30 = vmul.f32 %v4353_v45, %v2756_v58  ;;  %v2150_v50 = vmul.f32 1.0614054, %v6278_v9  ;;  %4362 = vpow2.f32 %v3039_v19  ;;  %v1112_v10 = vsub.f32 %v1036_v8, %v1074_v56  ;;  %v925_v2 = vpop.xlane.xlu0 %924  ;;  %v7753_v56 = vld [vmem:[#allocation36_spill] sm:$0xff] }
 0x2eb   : > { %v3211_v1 = vsub.f32 1.0, %v3135_v18  ;;  %v2225_v26 = vadd.f32 -1.4531521, %v2149_v55  ;;  %4364 = vpow2.f32 %v3041_v21  ;;  %v1175_v3 = vsub.f32 %v7745_v60, %v6258_v38 }
 0x2ec   : > { %v3212_v40 = vsub.f32 1.0, %v3136_v30  ;;  %v2226_v0 = vadd.f32 -1.4531521, %v2150_v50  ;;  %4366 = vrsqrt.f32 %v1263_v57  ;;  %v1150_v53 = vmax.f32 %v1112_v10, 0.0  ;;  %v7750_v30 = vld [vmem:[#allocation31_spill] sm:$0xff]  ;;  %v7754_v10 = vld [vmem:[#allocation37_spill] sm:$0xff] }
 0x2ed   : > { %v3363_v27 = vsub.f32 0.0, %v3211_v1  ;;  %v2301_v48 = vmul.f32 %v6275_v32, %v2225_v26  ;;  %v1176_v45 = vsub.f32 %v7746_v44, %v6258_v38  ;;  %v6298_v15 = vpop.xlane.xlu1 %758  ;;  %v6301_v63 = vmul.f32 0.5, %v6216_v52  ;;  %v7748_v38 = vld [vmem:[#allocation33_spill] sm:$0xff]  ;;  %v7749_v52 = vld [vmem:[#allocation30_spill] sm:$0xff] }
 0x2ee   : > { %v3364_v12 = vsub.f32 0.0, %v3212_v40  ;;  %v2302_v24 = vmul.f32 %v6278_v9, %v2226_v0  ;;  %v6304_v58 = vmul.f32 0.00390625, %v696_v41  ;;  %v6307_v19 = vmul.f32 0.5, %v6219_v34  ;;  %v7751_v26 = vld [vmem:[#allocation34_spill] sm:$0xff]  ;;  %v7752_v41 = vld [vmem:[#allocation35_spill] sm:$0xff] }
 0x2ef   : > { %v3439_v43 = vsel %vm3287_vm12, %v3363_v27, %v3211_v1  ;;  %v2377_v47 = vadd.f32 1.4214138, %v2301_v48  ;;  %v1177_v25 = vsub.f32 %v7747_v49, %v6261_v22  ;;  %v1178_v18 = vsub.f32 %v7748_v38, %v6261_v22 }
 0x2f0   : > { %v3440_v4 = vsel %vm3288_vm13, %v3364_v12, %v3212_v40  ;;  %v3515_v36 = vadd.f32 1.0, %v3439_v43  ;;  %v2378_v35 = vadd.f32 1.4214138, %v2302_v24  ;;  %v1215_v59 = vsub.f32 %v7749_v52, %v6263_v62 }
 0x2f1   : > { %v3516_v31 = vadd.f32 1.0, %v3440_v4  ;;  %v2453_v5 = vmul.f32 %v6275_v32, %v2377_v47  ;;  %v1216_v50 = vsub.f32 %v7750_v30, %v6263_v62  ;;  %v1264_v39 = vadd.f32 1e-05, %v1150_v53  ;;  %v985_v53 = vpop.xlane.xlu0 %984 }
 0x2f2   : > { %v3591_v46 = vmul.f32 %v3515_v36, %v1615_v28  ;;  %v2454_v14 = vmul.f32 %v6278_v9, %v2378_v35  ;;  %vm3289_vm14 = vcmp.lt.f32.partialorder %v6229_v11, 0.0  ;;  %v1217_v8 = vsub.f32 %v7751_v26, %v6281_v6 }
 0x2f3   : > { %v3592_v33 = vmul.f32 %v3516_v31, %v1616_v29  ;;  %v2529_v16 = vadd.f32 -0.28449672, %v2453_v5  ;;  %v1218_v22 = vsub.f32 %v7752_v41, %v6281_v6  ;;  %v6324_v40 = vmul.f32 0.00390625, %v699_v17  ;;  %v928_v17 = vpop.xlane.xlu1 %927 }
 0x2f4   : > { %v2530_v51 = vadd.f32 -0.28449672, %v2454_v14  ;;  %vm3290_vm15 = vcmp.lt.f32.partialorder %v6233_v42, 0.0  ;;  %v1179_v12 = vsub.f32 %v7753_v56, %v6304_v58  ;;  %v1180_v28 = vsub.f32 %v7754_v10, %v6304_v58 }
 0x2f5   : > { %v4087_v37 = vpack.c.bf16 %v3592_v33, %v3591_v46  ;;  %v2605_v23 = vmul.f32 %v6275_v32, %v2529_v16  ;;  %v4359_v34 = vpop.eup %4358  ;;  %4368 = vrsqrt.f32 %v1264_v39  ;;  %v1017_v46 = vmul.f32 0.00390625, %v925_v2 }
 0x2f6   : > { %v2606_v21 = vmul.f32 %v6278_v9, %v2530_v51  ;;  %v4361_v0 = vpop.eup %4360  ;;  %v1327_v62 = vmul.f32 %v4359_v34, %v1175_v3  ;;  %v1328_v48 = vmul.f32 %v4359_v34, %v1176_v45  ;;  %v1018_v16 = vmul.f32 0.00390625, %v928_v17 }
 0x2f7   : > { %3869 = vst [vmem:[%s5649_s9 + $0xd0] sm:$0xff] %v4087_v37  ;;  %v2681_v55 = vadd.f32 0.2548296, %v2605_v23  ;;  %v4363_v24 = vpop.eup %4362  ;;  %v1329_v43 = vmul.f32 %v4361_v0, %v1177_v25  ;;  %v1330_v47 = vmul.f32 %v4361_v0, %v1178_v18  ;;  %v6346_v3 = vmul.f32 0.00390625, %v756_v61 }
 0x2f8   : > { %v2682_v1 = vadd.f32 0.2548296, %v2606_v21  ;;  %v4365_v4 = vpop.eup %4364  ;;  %v1416_v35 = vmul.f32 %v7715_v7, %v1328_v48  ;;  %v1055_v44 = vmul.f32 %v6304_v58, %v6304_v58  ;;  %v1056_v49 = vmul.f32 %v6324_v40, %v6324_v40 }
 0x2f9   : > { %v2757_v27 = vmul.f32 %v6275_v32, %v2681_v55  ;;  %v1415_v32 = vmul.f32 %v7714_v13, %v1327_v62  ;;  %v1417_v31 = vmul.f32 %v7714_v13, %v1329_v43  ;;  %v1418_v5 = vmul.f32 %v7715_v7, %v1330_v47  ;;  %v4367_v45 = vpop.eup %4366 }
 0x2fa   : > { %v2758_v57 = vmul.f32 %v6278_v9, %v2682_v1  ;;  %v6341_v33 = vadd.f32 %v7717_v20, %v1416_v35  ;;  %v1093_v61 = vsub.f32 %v1017_v46, %v1055_v44  ;;  %v6361_v18 = vmul.f32 0.00390625, %v985_v53 }
 0x2fb   : > { %v3137_v36 = vmul.f32 %v4363_v24, %v2757_v27  ;;  %v6338_v14 = vadd.f32 %v7716_v54, %v1415_v32  ;;  %v6344_v60 = vadd.f32 %v7716_v54, %v1417_v31  ;;  %v6354_v21 = vadd.f32 %v7717_v20, %v1418_v5 }
 0x2fc   : > { %v3138_v29 = vmul.f32 %v4365_v4, %v2758_v57  ;;  %v6359_v38 = vmul.f32 0.70710677, %v6341_v33  ;;  %v1094_v39 = vsub.f32 %v1018_v16, %v1056_v49  ;;  %v1367_v0 = vmul.f32 %v4367_v45, %v1215_v59 }
 0x2fd   : > { %v3213_v9 = vsub.f32 1.0, %v3137_v36  ;;  %v6351_v23 = vmul.f32 0.70710677, %v6338_v14  ;;  %v6367_v30 = vmul.f32 0.70710677, %v6344_v60  ;;  %v1368_v11 = vmul.f32 %v4367_v45, %v1216_v50  ;;  %v7756_v45 = vld [vmem:[#allocation41_spill] sm:$0xff] }
 0x2fe   : > { %v3214_v51 = vsub.f32 1.0, %v3138_v29  ;;  %v1732_v1 = vand.u32 2147483647, %v6359_v38  ;;  %v6373_v48 = vmul.f32 0.70710677, %v6354_v21  ;;  %v1131_v47 = vmax.f32 %v1093_v61, 0.0 }
 0x2ff   : > { %v3365_v37 = vsub.f32 0.0, %v3213_v9  ;;  %v1731_v52 = vand.u32 2147483647, %v6351_v23  ;;  %v1733_v43 = vand.u32 2147483647, %v6367_v30  ;;  %v1455_v29 = vmul.f32 %v7714_v13, %v1367_v0 }
 0x300   : > { %v3366_v25 = vsub.f32 0.0, %v3214_v51  ;;  %v1808_v57 = vmul.f32 0.3275911, %v1732_v1  ;;  %v1734_v36 = vand.u32 2147483647, %v6373_v48  ;;  %v2796_v32 = vmul.f32 %v1732_v1, %v1732_v1 }
 0x301   : > { %v3441_v55 = vsel %vm3289_vm14, %v3365_v37, %v3213_v9  ;;  %v1807_v62 = vmul.f32 0.3275911, %v1731_v52  ;;  %v2795_v4 = vmul.f32 %v1731_v52, %v1731_v52  ;;  %v1809_v35 = vmul.f32 0.3275911, %v1733_v43 }
 0x302   : > { %v3442_v2 = vsel %vm3290_vm15, %v3366_v25, %v3214_v51  ;;  %v3517_v34 = vadd.f32 1.0, %v3441_v55  ;;  %v1884_v59 = vadd.f32 1.0, %v1808_v57  ;;  %v1810_v50 = vmul.f32 0.3275911, %v1734_v36  ;;  %v4369_v5 = vpop.eup %4368  ;;  %v7755_v51 = vld [vmem:[#allocation40_spill] sm:$0xff] }
 0x303   : > { %v3518_v27 = vadd.f32 1.0, %v3442_v2  ;;  %v1883_v42 = vadd.f32 1.0, %v1807_v62  ;;  %v1885_v46 = vadd.f32 1.0, %v1809_v35  ;;  %v1132_v9 = vmax.f32 %v1094_v39, 0.0 }
 0x304   : > { %v3593_v24 = vmul.f32 %v3517_v34, %v6301_v63  ;;  %v1456_v63 = vmul.f32 %v7715_v7, %v1368_v11  ;;  %v2871_v16 = vsub.f32 0.0, %v2795_v4  ;;  %v1886_v53 = vadd.f32 1.0, %v1810_v50 }
 0x305   : > { %v3594_v17 = vmul.f32 %v3518_v27, %v6307_v19  ;;  %4370 = vrcp.f32 %v1883_v42  ;;  %v6383_v19 = vmul.f32 %v6346_v3, %v6346_v3  ;;  %v1181_v44 = vsub.f32 %v7755_v51, %v6324_v40 }
 0x306   : > { %4372 = vrcp.f32 %v1884_v59  ;;  %v1182_v37 = vsub.f32 %v7756_v45, %v6324_v40  ;;  %v2872_v49 = vsub.f32 0.0, %v2796_v32  ;;  %v6391_v25 = vadd.f32 %v7716_v54, %v1455_v29 }
 0x307   : > { %v4088_v31 = vpack.c.bf16 %v3594_v17, %v3593_v24  ;;  %v6394_v61 = vmul.f32 0.00390625, %v6298_v15  ;;  %v1113_v55 = vsub.f32 %v6361_v18, %v6383_v19  ;;  %4374 = vrcp.f32 %v1885_v46 }
 0x308   : > { %v6399_v52 = vadd.f32 %v7717_v20, %v1456_v63  ;;  %v1369_v39 = vmul.f32 %v4369_v5, %v1217_v8  ;;  %v1245_v2 = vadd.f32 1e-05, %v1131_v47  ;;  %4376 = vrcp.f32 %v1886_v53 }
 0x309   : > { %3870 = vst [vmem:[%s5649_s9 + $0xd8] sm:$0xff] %v4088_v31  ;;  %v2797_v34 = vmul.f32 %v1733_v43, %v1733_v43  ;;  %v6405_v1 = vmul.f32 0.70710677, %v6391_v25  ;;  %v1246_v0 = vadd.f32 1e-05, %v1132_v9  ;;  %v2798_v27 = vmul.f32 %v1734_v36, %v1734_v36 }
 0x30a   : > { %v2963_v15 = vmul.f32 1.442695, %v2871_v16  ;;  %v6408_v62 = vmul.f32 0.70710677, %v6399_v52  ;;  %v1370_v11 = vmul.f32 %v4369_v5, %v1218_v22  ;;  %v6414_v24 = vmul.f32 0.5, %v6338_v14 }
 0x30b   : > { %v2965_v26 = vmul.f32 1.442695, %v2872_v49  ;;  %v1771_v8 = vand.u32 2147483647, %v6405_v1  ;;  %v1457_v57 = vmul.f32 %v7714_v13, %v1369_v39  ;;  %v6419_v43 = vmul.f32 0.5, %v6341_v33 }
 0x30c   : > { %v1772_v47 = vand.u32 2147483647, %v6408_v62  ;;  %v1458_v17 = vmul.f32 %v7715_v7, %v1370_v11  ;;  %4378 = vrsqrt.f32 %v1245_v2  ;;  %v6424_v42 = vmul.f32 0.5, %v6344_v60 }
 0x30d   : > { %v2873_v6 = vsub.f32 0.0, %v2797_v34  ;;  %v1847_v41 = vmul.f32 0.3275911, %v1771_v8  ;;  %v6427_v22 = vadd.f32 %v7716_v54, %v1457_v57  ;;  %4380 = vpow2.f32 %v2963_v15 }
 0x30e   : > { %v2874_v14 = vsub.f32 0.0, %v2798_v27  ;;  %v1848_v4 = vmul.f32 0.3275911, %v1772_v47  ;;  %v6430_v36 = vadd.f32 %v7717_v20, %v1458_v17  ;;  %4382 = vpow2.f32 %v2965_v26 }
 0x30f   : > { %v1923_v33 = vadd.f32 1.0, %v1847_v41  ;;  %v2835_v59 = vmul.f32 %v1771_v8, %v1771_v8  ;;  %v6433_v32 = vmul.f32 0.70710677, %v6427_v22  ;;  %v2836_v60 = vmul.f32 %v1772_v47, %v1772_v47 }
 0x310   : > { %v1924_v35 = vadd.f32 1.0, %v1848_v4  ;;  %v6436_v29 = vmul.f32 0.70710677, %v6430_v36  ;;  %4384 = vrsqrt.f32 %v1246_v0  ;;  %v6441_v50 = vmul.f32 0.5, %v6354_v21 }
 0x311   : > { %v2967_v63 = vmul.f32 1.442695, %v2873_v6  ;;  %4386 = vrcp.f32 %v1923_v33  ;;  %v1773_v5 = vand.u32 2147483647, %v6433_v32  ;;  %v2969_v16 = vmul.f32 1.442695, %v2874_v14 }
 0x312   : > { %v6438_v31 = vpop.eup %4370  ;;  %4388 = vrcp.f32 %v1924_v35  ;;  %v1774_v53 = vand.u32 2147483647, %v6436_v29  ;;  %v2911_v39 = vsub.f32 0.0, %v2835_v59  ;;  %v2912_v21 = vsub.f32 0.0, %v2836_v60 }
 0x313   : > { %v6444_v46 = vpop.eup %4372  ;;  %v2111_v9 = vmul.f32 1.0614054, %v6438_v31  ;;  %v1849_v2 = vmul.f32 0.3275911, %v1773_v5  ;;  %v2837_v34 = vmul.f32 %v1773_v5, %v1773_v5  ;;  %4390 = vpow2.f32 %v2967_v63 }
 0x314   : > { %v2112_v49 = vmul.f32 1.0614054, %v6444_v46  ;;  %v1850_v15 = vmul.f32 0.3275911, %v1774_v53  ;;  %v2838_v27 = vmul.f32 %v1774_v53, %v1774_v53  ;;  %v6449_v11 = vpop.eup %4374  ;;  %v3043_v59 = vmul.f32 1.442695, %v2911_v39 }
 0x315   : > { %v2187_v0 = vadd.f32 -1.4531521, %v2111_v9  ;;  %v1925_v8 = vadd.f32 1.0, %v1849_v2  ;;  %v2913_v57 = vsub.f32 0.0, %v2837_v34  ;;  %v6451_v47 = vpop.eup %4376  ;;  %v2113_v6 = vmul.f32 1.0614054, %v6449_v11 }
 0x316   : > { %v2188_v26 = vadd.f32 -1.4531521, %v2112_v49  ;;  %v1926_v41 = vadd.f32 1.0, %v1850_v15  ;;  %v2914_v14 = vsub.f32 0.0, %v2838_v27  ;;  %v2114_v33 = vmul.f32 1.0614054, %v6451_v47 }
 0x317   : > { %v2263_v17 = vmul.f32 %v6438_v31, %v2187_v0  ;;  %4392 = vrcp.f32 %v1925_v8  ;;  %v2189_v60 = vadd.f32 -1.4531521, %v2113_v6  ;;  %v3045_v5 = vmul.f32 1.442695, %v2912_v21 }
 0x318   : > { %v2264_v4 = vmul.f32 %v6444_v46, %v2188_v26  ;;  %4394 = vrcp.f32 %v1926_v41  ;;  %v2190_v53 = vadd.f32 -1.4531521, %v2114_v33  ;;  %v3047_v49 = vmul.f32 1.442695, %v2913_v57 }
 0x319   : > { %v2339_v35 = vadd.f32 1.4214138, %v2263_v17  ;;  %v4379_v63 = vpop.eup %4378  ;;  %4396 = vpow2.f32 %v2969_v16  ;;  %v2265_v34 = vmul.f32 %v6449_v11, %v2189_v60  ;;  %v3049_v0 = vmul.f32 1.442695, %v2914_v14 }
 0x31a   : > { %v2340_v9 = vadd.f32 1.4214138, %v2264_v4  ;;  %v1331_v15 = vmul.f32 %v4379_v63, %v1179_v12  ;;  %v4381_v39 = vpop.eup %4380  ;;  %v2266_v21 = vmul.f32 %v6451_v47, %v2190_v53  ;;  %4398 = vpow2.f32 %v3043_v59 }
 0x31b   : > { %v2415_v2 = vmul.f32 %v6438_v31, %v2339_v35  ;;  %v1332_v16 = vmul.f32 %v4379_v63, %v1180_v28  ;;  %v4383_v26 = vpop.eup %4382  ;;  %v2341_v57 = vadd.f32 1.4214138, %v2265_v34  ;;  %4400 = vpow2.f32 %v3045_v5 }
 0x31c   : > { %v2416_v27 = vmul.f32 %v6444_v46, %v2340_v9  ;;  %v1419_v17 = vmul.f32 %v7714_v13, %v1331_v15  ;;  %v2342_v56 = vadd.f32 1.4214138, %v2266_v21  ;;  %v6469_v12 = vmul.f32 0.5, %v6391_v25 }
 0x31d   : > { %v2491_v8 = vadd.f32 -0.28449672, %v2415_v2  ;;  %v4385_v6 = vpop.eup %4384  ;;  %4402 = vpow2.f32 %v3047_v49  ;;  %v2417_v58 = vmul.f32 %v6449_v11, %v2341_v57  ;;  %v6476_v10 = vmul.f32 0.5, %v6399_v52 }
 0x31e   : > { %v2492_v41 = vadd.f32 -0.28449672, %v2416_v27  ;;  %v6471_v14 = vpop.eup %4386  ;;  %4404 = vpow2.f32 %v3049_v0  ;;  %v2418_v59 = vmul.f32 %v6451_v47, %v2342_v56  ;;  %v1420_v35 = vmul.f32 %v7715_v7, %v1332_v16 }
 0x31f   : > { %v2567_v4 = vmul.f32 %v6438_v31, %v2491_v8  ;;  %v6478_v28 = vpop.eup %4388  ;;  %v2151_v25 = vmul.f32 1.0614054, %v6471_v14  ;;  %v2493_v5 = vadd.f32 -0.28449672, %v2417_v58  ;;  %v6486_v9 = vadd.f32 %v7716_v54, %v1419_v17 }
 0x320   : > { %v2568_v33 = vmul.f32 %v6444_v46, %v2492_v41  ;;  %v2152_v63 = vmul.f32 1.0614054, %v6478_v28  ;;  %vm3251_vm0 = vcmp.lt.f32.partialorder %v6351_v23, 0.0  ;;  %v2494_v53 = vadd.f32 -0.28449672, %v2418_v59  ;;  %v4391_v34 = vpop.eup %4390 }
 0x321   : > { %v2643_v60 = vadd.f32 0.2548296, %v2567_v4  ;;  %v2227_v49 = vadd.f32 -1.4531521, %v2151_v25  ;;  %v6492_v2 = vmul.f32 %v4385_v6, %v1181_v44  ;;  %vm3252_vm1 = vcmp.lt.f32.partialorder %v6359_v38, 0.0 }
 0x322   : > { %v2644_v52 = vadd.f32 0.2548296, %v2568_v33  ;;  %v2569_v15 = vmul.f32 %v6449_v11, %v2493_v5  ;;  %v2228_v27 = vadd.f32 -1.4531521, %v2152_v63  ;;  %v6500_v21 = vmul.f32 %v4385_v6, %v1182_v37 }
 0x323   : > { %v2719_v0 = vmul.f32 %v6438_v31, %v2643_v60  ;;  %v2570_v8 = vmul.f32 %v6451_v47, %v2494_v53  ;;  %v2303_v51 = vmul.f32 %v6471_v14, %v2227_v49  ;;  %v6506_v44 = vadd.f32 %v7717_v20, %v1420_v35 }
 0x324   : > { %v2720_v16 = vmul.f32 %v6444_v46, %v2644_v52  ;;  %v6508_v31 = vpop.eup %4392  ;;  %v2645_v17 = vadd.f32 0.2548296, %v2569_v15  ;;  %v2304_v41 = vmul.f32 %v6478_v28, %v2228_v27  ;;  %v6512_v56 = vmul.f32 0.70710677, %v6486_v9 }
 0x325   : > { %v3099_v57 = vmul.f32 %v4381_v39, %v2719_v0  ;;  %v6514_v40 = vpop.eup %4394  ;;  %v2646_v37 = vadd.f32 0.2548296, %v2570_v8  ;;  %vm3253_vm2 = vcmp.lt.f32.partialorder %v6367_v30, 0.0  ;;  %v2379_v46 = vadd.f32 1.4214138, %v2303_v51 }
 0x326   : > { %v3100_v45 = vmul.f32 %v4383_v26, %v2720_v16  ;;  %v2153_v6 = vmul.f32 1.0614054, %v6508_v31  ;;  %v4397_v4 = vpop.eup %4396  ;;  %v2721_v33 = vmul.f32 %v6449_v11, %v2645_v17  ;;  %vm3254_vm3 = vcmp.lt.f32.partialorder %v6373_v48, 0.0 }
 0x327   : > { %v3175_v58 = vsub.f32 1.0, %v3099_v57  ;;  %v2380_v39 = vadd.f32 1.4214138, %v2304_v41  ;;  %v2154_v59 = vmul.f32 1.0614054, %v6514_v40  ;;  %v2722_v35 = vmul.f32 %v6451_v47, %v2646_v37  ;;  %v4399_v5 = vpop.eup %4398 }
 0x328   : > { %v3176_v25 = vsub.f32 1.0, %v3100_v45  ;;  %v2455_v26 = vmul.f32 %v6471_v14, %v2379_v46  ;;  %v2229_v60 = vadd.f32 -1.4531521, %v2153_v6  ;;  %v3101_v52 = vmul.f32 %v4391_v34, %v2721_v33  ;;  %v4401_v0 = vpop.eup %4400 }
 0x329   : > { %v3327_v63 = vsub.f32 0.0, %v3175_v58  ;;  %v2456_v53 = vmul.f32 %v6478_v28, %v2380_v39  ;;  %v2230_v49 = vadd.f32 -1.4531521, %v2154_v59  ;;  %v3102_v11 = vmul.f32 %v4397_v4, %v2722_v35 }
 0x32a   : > { %v3328_v15 = vsub.f32 0.0, %v3176_v25  ;;  %v2531_v27 = vadd.f32 -0.28449672, %v2455_v26  ;;  %v2305_v16 = vmul.f32 %v6508_v31, %v2229_v60  ;;  %v6525_v8 = vpop.eup %4402  ;;  %v3177_v51 = vsub.f32 1.0, %v3101_v52 }
 0x32b   : > { %v3403_v47 = vsel %vm3251_vm0, %v3327_v63, %v3175_v58  ;;  %v2532_v57 = vadd.f32 -0.28449672, %v2456_v53  ;;  %v2306_v17 = vmul.f32 %v6514_v40, %v2230_v49  ;;  %v6530_v41 = vpop.eup %4404  ;;  %v3178_v37 = vsub.f32 1.0, %v3102_v11 }
 0x32c   : > { %v3404_v34 = vsel %vm3252_vm1, %v3328_v15, %v3176_v25  ;;  %v3479_v45 = vadd.f32 1.0, %v3403_v47  ;;  %v2607_v46 = vmul.f32 %v6471_v14, %v2531_v27  ;;  %v3329_v4 = vsub.f32 0.0, %v3177_v51 }
 0x32d   : > { %v3480_v6 = vadd.f32 1.0, %v3404_v34  ;;  %v2608_v33 = vmul.f32 %v6478_v28, %v2532_v57  ;;  %v2381_v39 = vadd.f32 1.4214138, %v2305_v16  ;;  %v3330_v58 = vsub.f32 0.0, %v3178_v37 }
 0x32e   : > { %v3555_v23 = vmul.f32 %v3479_v45, %v6414_v24  ;;  %v2683_v59 = vadd.f32 0.2548296, %v2607_v46  ;;  %v2382_v35 = vadd.f32 1.4214138, %v2306_v17  ;;  %v3405_v38 = vsel %vm3253_vm2, %v3329_v4, %v3177_v51 }
 0x32f   : > { %v3556_v26 = vmul.f32 %v3480_v6, %v6419_v43  ;;  %v2684_v25 = vadd.f32 0.2548296, %v2608_v33  ;;  %vm3291_vm4 = vcmp.lt.f32.partialorder %v6405_v1, 0.0  ;;  %v2457_v60 = vmul.f32 %v6508_v31, %v2381_v39 }
 0x330   : > { %v3406_v63 = vsel %vm3254_vm3, %v3330_v58, %v3178_v37  ;;  %v3481_v52 = vadd.f32 1.0, %v3405_v38  ;;  %v2759_v24 = vmul.f32 %v6471_v14, %v2683_v59  ;;  %vm3292_vm5 = vcmp.lt.f32.partialorder %v6408_v62, 0.0  ;;  %v988_v38 = vpop.xlane.xlu1 %987 }
 0x331   : > { %v2458_v53 = vmul.f32 %v6514_v40, %v2382_v35  ;;  %v4069_v43 = vpack.c.bf16 %v3556_v26, %v3555_v23  ;;  %v3482_v49 = vadd.f32 1.0, %v3406_v63  ;;  %v2760_v30 = vmul.f32 %v6478_v28, %v2684_v25 }
 0x332   : > { %v2533_v15 = vadd.f32 -0.28449672, %v2457_v60  ;;  %v3557_v11 = vmul.f32 %v3481_v52, %v6424_v42  ;;  %v3139_v27 = vmul.f32 %v4399_v5, %v2759_v24  ;;  %v6550_v47 = vmul.f32 0.70710677, %v6506_v44 }
 0x333   : > { %v2534_v16 = vadd.f32 -0.28449672, %v2458_v53  ;;  %3851 = vst [vmem:[%s5649_s9 + $0x40] sm:$0xff] %v4069_v43  ;;  %v3558_v48 = vmul.f32 %v3482_v49, %v6441_v50  ;;  %v3140_v14 = vmul.f32 %v4401_v0, %v2760_v30  ;;  %v1735_v57 = vand.u32 2147483647, %v6512_v56 }
 0x334   : > { %v2609_v51 = vmul.f32 %v6508_v31, %v2533_v15  ;;  %v3215_v17 = vsub.f32 1.0, %v3139_v27  ;;  %v1736_v34 = vand.u32 2147483647, %v6550_v47  ;;  %v1421_v42 = vmul.f32 %v7714_v13, %v6492_v2 }
 0x335   : > { %v2610_v28 = vmul.f32 %v6514_v40, %v2534_v16  ;;  %v4070_v5 = vpack.c.bf16 %v3558_v48, %v3557_v11  ;;  %v3216_v45 = vsub.f32 1.0, %v3140_v14  ;;  %v1811_v46 = vmul.f32 0.3275911, %v1735_v57 }
 0x336   : > { %v2685_v37 = vadd.f32 0.2548296, %v2609_v51  ;;  %v3367_v6 = vsub.f32 0.0, %v3215_v17  ;;  %v1812_v4 = vmul.f32 0.3275911, %v1736_v34  ;;  %v1422_v0 = vmul.f32 %v7715_v7, %v6500_v21  ;;  %v702_v21 = vpop.xlane.xlu0 %701 }
 0x337   : > { %v2686_v50 = vadd.f32 0.2548296, %v2610_v28  ;;  %3852 = vst [vmem:[%s5649_s9 + $0x48] sm:$0xff] %v4070_v5  ;;  %v3368_v33 = vsub.f32 0.0, %v3216_v45  ;;  %v1887_v23 = vadd.f32 1.0, %v1811_v46  ;;  %v1151_v58 = vmax.f32 %v1113_v55, 0.0 }
 0x338   : > { %v2761_v39 = vmul.f32 %v6508_v31, %v2685_v37  ;;  %v3443_v2 = vsel %vm3291_vm4, %v3367_v6, %v3215_v17  ;;  %v1888_v35 = vadd.f32 1.0, %v1812_v4  ;;  %v6571_v26 = vadd.f32 %v7716_v54, %v1421_v42  ;;  %v7757_v6 = vld [vmem:[#allocation38_spill] sm:$0xff] }
 0x339   : > { %v2762_v59 = vmul.f32 %v6514_v40, %v2686_v50  ;;  %v3444_v25 = vsel %vm3292_vm5, %v3368_v33, %v3216_v45  ;;  %v3519_v31 = vadd.f32 1.0, %v3443_v2  ;;  %4406 = vrcp.f32 %v1887_v23 }
 0x33a   : > { %v3141_v60 = vmul.f32 %v6525_v8, %v2761_v39  ;;  %v3520_v18 = vadd.f32 1.0, %v3444_v25  ;;  %4408 = vrcp.f32 %v1888_v35  ;;  %v6578_v55 = vadd.f32 %v7717_v20, %v1422_v0  ;;  %v6592_v15 = vpop.xlane.xlu0 %761 }
 0x33b   : > { %v3142_v19 = vmul.f32 %v6530_v41, %v2762_v59  ;;  %v3595_v1 = vmul.f32 %v3519_v31, %v6469_v12  ;;  %v1265_v63 = vadd.f32 1e-05, %v1151_v58  ;;  %v1076_v62 = vmul.f32 %v6394_v61, %v6394_v61  ;;  %v7759_v58 = vld [vmem:[#allocation42_spill] sm:$0xff] }
 0x33c   : > { %v3217_v40 = vsub.f32 1.0, %v3141_v60  ;;  %v3596_v52 = vmul.f32 %v3520_v18, %v6476_v10  ;;  %v1038_v8 = vmul.f32 0.00390625, %v988_v38  ;;  %vm3293_vm6 = vcmp.lt.f32.partialorder %v6433_v32, 0.0  ;;  %v705_v10 = vpop.xlane.xlu1 %704  ;;  %v7760_v38 = vld [vmem:[#allocation43_spill] sm:$0xff] }
 0x33d   : > { %v3218_v24 = vsub.f32 1.0, %v3142_v19  ;;  %v2799_v41 = vmul.f32 %v1735_v57, %v1735_v57  ;;  %v6586_v43 = vmul.f32 0.70710677, %v6571_v26  ;;  %vm3294_vm7 = vcmp.lt.f32.partialorder %v6436_v29, 0.0 }
 0x33e   : > { %v3369_v53 = vsub.f32 0.0, %v3217_v40  ;;  %v4089_v49 = vpack.c.bf16 %v3596_v52, %v3595_v1  ;;  %v6590_v30 = vmul.f32 0.70710677, %v6578_v55  ;;  %v2800_v27 = vmul.f32 %v1736_v34, %v1736_v34  ;;  %v931_v39 = vpop.xlane.xlu0 %930 }
 0x33f   : > { %v3370_v12 = vsub.f32 0.0, %v3218_v24  ;;  %v1737_v16 = vand.u32 2147483647, %v6586_v43  ;;  %4410 = vrsqrt.f32 %v1265_v63  ;;  %v1621_v32 = vmul.f32 0.5, %v6427_v22  ;;  %v7758_v22 = vld [vmem:[#allocation39_spill] sm:$0xff] }
 0x340   : > { %v3445_v11 = vsel %vm3293_vm6, %v3369_v53, %v3217_v40  ;;  %3871 = vst [vmem:[%s5649_s9 + $0xe0] sm:$0xff] %v4089_v49  ;;  %v1738_v51 = vand.u32 2147483647, %v6590_v30  ;;  %v1622_v29 = vmul.f32 0.5, %v6430_v36  ;;  %v2875_v17 = vsub.f32 0.0, %v2799_v41  ;;  %v6605_v36 = vpop.xlane.xlu1 %764 }
 0x341   : > { %v3446_v48 = vsel %vm3294_vm7, %v3370_v12, %v3218_v24  ;;  %v3521_v14 = vadd.f32 1.0, %v3445_v11  ;;  %v1813_v28 = vmul.f32 0.3275911, %v1737_v16  ;;  %v1114_v45 = vsub.f32 %v1038_v8, %v1076_v62 }
 0x342   : > { %v3522_v57 = vadd.f32 1.0, %v3446_v48  ;;  %v1814_v5 = vmul.f32 0.3275911, %v1738_v51  ;;  %v2876_v34 = vsub.f32 0.0, %v2800_v27  ;;  %v1219_v50 = vsub.f32 %v7757_v6, %v6346_v3 }
 0x343   : > { %v3597_v42 = vmul.f32 %v3521_v14, %v1621_v32  ;;  %v1889_v46 = vadd.f32 1.0, %v1813_v28  ;;  %v1220_v4 = vsub.f32 %v7758_v22, %v6346_v3  ;;  %v6603_v33 = vmul.f32 0.00390625, %v702_v21 }
 0x344   : > { %v3598_v37 = vmul.f32 %v3522_v57, %v1622_v29  ;;  %v1890_v0 = vadd.f32 1.0, %v1814_v5  ;;  %v1221_v2 = vsub.f32 %v7759_v58, %v6394_v61  ;;  %v2971_v59 = vmul.f32 1.442695, %v2875_v17 }
 0x345   : > { %4412 = vrcp.f32 %v1889_v46  ;;  %v1222_v25 = vsub.f32 %v7760_v38, %v6394_v61  ;;  %v1152_v31 = vmax.f32 %v1114_v45, 0.0  ;;  %v6613_v3 = vmul.f32 0.00390625, %v705_v10  ;;  %v934_v10 = vpop.xlane.xlu1 %933 }
 0x346   : > { %v4090_v23 = vpack.c.bf16 %v3598_v37, %v3597_v42  ;;  %v6609_v35 = vpop.eup %4406  ;;  %4414 = vrcp.f32 %v1890_v0  ;;  %v2973_v18 = vmul.f32 1.442695, %v2876_v34  ;;  %v2801_v19 = vmul.f32 %v1737_v16, %v1737_v16  ;;  %v7761_v16 = vld [vmem:[#allocation44_spill] sm:$0xff]  ;;  %v991_v42 = vpop.xlane.xlu0 %990 }
 0x347   : > { %v6615_v21 = vpop.eup %4408  ;;  %v2115_v60 = vmul.f32 1.0614054, %v6609_v35  ;;  %v1019_v1 = vmul.f32 0.00390625, %v931_v39  ;;  %v6620_v40 = vmul.f32 0.5, %v6486_v9  ;;  %v2802_v52 = vmul.f32 %v1738_v51, %v1738_v51  ;;  %v7763_v0 = vld [vmem:[#allocation48_spill] sm:$0xff] }
 0x348   : > { %3872 = vst [vmem:[%s5649_s9 + $0xe8] sm:$0xff] %v4090_v23  ;;  %v2116_v63 = vmul.f32 1.0614054, %v6615_v21  ;;  %v1057_v24 = vmul.f32 %v6603_v33, %v6603_v33  ;;  %v6626_v62 = vmul.f32 0.5, %v6506_v44  ;;  %4416 = vpow2.f32 %v2971_v59 }
 0x349   : > { %v2191_v8 = vadd.f32 -1.4531521, %v2115_v60  ;;  %v6629_v53 = vmul.f32 0.5, %v6571_v26  ;;  %v6632_v49 = vmul.f32 0.5, %v6578_v55  ;;  %v1266_v9 = vadd.f32 1e-05, %v1152_v31 }
 0x34a   : > { %v2192_v41 = vadd.f32 -1.4531521, %v2116_v63  ;;  %v1095_v12 = vsub.f32 %v1019_v1, %v1057_v24  ;;  %4418 = vpow2.f32 %v2973_v18  ;;  %v2877_v27 = vsub.f32 0.0, %v2801_v19  ;;  %v7762_v26 = vld [vmem:[#allocation45_spill] sm:$0xff] }
 0x34b   : > { %v2267_v11 = vmul.f32 %v6609_v35, %v2191_v8  ;;  %v1183_v44 = vsub.f32 %v7761_v16, %v6603_v33  ;;  %v2878_v14 = vsub.f32 0.0, %v2802_v52  ;;  %v1184_v51 = vsub.f32 %v7762_v26, %v6603_v33  ;;  %v7764_v63 = vld [vmem:[#allocation49_spill] sm:$0xff] }
 0x34c   : > { %v4411_v32 = vpop.eup %4410  ;;  %v2268_v48 = vmul.f32 %v6615_v21, %v2192_v41  ;;  %v1133_v29 = vmax.f32 %v1095_v12, 0.0  ;;  %v1020_v28 = vmul.f32 0.00390625, %v934_v10  ;;  %4420 = vrsqrt.f32 %v1266_v9 }
 0x34d   : > { %v2343_v55 = vadd.f32 1.4214138, %v2267_v11  ;;  %v1371_v57 = vmul.f32 %v4411_v32, %v1219_v50  ;;  %v1372_v17 = vmul.f32 %v4411_v32, %v1220_v4  ;;  %v6641_v45 = vmul.f32 0.00390625, %v6592_v15 }
 0x34e   : > { %v2344_v5 = vadd.f32 1.4214138, %v2268_v48  ;;  %v1247_v37 = vadd.f32 1e-05, %v1133_v29  ;;  %v1058_v22 = vmul.f32 %v6613_v3, %v6613_v3  ;;  %v2975_v4 = vmul.f32 1.442695, %v2877_v27 }
 0x34f   : > { %v2419_v34 = vmul.f32 %v6609_v35, %v2343_v55  ;;  %v1459_v46 = vmul.f32 %v7714_v13, %v1371_v57  ;;  %v1460_v6 = vmul.f32 %v7715_v7, %v1372_v17  ;;  %v1185_v39 = vsub.f32 %v7763_v0, %v6613_v3 }
 0x350   : > { %v2420_v50 = vmul.f32 %v6615_v21, %v2344_v5  ;;  %v1039_v23 = vmul.f32 0.00390625, %v991_v42  ;;  %v1096_v60 = vsub.f32 %v1020_v28, %v1058_v22  ;;  %v2977_v1 = vmul.f32 1.442695, %v2878_v14 }
 0x351   : > { %v2495_v59 = vadd.f32 -0.28449672, %v2419_v34  ;;  %v6652_v15 = vadd.f32 %v7716_v54, %v1459_v46  ;;  %v6655_v31 = vadd.f32 %v7717_v20, %v1460_v6  ;;  %v1186_v52 = vsub.f32 %v7764_v63, %v6613_v3 }
 0x352   : > { %v6657_v18 = vpop.eup %4412  ;;  %v2496_v19 = vadd.f32 -0.28449672, %v2420_v50  ;;  %4422 = vrsqrt.f32 %v1247_v37  ;;  %v6666_v9 = vmul.f32 0.00390625, %v6605_v36  ;;  %v1077_v12 = vmul.f32 %v6641_v45, %v6641_v45  ;;  %v7765_v50 = vld [vmem:[#allocation46_spill] sm:$0xff] }
 0x353   : > { %v6661_v24 = vpop.eup %4414  ;;  %v2571_v8 = vmul.f32 %v6609_v35, %v2495_v59  ;;  %v2117_v41 = vmul.f32 1.0614054, %v6657_v18  ;;  %v6673_v27 = vmul.f32 0.70710677, %v6652_v15  ;;  %v6676_v32 = vmul.f32 0.70710677, %v6655_v31 }
 0x354   : > { %v2572_v10 = vmul.f32 %v6615_v21, %v2496_v19  ;;  %v2118_v11 = vmul.f32 1.0614054, %v6661_v24  ;;  %v1134_v29 = vmax.f32 %v1096_v60, 0.0  ;;  %v1115_v55 = vsub.f32 %v1039_v23, %v1077_v12 }
 0x355   : > { %v2647_v48 = vadd.f32 0.2548296, %v2571_v8  ;;  %v2193_v14 = vadd.f32 -1.4531521, %v2117_v41  ;;  %v4417_v57 = vpop.eup %4416  ;;  %vm3255_vm8 = vcmp.lt.f32.partialorder %v6512_v56, 0.0  ;;  %4424 = vpow2.f32 %v2975_v4 }
 0x356   : > { %v2648_v36 = vadd.f32 0.2548296, %v2572_v10  ;;  %v2194_v17 = vadd.f32 -1.4531521, %v2118_v11  ;;  %v1775_v28 = vand.u32 2147483647, %v6673_v27  ;;  %4426 = vpow2.f32 %v2977_v1 }
 0x357   : > { %v2723_v42 = vmul.f32 %v6609_v35, %v2647_v48  ;;  %vm3256_vm9 = vcmp.lt.f32.partialorder %v6550_v47, 0.0  ;;  %v2269_v5 = vmul.f32 %v6657_v18, %v2193_v14  ;;  %v1776_v37 = vand.u32 2147483647, %v6676_v32  ;;  %v4419_v34 = vpop.eup %4418 }
 0x358   : > { %v2724_v46 = vmul.f32 %v6615_v21, %v2648_v36  ;;  %v2270_v6 = vmul.f32 %v6661_v24, %v2194_v17  ;;  %v1851_v22 = vmul.f32 0.3275911, %v1775_v28  ;;  %v1223_v4 = vsub.f32 %v7765_v50, %v6641_v45  ;;  %v7766_v17 = vld [vmem:[#allocation47_spill] sm:$0xff] }
 0x359   : > { %v3103_v23 = vmul.f32 %v4417_v57, %v2723_v42  ;;  %v2345_v59 = vadd.f32 1.4214138, %v2269_v5  ;;  %v1852_v60 = vmul.f32 0.3275911, %v1776_v37  ;;  %v1153_v35 = vmax.f32 %v1115_v55, 0.0  ;;  %v4421_v1 = vpop.eup %4420 }
 0x35a   : > { %v3104_v19 = vmul.f32 %v4419_v34, %v2724_v46  ;;  %v2346_v8 = vadd.f32 1.4214138, %v2270_v6  ;;  %v1927_v41 = vadd.f32 1.0, %v1851_v22  ;;  %v1248_v12 = vadd.f32 1e-05, %v1134_v29 }
 0x35b   : > { %v3179_v10 = vsub.f32 1.0, %v3103_v23  ;;  %v2421_v11 = vmul.f32 %v6657_v18, %v2345_v59  ;;  %v1928_v48 = vadd.f32 1.0, %v1852_v60  ;;  %v2839_v21 = vmul.f32 %v1775_v28, %v1775_v28 }
 0x35c   : > { %v3180_v14 = vsub.f32 1.0, %v3104_v19  ;;  %v2422_v36 = vmul.f32 %v6661_v24, %v2346_v8  ;;  %4428 = vrcp.f32 %v1927_v41  ;;  %v1224_v57 = vsub.f32 %v7766_v17, %v6641_v45 }
 0x35d   : > { %v3331_v42 = vsub.f32 0.0, %v3179_v10  ;;  %v2497_v5 = vadd.f32 -0.28449672, %v2421_v11  ;;  %4430 = vrcp.f32 %v1928_v48  ;;  %v2840_v55 = vmul.f32 %v1776_v37, %v1776_v37 }
 0x35e   : > { %v3332_v34 = vsub.f32 0.0, %v3180_v14  ;;  %v2498_v46 = vadd.f32 -0.28449672, %v2422_v36  ;;  %4432 = vrsqrt.f32 %v1248_v12  ;;  %v1267_v29 = vadd.f32 1e-05, %v1153_v35 }
 0x35f   : > { %v4423_v6 = vpop.eup %4422  ;;  %v3407_v22 = vsel %vm3255_vm8, %v3331_v42, %v3179_v10  ;;  %v2573_v28 = vmul.f32 %v6657_v18, %v2497_v5  ;;  %v2915_v23 = vsub.f32 0.0, %v2839_v21  ;;  %v1373_v59 = vmul.f32 %v4421_v1, %v1221_v2  ;;  %v994_v10 = vpop.xlane.xlu1 %993 }
 0x360   : > { %v3408_v60 = vsel %vm3256_vm9, %v3332_v34, %v3180_v14  ;;  %v3483_v19 = vadd.f32 1.0, %v3407_v22  ;;  %v2574_v37 = vmul.f32 %v6661_v24, %v2498_v46  ;;  %v1374_v35 = vmul.f32 %v4421_v1, %v1222_v25  ;;  %v7767_v22 = vld [vmem:[#allocation50_spill] sm:$0xff] }
 0x361   : > { %v3484_v8 = vadd.f32 1.0, %v3408_v60  ;;  %v2649_v56 = vadd.f32 0.2548296, %v2573_v28  ;;  %v2916_v41 = vsub.f32 0.0, %v2840_v55  ;;  %v1461_v12 = vmul.f32 %v7714_v13, %v1373_v59 }
 0x362   : > { %v3559_v11 = vmul.f32 %v3483_v19, %v6620_v40  ;;  %v2650_v58 = vadd.f32 0.2548296, %v2574_v37  ;;  %vm3257_vm10 = vcmp.lt.f32.partialorder %v6586_v43, 0.0  ;;  %v1462_v47 = vmul.f32 %v7715_v7, %v1374_v35  ;;  %v4425_v48 = vpop.eup %4424 }
 0x363   : > { %v1335_v2 = vmul.f32 %v4423_v6, %v1183_v44  ;;  %v3560_v61 = vmul.f32 %v3484_v8, %v6626_v62  ;;  %v2725_v38 = vmul.f32 %v6657_v18, %v2649_v56  ;;  %vm3258_vm11 = vcmp.lt.f32.partialorder %v6590_v30, 0.0  ;;  %v4427_v1 = vpop.eup %4426 }
 0x364   : > { %v6715_v25 = vadd.f32 %v7716_v54, %v1461_v12  ;;  %v1336_v40 = vmul.f32 %v4423_v6, %v1184_v51  ;;  %v2726_v21 = vmul.f32 %v6661_v24, %v2650_v58  ;;  %v3051_v16 = vmul.f32 1.442695, %v2915_v23 }
 0x365   : > { %v6722_v44 = vadd.f32 %v7717_v20, %v1462_v47  ;;  %v1040_v62 = vmul.f32 0.00390625, %v994_v10  ;;  %v4071_v14 = vpack.c.bf16 %v3560_v61, %v3559_v11  ;;  %v3105_v18 = vmul.f32 %v4425_v48, %v2725_v38 }
 0x366   : > { %v3053_v36 = vmul.f32 1.442695, %v2916_v41  ;;  %v6725_v42 = vmul.f32 0.70710677, %v6715_v25  ;;  %v3106_v5 = vmul.f32 %v4427_v1, %v2726_v21  ;;  %v1423_v33 = vmul.f32 %v7714_v13, %v1335_v2 }
 0x367   : > { %v6728_v55 = vmul.f32 0.70710677, %v6722_v44  ;;  %v1078_v26 = vmul.f32 %v6666_v9, %v6666_v9  ;;  %3853 = vst [vmem:[%s5649_s9 + $0x50] sm:$0xff] %v4071_v14  ;;  %v3181_v51 = vsub.f32 1.0, %v3105_v18  ;;  %v1424_v34 = vmul.f32 %v7715_v7, %v1336_v40 }
 0x368   : > { %v1777_v24 = vand.u32 2147483647, %v6725_v42  ;;  %4434 = vrsqrt.f32 %v1267_v29  ;;  %v3182_v46 = vsub.f32 1.0, %v3106_v5  ;;  %v1225_v28 = vsub.f32 %v7767_v22, %v6666_v9 }
 0x369   : > { %4436 = vpow2.f32 %v3051_v16  ;;  %v1778_v6 = vand.u32 2147483647, %v6728_v55  ;;  %v6739_v23 = vpop.eup %4428  ;;  %v3333_v59 = vsub.f32 0.0, %v3181_v51  ;;  %v1116_v19 = vsub.f32 %v1040_v62, %v1078_v26 }
 0x36a   : > { %4438 = vpow2.f32 %v3053_v36  ;;  %v1853_v60 = vmul.f32 0.3275911, %v1777_v24  ;;  %v6741_v37 = vpop.eup %4430  ;;  %v3334_v35 = vsub.f32 0.0, %v3182_v46  ;;  %v2155_v8 = vmul.f32 1.0614054, %v6739_v23 }
 0x36b   : > { %v1854_v56 = vmul.f32 0.3275911, %v1778_v6  ;;  %v6745_v29 = vadd.f32 %v7716_v54, %v1423_v33  ;;  %v4433_v41 = vpop.eup %4432  ;;  %v3409_v12 = vsel %vm3257_vm10, %v3333_v59, %v3181_v51  ;;  %v2156_v10 = vmul.f32 1.0614054, %v6741_v37 }
 0x36c   : > { %v1929_v11 = vadd.f32 1.0, %v1853_v60  ;;  %v6751_v58 = vadd.f32 %v7717_v20, %v1424_v34  ;;  %v3410_v47 = vsel %vm3258_vm11, %v3334_v35, %v3182_v46  ;;  %v3485_v2 = vadd.f32 1.0, %v3409_v12  ;;  %v7768_v46 = vld [vmem:[#allocation51_spill] sm:$0xff] }
 0x36d   : > { %v2231_v48 = vadd.f32 -1.4531521, %v2155_v8  ;;  %v1930_v61 = vadd.f32 1.0, %v1854_v56  ;;  %v3486_v38 = vadd.f32 1.0, %v3410_v47  ;;  %v2232_v40 = vadd.f32 -1.4531521, %v2156_v10 }
 0x36e   : > { %4440 = vrcp.f32 %v1929_v11  ;;  %v2841_v1 = vmul.f32 %v1777_v24, %v1777_v24  ;;  %v3561_v21 = vmul.f32 %v3485_v2, %v6629_v53  ;;  %v1154_v16 = vmax.f32 %v1116_v19, 0.0 }
 0x36f   : > { %v2307_v43 = vmul.f32 %v6739_v23, %v2231_v48  ;;  %4442 = vrcp.f32 %v1930_v61  ;;  %v3562_v62 = vmul.f32 %v3486_v38, %v6632_v49  ;;  %v2308_v14 = vmul.f32 %v6741_v37, %v2232_v40 }
 0x370   : > { %v6760_v30 = vmul.f32 0.70710677, %v6745_v29  ;;  %v1337_v18 = vmul.f32 %v4433_v41, %v1185_v39  ;;  %v2842_v5 = vmul.f32 %v1778_v6, %v1778_v6  ;;  %v6766_v53 = vmul.f32 0.70710677, %v6751_v58 }
 0x371   : > { %v2383_v36 = vadd.f32 1.4214138, %v2307_v43  ;;  %v1338_v33 = vmul.f32 %v4433_v41, %v1186_v52  ;;  %v4072_v49 = vpack.c.bf16 %v3562_v62, %v3561_v21  ;;  %v2384_v26 = vadd.f32 1.4214138, %v2308_v14 }
 0x372   : > { %v2917_v51 = vsub.f32 0.0, %v2841_v1  ;;  %v1739_v24 = vand.u32 2147483647, %v6760_v30  ;;  %v1226_v0 = vsub.f32 %v7768_v46, %v6666_v9  ;;  %v1740_v39 = vand.u32 2147483647, %v6766_v53 }
 0x373   : > { %v2459_v34 = vmul.f32 %v6739_v23, %v2383_v36  ;;  %v1268_v6 = vadd.f32 1e-05, %v1154_v16  ;;  %3854 = vst [vmem:[%s5649_s9 + $0x58] sm:$0xff] %v4072_v49  ;;  %v6778_v59 = vmul.f32 0.5, %v6652_v15  ;;  %v2460_v3 = vmul.f32 %v6741_v37, %v2384_v26 }
 0x374   : > { %v1815_v63 = vmul.f32 0.3275911, %v1739_v24  ;;  %v1425_v52 = vmul.f32 %v7714_v13, %v1337_v18  ;;  %v2918_v35 = vsub.f32 0.0, %v2842_v5  ;;  %v1816_v8 = vmul.f32 0.3275911, %v1740_v39 }
 0x375   : > { %v4435_v60 = vpop.eup %4434  ;;  %v2535_v19 = vadd.f32 -0.28449672, %v2459_v34  ;;  %v1426_v56 = vmul.f32 %v7715_v7, %v1338_v33  ;;  %v2536_v12 = vadd.f32 -0.28449672, %v2460_v3  ;;  %v3055_v10 = vmul.f32 1.442695, %v2917_v51 }
 0x376   : > { %v4437_v41 = vpop.eup %4436  ;;  %v1891_v11 = vadd.f32 1.0, %v1815_v63  ;;  %v6784_v47 = vadd.f32 %v7716_v54, %v1425_v52  ;;  %v1892_v48 = vadd.f32 1.0, %v1816_v8  ;;  %v2803_v61 = vmul.f32 %v1739_v24, %v1739_v24 }
 0x377   : > { %v4439_v15 = vpop.eup %4438  ;;  %v2611_v2 = vmul.f32 %v6739_v23, %v2535_v19  ;;  %v6788_v38 = vadd.f32 %v7717_v20, %v1426_v56  ;;  %v6791_v40 = vmul.f32 0.5, %v6655_v31  ;;  %v2612_v1 = vmul.f32 %v6741_v37, %v2536_v12 }
 0x378   : > { %v6795_v21 = vmul.f32 0.5, %v6715_v25  ;;  %4444 = vrcp.f32 %v1891_v11  ;;  %v3057_v16 = vmul.f32 1.442695, %v2918_v35  ;;  %v2804_v62 = vmul.f32 %v1740_v39, %v1740_v39 }
 0x379   : > { %v2687_v43 = vadd.f32 0.2548296, %v2611_v2  ;;  %4446 = vrcp.f32 %v1892_v48  ;;  %v2688_v14 = vadd.f32 0.2548296, %v2612_v1  ;;  %vm3295_vm12 = vcmp.lt.f32.partialorder %v6673_v27, 0.0 }
 0x37a   : > { %v6799_v18 = vmul.f32 0.70710677, %v6784_v47  ;;  %v6802_v36 = vmul.f32 0.70710677, %v6788_v38  ;;  %4448 = vrsqrt.f32 %v1268_v6  ;;  %vm3296_vm13 = vcmp.lt.f32.partialorder %v6676_v32, 0.0 }
 0x37b   : > { %v6804_v31 = vpop.eup %4440  ;;  %v2763_v25 = vmul.f32 %v6739_v23, %v2687_v43  ;;  %v6809_v5 = vmul.f32 0.5, %v6722_v44  ;;  %4450 = vpow2.f32 %v3055_v10  ;;  %v2879_v33 = vsub.f32 0.0, %v2803_v61 }
 0x37c   : > { %v6811_v49 = vpop.eup %4442  ;;  %v2764_v26 = vmul.f32 %v6741_v37, %v2688_v14  ;;  %v2157_v51 = vmul.f32 1.0614054, %v6804_v31  ;;  %v1741_v24 = vand.u32 2147483647, %v6799_v18  ;;  %v1742_v34 = vand.u32 2147483647, %v6802_v36 }
 0x37d   : > { %v3143_v39 = vmul.f32 %v4437_v41, %v2763_v25  ;;  %v2158_v23 = vmul.f32 1.0614054, %v6811_v49  ;;  %4452 = vpow2.f32 %v3057_v16  ;;  %v2880_v6 = vsub.f32 0.0, %v2804_v62 }
 0x37e   : > { %v3144_v3 = vmul.f32 %v4439_v15, %v2764_v26  ;;  %v2233_v44 = vadd.f32 -1.4531521, %v2157_v51  ;;  %v1817_v63 = vmul.f32 0.3275911, %v1741_v24  ;;  %v1818_v52 = vmul.f32 0.3275911, %v1742_v34 }
 0x37f   : > { %v3219_v19 = vsub.f32 1.0, %v3143_v39  ;;  %v2234_v35 = vadd.f32 -1.4531521, %v2158_v23  ;;  %v2979_v8 = vmul.f32 1.442695, %v2879_v33  ;;  %v1375_v37 = vmul.f32 %v4435_v60, %v1223_v4 }
 0x380   : > { %v3220_v56 = vsub.f32 1.0, %v3144_v3  ;;  %v2309_v12 = vmul.f32 %v6804_v31, %v2233_v44  ;;  %v1893_v10 = vadd.f32 1.0, %v1817_v63  ;;  %v1894_v41 = vadd.f32 1.0, %v1818_v52 }
 0x381   : > { %v3371_v11 = vsub.f32 0.0, %v3219_v19  ;;  %v2310_v2 = vmul.f32 %v6811_v49, %v2234_v35  ;;  %v2805_v48 = vmul.f32 %v1741_v24, %v1741_v24  ;;  %v1376_v15 = vmul.f32 %v4435_v60, %v1224_v57 }
 0x382   : > { %v3372_v61 = vsub.f32 0.0, %v3220_v56  ;;  %v2385_v1 = vadd.f32 1.4214138, %v2309_v12  ;;  %4454 = vrcp.f32 %v1893_v10  ;;  %v2806_v43 = vmul.f32 %v1742_v34, %v1742_v34 }
 0x383   : > { %v3447_v50 = vsel %vm3295_vm12, %v3371_v11, %v3219_v19  ;;  %v2386_v4 = vadd.f32 1.4214138, %v2310_v2  ;;  %4456 = vrcp.f32 %v1894_v41  ;;  %v1463_v16 = vmul.f32 %v7714_v13, %v1375_v37 }
 0x384   : > { %v3448_v62 = vsel %vm3296_vm13, %v3372_v61, %v3220_v56  ;;  %v3523_v14 = vadd.f32 1.0, %v3447_v50  ;;  %v2461_v25 = vmul.f32 %v6804_v31, %v2385_v1  ;;  %v2981_v33 = vmul.f32 1.442695, %v2880_v6 }
 0x385   : > { %v6832_v45 = vpop.eup %4444  ;;  %v3524_v17 = vadd.f32 1.0, %v3448_v62  ;;  %v2462_v57 = vmul.f32 %v6811_v49, %v2386_v4  ;;  %v2881_v60 = vsub.f32 0.0, %v2805_v48  ;;  %v1464_v27 = vmul.f32 %v7715_v7, %v1376_v15 }
 0x386   : > { %v6836_v26 = vpop.eup %4446  ;;  %v3599_v51 = vmul.f32 %v3523_v14, %v6778_v59  ;;  %v2537_v24 = vadd.f32 -0.28449672, %v2461_v25  ;;  %v2119_v32 = vmul.f32 1.0614054, %v6832_v45  ;;  %v2882_v34 = vsub.f32 0.0, %v2806_v43 }
 0x387   : > { %v6840_v39 = vpop.eup %4448  ;;  %v3600_v23 = vmul.f32 %v3524_v17, %v6791_v40  ;;  %v2538_v6 = vadd.f32 -0.28449672, %v2462_v57  ;;  %v2120_v3 = vmul.f32 1.0614054, %v6836_v26  ;;  %v6845_v44 = vadd.f32 %v7716_v54, %v1463_v16 }
 0x388   : > { %v4451_v63 = vpop.eup %4450  ;;  %v2613_v52 = vmul.f32 %v6804_v31, %v2537_v24  ;;  %v2195_v19 = vadd.f32 -1.4531521, %v2119_v32  ;;  %4458 = vpow2.f32 %v2979_v8  ;;  %v6849_v59 = vadd.f32 %v7717_v20, %v1464_v27 }
 0x389   : > { %v4091_v35 = vpack.c.bf16 %v3600_v23, %v3599_v51  ;;  %v2614_v37 = vmul.f32 %v6811_v49, %v2538_v6  ;;  %v2196_v56 = vadd.f32 -1.4531521, %v2120_v3  ;;  %v2983_v40 = vmul.f32 1.442695, %v2881_v60 }
 0x38a   : > { %v4453_v12 = vpop.eup %4452  ;;  %v2689_v10 = vadd.f32 0.2548296, %v2613_v52  ;;  %v2271_v41 = vmul.f32 %v6832_v45, %v2195_v19  ;;  %v2985_v11 = vmul.f32 1.442695, %v2882_v34  ;;  %v6854_v2 = vmul.f32 0.70710677, %v6845_v44 }
 0x38b   : > { %3873 = vst [vmem:[%s5649_s9 + $0xf0] sm:$0xff] %v4091_v35  ;;  %v2690_v48 = vadd.f32 0.2548296, %v2614_v37  ;;  %vm3297_vm14 = vcmp.lt.f32.partialorder %v6725_v42, 0.0  ;;  %v2272_v8 = vmul.f32 %v6836_v26, %v2196_v56  ;;  %4460 = vpow2.f32 %v2981_v33 }
 0x38c   : > { %v6860_v15 = vmul.f32 0.70710677, %v6849_v59  ;;  %v2765_v61 = vmul.f32 %v6804_v31, %v2689_v10  ;;  %vm3298_vm15 = vcmp.lt.f32.partialorder %v6728_v55, 0.0  ;;  %v2347_v1 = vadd.f32 1.4214138, %v2271_v41 }
 0x38d   : > { %v1779_v43 = vand.u32 2147483647, %v6854_v2  ;;  %v2766_v50 = vmul.f32 %v6811_v49, %v2690_v48  ;;  %v2348_v4 = vadd.f32 1.4214138, %v2272_v8  ;;  %4462 = vpow2.f32 %v2983_v40 }
 0x38e   : > { %v1780_v16 = vand.u32 2147483647, %v6860_v15  ;;  %v3145_v62 = vmul.f32 %v4451_v63, %v2765_v61  ;;  %v2423_v14 = vmul.f32 %v6832_v45, %v2347_v1  ;;  %4464 = vpow2.f32 %v2985_v11 }
 0x38f   : > { %v1855_v25 = vmul.f32 0.3275911, %v1779_v43  ;;  %v6868_v33 = vpop.eup %4454  ;;  %v3146_v17 = vmul.f32 %v4453_v12, %v2766_v50  ;;  %v2424_v31 = vmul.f32 %v6836_v26, %v2348_v4  ;;  %v1377_v49 = vmul.f32 %v6840_v39, %v1225_v28 }
 0x390   : > { %v1856_v57 = vmul.f32 0.3275911, %v1780_v16  ;;  %v6875_v60 = vpop.eup %4456  ;;  %v3221_v27 = vsub.f32 1.0, %v3145_v62  ;;  %v2499_v51 = vadd.f32 -0.28449672, %v2423_v14  ;;  %v2843_v12 = vmul.f32 %v1779_v43, %v1779_v43 }
 0x391   : > { %v2121_v24 = vmul.f32 1.0614054, %v6868_v33  ;;  %v1931_v32 = vadd.f32 1.0, %v1855_v25  ;;  %v3222_v34 = vsub.f32 1.0, %v3146_v17  ;;  %v2500_v23 = vadd.f32 -0.28449672, %v2424_v31 }
 0x392   : > { %v2122_v6 = vmul.f32 1.0614054, %v6875_v60  ;;  %v1932_v3 = vadd.f32 1.0, %v1856_v57  ;;  %v3373_v63 = vsub.f32 0.0, %v3221_v27  ;;  %v2575_v52 = vmul.f32 %v6832_v45, %v2499_v51 }
 0x393   : > { %v2197_v19 = vadd.f32 -1.4531521, %v2121_v24  ;;  %4466 = vrcp.f32 %v1931_v32  ;;  %v3374_v22 = vsub.f32 0.0, %v3222_v34  ;;  %v2576_v28 = vmul.f32 %v6836_v26, %v2500_v23 }
 0x394   : > { %v2198_v35 = vadd.f32 -1.4531521, %v2122_v6  ;;  %4468 = vrcp.f32 %v1932_v3  ;;  %v3449_v37 = vsel %vm3297_vm14, %v3373_v63, %v3221_v27  ;;  %v2651_v56 = vadd.f32 0.2548296, %v2575_v52  ;;  %v708_v27 = vpop.xlane.xlu0 %707 }
 0x395   : > { %v2273_v40 = vmul.f32 %v6868_v33, %v2197_v19  ;;  %v4459_v10 = vpop.eup %4458  ;;  %v3450_v41 = vsel %vm3298_vm15, %v3374_v22, %v3222_v34  ;;  %v3525_v11 = vadd.f32 1.0, %v3449_v37  ;;  %v2652_v48 = vadd.f32 0.2548296, %v2576_v28 }
 0x396   : > { %v2274_v8 = vmul.f32 %v6875_v60, %v2198_v35  ;;  %v3526_v61 = vadd.f32 1.0, %v3450_v41  ;;  %v2727_v1 = vmul.f32 %v6832_v45, %v2651_v56  ;;  %v2844_v4 = vmul.f32 %v1780_v16, %v1780_v16 }
 0x397   : > { %v2349_v50 = vadd.f32 1.4214138, %v2273_v40  ;;  %v3601_v42 = vmul.f32 %v3525_v11, %v6795_v21  ;;  %v2728_v62 = vmul.f32 %v6836_v26, %v2652_v48  ;;  %v1378_v55 = vmul.f32 %v6840_v39, %v1226_v0 }
 0x398   : > { %v2350_v14 = vadd.f32 1.4214138, %v2274_v8  ;;  %v4461_v43 = vpop.eup %4460  ;;  %v3602_v25 = vmul.f32 %v3526_v61, %v6809_v5  ;;  %v1587_v17 = vmul.f32 0.5, %v6745_v29  ;;  %v3107_v31 = vmul.f32 %v4459_v10, %v2727_v1 }
 0x399   : > { %v2425_v45 = vmul.f32 %v6868_v33, %v2349_v50  ;;  %v3108_v16 = vmul.f32 %v4461_v43, %v2728_v62  ;;  %v2919_v57 = vsub.f32 0.0, %v2843_v12  ;;  %v1465_v26 = vmul.f32 %v7714_v13, %v1377_v49 }
 0x39a   : > { %v2426_v21 = vmul.f32 %v6875_v60, %v2350_v14  ;;  %v4463_v51 = vpop.eup %4462  ;;  %v4092_v9 = vpack.c.bf16 %v3602_v25, %v3601_v42  ;;  %v3183_v46 = vsub.f32 1.0, %v3107_v31  ;;  %v2920_v39 = vsub.f32 0.0, %v2844_v4 }
 0x39b   : > { %v2501_v0 = vadd.f32 -0.28449672, %v2425_v45  ;;  %v4465_v24 = vpop.eup %4464  ;;  %v3184_v5 = vsub.f32 1.0, %v3108_v16  ;;  %v1466_v29 = vmul.f32 %v7715_v7, %v1378_v55  ;;  %v6901_v34 = vadd.f32 %v7716_v54, %v1465_v26 }
 0x39c   : > { %v2502_v32 = vadd.f32 -0.28449672, %v2426_v21  ;;  %3874 = vst [vmem:[%s5649_s9 + $0xf8] sm:$0xff] %v4092_v9  ;;  %v1588_v23 = vmul.f32 0.5, %v6751_v58  ;;  %vm3259_vm0 = vcmp.lt.f32.partialorder %v6760_v30, 0.0  ;;  %v3335_v49 = vsub.f32 0.0, %v3183_v46  ;;  %v711_v58 = vpop.xlane.xlu1 %710 }
 0x39d   : > { %v2577_v6 = vmul.f32 %v6868_v33, %v2501_v0  ;;  %vm3260_vm1 = vcmp.lt.f32.partialorder %v6766_v53, 0.0  ;;  %v3336_v3 = vsub.f32 0.0, %v3184_v5  ;;  %v6910_v52 = vadd.f32 %v7717_v20, %v1466_v29  ;;  %v768_v53 = vpop.xlane.xlu0 %767 }
 0x39e   : > { %v2578_v63 = vmul.f32 %v6875_v60, %v2502_v32  ;;  %v3411_v19 = vsel %vm3259_vm0, %v3335_v49, %v3183_v46  ;;  %v3059_v28 = vmul.f32 1.442695, %v2919_v57  ;;  %v6913_v35 = vmul.f32 0.70710677, %v6901_v34 }
 0x39f   : > { %v2653_v22 = vadd.f32 0.2548296, %v2577_v6  ;;  %v3412_v30 = vsel %vm3260_vm1, %v3336_v3, %v3184_v5  ;;  %v3487_v56 = vadd.f32 1.0, %v3411_v19  ;;  %v3061_v12 = vmul.f32 1.442695, %v2920_v39 }
 0x3a0   : > { %v6915_v37 = vpop.eup %4466  ;;  %v2654_v40 = vadd.f32 0.2548296, %v2578_v63  ;;  %v3488_v41 = vadd.f32 1.0, %v3412_v30  ;;  %v6922_v8 = vmul.f32 0.70710677, %v6910_v52  ;;  %4470 = vpow2.f32 %v3059_v28 }
 0x3a1   : > { %v6917_v10 = vpop.eup %4468  ;;  %v2729_v11 = vmul.f32 %v6868_v33, %v2653_v22  ;;  %v2159_v48 = vmul.f32 1.0614054, %v6915_v37  ;;  %v3563_v61 = vmul.f32 %v3487_v56, %v1587_v17  ;;  %v1781_v4 = vand.u32 2147483647, %v6913_v35 }
 0x3a2   : > { %v2730_v1 = vmul.f32 %v6875_v60, %v2654_v40  ;;  %v2160_v50 = vmul.f32 1.0614054, %v6917_v10  ;;  %v3564_v42 = vmul.f32 %v3488_v41, %v1588_v23  ;;  %v1782_v55 = vand.u32 2147483647, %v6922_v8  ;;  %v6929_v60 = vpop.xlane.xlu1 %770 }
 0x3a3   : > { %v3109_v62 = vmul.f32 %v4463_v51, %v2729_v11  ;;  %v2235_v14 = vadd.f32 -1.4531521, %v2159_v48  ;;  %v1857_v25 = vmul.f32 0.3275911, %v1781_v4  ;;  %4472 = vpow2.f32 %v3061_v12  ;;  %v937_v51 = vpop.xlane.xlu0 %936 }
 0x3a4   : > { %v3110_v43 = vmul.f32 %v4465_v24, %v2730_v1  ;;  %v2236_v33 = vadd.f32 -1.4531521, %v2160_v50  ;;  %v4073_v31 = vpack.c.bf16 %v3564_v42, %v3563_v61  ;;  %v1858_v16 = vmul.f32 0.3275911, %v1782_v55 }
 0x3a5   : > { %v3185_v45 = vsub.f32 1.0, %v3109_v62  ;;  %v2311_v17 = vmul.f32 %v6915_v37, %v2235_v14  ;;  %v1933_v26 = vadd.f32 1.0, %v1857_v25  ;;  %v6933_v39 = vmul.f32 0.00390625, %v708_v27 }
 0x3a6   : > { %v3186_v21 = vsub.f32 1.0, %v3110_v43  ;;  %v2312_v57 = vmul.f32 %v6917_v10, %v2236_v33  ;;  %3855 = vst [vmem:[%s5649_s9 + $0x60] sm:$0xff] %v4073_v31  ;;  %v1934_v0 = vadd.f32 1.0, %v1858_v16  ;;  %vm3261_vm2 = vcmp.lt.f32.partialorder %v6799_v18, 0.0  ;;  %v940_v18 = vpop.xlane.xlu1 %939 }
 0x3a7   : > { %v3337_v9 = vsub.f32 0.0, %v3185_v45  ;;  %v2387_v46 = vadd.f32 1.4214138, %v2311_v17  ;;  %4474 = vrcp.f32 %v1933_v26  ;;  %vm3262_vm3 = vcmp.lt.f32.partialorder %v6802_v36, 0.0  ;;  %v997_v56 = vpop.xlane.xlu0 %996 }
 0x3a8   : > { %v3338_v24 = vsub.f32 0.0, %v3186_v21  ;;  %v2388_v5 = vadd.f32 1.4214138, %v2312_v57  ;;  %4476 = vrcp.f32 %v1934_v0  ;;  %v1589_v23 = vmul.f32 0.5, %v6784_v47 }
 0x3a9   : > { %v3413_v32 = vsel %vm3261_vm2, %v3337_v9, %v3185_v45  ;;  %v2463_v29 = vmul.f32 %v6915_v37, %v2387_v46  ;;  %v1590_v27 = vmul.f32 0.5, %v6788_v38  ;;  %v2845_v30 = vmul.f32 %v1781_v4, %v1781_v4 }
 0x3aa   : > { %v3414_v49 = vsel %vm3262_vm3, %v3338_v24, %v3186_v21  ;;  %v3489_v6 = vadd.f32 1.0, %v3413_v32  ;;  %v2464_v3 = vmul.f32 %v6917_v10, %v2388_v5  ;;  %v2846_v12 = vmul.f32 %v1782_v55, %v1782_v55  ;;  %v1000_v33 = vpop.xlane.xlu1 %999 }
 0x3ab   : > { %v3490_v63 = vadd.f32 1.0, %v3414_v49  ;;  %v2539_v19 = vadd.f32 -0.28449672, %v2463_v29  ;;  %v6942_v41 = vmul.f32 0.00390625, %v711_v58  ;;  %v6945_v11 = vmul.f32 0.00390625, %v768_v53  ;;  %v714_v17 = vpop.xlane.xlu0 %713 }
 0x3ac   : > { %v3565_v22 = vmul.f32 %v3489_v6, %v1589_v23  ;;  %v2540_v28 = vadd.f32 -0.28449672, %v2464_v3  ;;  %v1059_v38 = vmul.f32 %v6933_v39, %v6933_v39  ;;  %v1021_v48 = vmul.f32 0.00390625, %v937_v51 }
 0x3ad   : > { %v3566_v36 = vmul.f32 %v3490_v63, %v1590_v27  ;;  %v2615_v40 = vmul.f32 %v6915_v37, %v2539_v19  ;;  %v1627_v50 = vmul.f32 0.5, %v6845_v44  ;;  %v2921_v42 = vsub.f32 0.0, %v2845_v30  ;;  %v4471_v14 = vpop.eup %4470 }
 0x3ae   : > { %v2616_v47 = vmul.f32 %v6917_v10, %v2540_v28  ;;  %v1097_v62 = vsub.f32 %v1021_v48, %v1059_v38  ;;  %v2922_v55 = vsub.f32 0.0, %v2846_v12  ;;  %v1060_v53 = vmul.f32 %v6942_v41, %v6942_v41  ;;  %v717_v19 = vpop.xlane.xlu1 %716 }
 0x3af   : > { %v4074_v61 = vpack.c.bf16 %v3566_v36, %v3565_v22  ;;  %v2691_v1 = vadd.f32 0.2548296, %v2615_v40  ;;  %v1022_v43 = vmul.f32 0.00390625, %v940_v18  ;;  %v1079_v45 = vmul.f32 %v6945_v11, %v6945_v11  ;;  %v6969_v28 = vpop.xlane.xlu0 %773 }
 0x3b0   : > { %v2692_v4 = vadd.f32 0.2548296, %v2616_v47  ;;  %v1135_v31 = vmax.f32 %v1097_v62, 0.0  ;;  %v1041_v44 = vmul.f32 0.00390625, %v997_v56  ;;  %v4473_v16 = vpop.eup %4472  ;;  %v1628_v21 = vmul.f32 0.5, %v6849_v59 }
 0x3b1   : > { %3856 = vst [vmem:[%s5649_s9 + $0x68] sm:$0xff] %v4074_v61  ;;  %v2767_v58 = vmul.f32 %v6915_v37, %v2691_v1  ;;  %vm3299_vm4 = vcmp.lt.f32.partialorder %v6854_v2, 0.0  ;;  %v1098_v37 = vsub.f32 %v1022_v43, %v1060_v53  ;;  %v3063_v51 = vmul.f32 1.442695, %v2921_v42 }
 0x3b2   : > { %v2768_v25 = vmul.f32 %v6917_v10, %v2692_v4  ;;  %v1249_v9 = vadd.f32 1e-05, %v1135_v31  ;;  %v1117_v46 = vsub.f32 %v1041_v44, %v1079_v45  ;;  %v3065_v24 = vmul.f32 1.442695, %v2922_v55  ;;  %v6977_v42 = vpop.xlane.xlu1 %776  ;;  %v7770_v45 = vld [vmem:[#allocation53_spill] sm:$0xff] }
 0x3b3   : > { %v3147_v57 = vmul.f32 %v4471_v14, %v2767_v58  ;;  %v6962_v5 = vmul.f32 0.00390625, %v6929_v60  ;;  %v1136_v32 = vmax.f32 %v1098_v37, 0.0  ;;  %v1042_v63 = vmul.f32 0.00390625, %v1000_v33  ;;  %v7769_v14 = vld [vmem:[#allocation52_spill] sm:$0xff]  ;;  %v943_v55 = vpop.xlane.xlu0 %942 }
 0x3b4   : > { %v3148_v26 = vmul.f32 %v4473_v16, %v2768_v25  ;;  %v6959_v0 = vpop.eup %4474  ;;  %4478 = vrsqrt.f32 %v1249_v9  ;;  %v1155_v49 = vmax.f32 %v1117_v46, 0.0  ;;  %vm3300_vm5 = vcmp.lt.f32.partialorder %v6860_v15, 0.0  ;;  %v7771_v16 = vld [vmem:[#allocation56_spill] sm:$0xff] }
 0x3b5   : > { %v3223_v10 = vsub.f32 1.0, %v3147_v57  ;;  %v6964_v29 = vpop.eup %4476  ;;  %v2161_v59 = vmul.f32 1.0614054, %v6959_v0  ;;  %v1250_v27 = vadd.f32 1e-05, %v1136_v32  ;;  %v1080_v36 = vmul.f32 %v6962_v5, %v6962_v5 }
 0x3b6   : > { %v3224_v23 = vsub.f32 1.0, %v3148_v26  ;;  %v2162_v3 = vmul.f32 1.0614054, %v6964_v29  ;;  %v1269_v60 = vadd.f32 1e-05, %v1155_v49  ;;  %v1187_v58 = vsub.f32 %v7769_v14, %v6933_v39  ;;  %v7772_v26 = vld [vmem:[#allocation57_spill] sm:$0xff] }
 0x3b7   : > { %v3375_v6 = vsub.f32 0.0, %v3223_v10  ;;  %v2237_v22 = vadd.f32 -1.4531521, %v2161_v59  ;;  %4480 = vrsqrt.f32 %v1250_v27  ;;  %v1118_v48 = vsub.f32 %v1042_v63, %v1080_v36  ;;  %v7776_v59 = vld [vmem:[#allocation59_spill] sm:$0xff]  ;;  %v7778_v36 = vld [vmem:[#allocation61_spill] sm:$0xff] }
 0x3b8   : > { %v3376_v18 = vsub.f32 0.0, %v3224_v23  ;;  %v2238_v56 = vadd.f32 -1.4531521, %v2162_v3  ;;  %4482 = vpow2.f32 %v3063_v51  ;;  %v6983_v25 = vmul.f32 0.00390625, %v714_v17  ;;  %v946_v3 = vpop.xlane.xlu1 %945 }
 0x3b9   : > { %v3451_v30 = vsel %vm3299_vm4, %v3375_v6, %v3223_v10  ;;  %v2313_v47 = vmul.f32 %v6959_v0, %v2237_v22  ;;  %4484 = vpow2.f32 %v3065_v24  ;;  %v1156_v33 = vmax.f32 %v1118_v48, 0.0  ;;  %v7774_v10 = vld [vmem:[#allocation55_spill] sm:$0xff]  ;;  %v7775_v24 = vld [vmem:[#allocation58_spill] sm:$0xff] }
 0x3ba   : > { %v3452_v40 = vsel %vm3300_vm5, %v3376_v18, %v3224_v23  ;;  %v3527_v12 = vadd.f32 1.0, %v3451_v30  ;;  %v2314_v15 = vmul.f32 %v6964_v29, %v2238_v56  ;;  %4486 = vrsqrt.f32 %v1269_v60  ;;  %v7777_v30 = vld [vmem:[#allocation60_spill] sm:$0xff] }
 0x3bb   : > { %v3528_v38 = vadd.f32 1.0, %v3452_v40  ;;  %v2389_v1 = vadd.f32 1.4214138, %v2313_v47  ;;  %v1188_v44 = vsub.f32 %v7770_v45, %v6933_v39  ;;  %v6994_v57 = vmul.f32 0.5, %v6910_v52  ;;  %v7779_v45 = vld [vmem:[#allocation64_spill] sm:$0xff] }
 0x3bc   : > { %v3603_v61 = vmul.f32 %v3527_v12, %v1627_v50  ;;  %v2390_v4 = vadd.f32 1.4214138, %v2314_v15  ;;  %v6986_v50 = vmul.f32 0.5, %v6901_v34  ;;  %v1190_v51 = vsub.f32 %v7772_v26, %v6942_v41  ;;  %v7773_v34 = vld [vmem:[#allocation54_spill] sm:$0xff] }
 0x3bd   : > { %v3604_v2 = vmul.f32 %v3528_v38, %v1628_v21  ;;  %v2465_v62 = vmul.f32 %v6959_v0, %v2389_v1  ;;  %v1189_v21 = vsub.f32 %v7771_v16, %v6942_v41  ;;  %v1023_v17 = vmul.f32 0.00390625, %v943_v55 }
 0x3be   : > { %v2466_v43 = vmul.f32 %v6964_v29, %v2390_v4  ;;  %v1227_v46 = vsub.f32 %v7773_v34, %v6945_v11  ;;  %v1228_v39 = vsub.f32 %v7774_v10, %v6945_v11  ;;  %v1229_v32 = vsub.f32 %v7775_v24, %v6962_v5  ;;  %v7780_v34 = vld [vmem:[#allocation65_spill] sm:$0xff] }
 0x3bf   : > { %v4093_v53 = vpack.c.bf16 %v3604_v2, %v3603_v61  ;;  %v2541_v31 = vadd.f32 -0.28449672, %v2465_v62  ;;  %v1230_v49 = vsub.f32 %v7776_v59, %v6962_v5  ;;  %v1270_v6 = vadd.f32 1e-05, %v1156_v33 }
 0x3c0   : > { %v2542_v37 = vadd.f32 -0.28449672, %v2466_v43  ;;  %v1061_v41 = vmul.f32 %v6983_v25, %v6983_v25  ;;  %v7010_v22 = vmul.f32 0.00390625, %v717_v19  ;;  %vm3301_vm6 = vcmp.lt.f32.partialorder %v6913_v35, 0.0 }
 0x3c1   : > { %3875 = vst [vmem:[%s5649_s9 + $0x100] sm:$0xff] %v4093_v53  ;;  %v2617_v9 = vmul.f32 %v6959_v0, %v2541_v31  ;;  %v4479_v23 = vpop.eup %4478  ;;  %v1191_v56 = vsub.f32 %v7777_v30, %v6983_v25  ;;  %v1192_v40 = vsub.f32 %v7778_v36, %v6983_v25  ;;  %vm3302_vm7 = vcmp.lt.f32.partialorder %v6922_v8, 0.0  ;;  %v720_v53 = vpop.xlane.xlu0 %719 }
 0x3c2   : > { %v2618_v52 = vmul.f32 %v6964_v29, %v2542_v37  ;;  %v1339_v63 = vmul.f32 %v4479_v23, %v1187_v58  ;;  %v1340_v18 = vmul.f32 %v4479_v23, %v1188_v44  ;;  %v1099_v12 = vsub.f32 %v1023_v17, %v1061_v41 }
 0x3c3   : > { %v2693_v27 = vadd.f32 0.2548296, %v2617_v9  ;;  %v1024_v48 = vmul.f32 0.00390625, %v946_v3  ;;  %4488 = vrsqrt.f32 %v1270_v6  ;;  %v1062_v55 = vmul.f32 %v7010_v22, %v7010_v22 }
 0x3c4   : > { %v2694_v60 = vadd.f32 0.2548296, %v2618_v52  ;;  %v4481_v47 = vpop.eup %4480  ;;  %v1427_v15 = vmul.f32 %v7714_v13, %v1339_v63  ;;  %v1428_v19 = vmul.f32 %v7715_v7, %v1340_v18  ;;  %v1137_v37 = vmax.f32 %v1099_v12, 0.0 }
 0x3c5   : > { %v2769_v38 = vmul.f32 %v6959_v0, %v2693_v27  ;;  %v4483_v61 = vpop.eup %4482  ;;  %v1341_v2 = vmul.f32 %v4481_v47, %v1189_v21  ;;  %v1342_v4 = vmul.f32 %v4481_v47, %v1190_v51  ;;  %v1100_v26 = vsub.f32 %v1024_v48, %v1062_v55  ;;  %v723_v51 = vpop.xlane.xlu1 %722 }
 0x3c6   : > { %v2770_v1 = vmul.f32 %v6964_v29, %v2694_v60  ;;  %v4485_v62 = vpop.eup %4484  ;;  %v7023_v58 = vadd.f32 %v7716_v54, %v1427_v15  ;;  %v7026_v0 = vadd.f32 %v7717_v20, %v1428_v19  ;;  %v7042_v52 = vmul.f32 0.00390625, %v720_v53  ;;  %v949_v35 = vpop.xlane.xlu0 %948 }
 0x3c7   : > { %v3149_v14 = vmul.f32 %v4483_v61, %v2769_v38  ;;  %v4487_v43 = vpop.eup %4486  ;;  %v1429_v31 = vmul.f32 %v7714_v13, %v1341_v2  ;;  %v1430_v29 = vmul.f32 %v7715_v7, %v1342_v4  ;;  %v7048_v12 = vmul.f32 0.00390625, %v723_v51 }
 0x3c8   : > { %v3150_v33 = vmul.f32 %v4485_v62, %v2770_v1  ;;  %v7035_v21 = vmul.f32 0.70710677, %v7023_v58  ;;  %v7038_v9 = vmul.f32 0.70710677, %v7026_v0  ;;  %v1379_v27 = vmul.f32 %v4487_v43, %v1227_v46 }
 0x3c9   : > { %v3225_v16 = vsub.f32 1.0, %v3149_v14  ;;  %v1517_v3 = vadd.f32 %v7716_v54, %v1429_v31  ;;  %v1518_v60 = vadd.f32 %v7717_v20, %v1430_v29  ;;  %v1251_v15 = vadd.f32 1e-05, %v1137_v37 }
 0x3ca   : > { %v3226_v17 = vsub.f32 1.0, %v3150_v33  ;;  %v1743_v41 = vand.u32 2147483647, %v7035_v21  ;;  %v1744_v18 = vand.u32 2147483647, %v7038_v9  ;;  %v1138_v19 = vmax.f32 %v1100_v26, 0.0 }
 0x3cb   : > { %v3377_v6 = vsub.f32 0.0, %v3225_v16  ;;  %v1380_v46 = vmul.f32 %v4487_v43, %v1228_v39  ;;  %v7057_v62 = vmul.f32 0.70710677, %v1517_v3  ;;  %v1467_v14 = vmul.f32 %v7714_v13, %v1379_v27 }
 0x3cc   : > { %v3378_v63 = vsub.f32 0.0, %v3226_v17  ;;  %v1819_v38 = vmul.f32 0.3275911, %v1743_v41  ;;  %v1820_v1 = vmul.f32 0.3275911, %v1744_v18  ;;  %v2807_v33 = vmul.f32 %v1743_v41, %v1743_v41 }
 0x3cd   : > { %v3453_v47 = vsel %vm3301_vm6, %v3377_v6, %v3225_v16  ;;  %v7061_v31 = vmul.f32 0.70710677, %v1518_v60  ;;  %v2808_v29 = vmul.f32 %v1744_v18, %v1744_v18  ;;  %v1745_v11 = vand.u32 2147483647, %v7057_v62 }
 0x3ce   : > { %v3454_v48 = vsel %vm3302_vm7, %v3378_v63, %v3226_v17  ;;  %v3529_v61 = vadd.f32 1.0, %v3453_v47  ;;  %v1895_v4 = vadd.f32 1.0, %v1819_v38  ;;  %v1896_v53 = vadd.f32 1.0, %v1820_v1 }
 0x3cf   : > { %v3530_v2 = vadd.f32 1.0, %v3454_v48  ;;  %v1746_v10 = vand.u32 2147483647, %v7061_v31  ;;  %v7068_v39 = vmul.f32 %v7042_v52, %v7042_v52  ;;  %v7070_v43 = vmul.f32 0.00390625, %v949_v35 }
 0x3d0   : > { %v3605_v55 = vmul.f32 %v3529_v61, %v6986_v50  ;;  %4490 = vrcp.f32 %v1895_v4  ;;  %v4489_v50 = vpop.eup %4488  ;;  %v1821_v37 = vmul.f32 0.3275911, %v1745_v11  ;;  %v2809_v26 = vmul.f32 %v1745_v11, %v1745_v11 }
 0x3d1   : > { %v3606_v8 = vmul.f32 %v3530_v2, %v6994_v57  ;;  %4492 = vrcp.f32 %v1896_v53  ;;  %v2883_v57 = vsub.f32 0.0, %v2807_v33  ;;  %v1822_v51 = vmul.f32 0.3275911, %v1746_v10 }
 0x3d2   : > { %4494 = vrsqrt.f32 %v1251_v15  ;;  %v2810_v17 = vmul.f32 %v1746_v10, %v1746_v10  ;;  %v7072_v6 = vadd.f32 1e-05, %v1138_v19  ;;  %v2884_v41 = vsub.f32 0.0, %v2808_v29 }
 0x3d3   : > { %v4094_v16 = vpack.c.bf16 %v3606_v8, %v3605_v55  ;;  %v1897_v27 = vadd.f32 1.0, %v1821_v37  ;;  %v1468_v63 = vmul.f32 %v7715_v7, %v1380_v46  ;;  %v1555_v18 = vadd.f32 %v7716_v54, %v1467_v14 }
 0x3d4   : > { %v1898_v47 = vadd.f32 1.0, %v1822_v51  ;;  %v2885_v38 = vsub.f32 0.0, %v2809_v26  ;;  %v1381_v48 = vmul.f32 %v4489_v50, %v1229_v32  ;;  %v1382_v15 = vmul.f32 %v4489_v50, %v1230_v49 }
 0x3d5   : > { %3876 = vst [vmem:[%s5649_s9 + $0x108] sm:$0xff] %v4094_v16  ;;  %v7084_v19 = vmul.f32 0.5, %v7023_v58  ;;  %4496 = vrcp.f32 %v1897_v27  ;;  %v2886_v61 = vsub.f32 0.0, %v2810_v17  ;;  %v1556_v1 = vadd.f32 %v7717_v20, %v1468_v63 }
 0x3d6   : > { %v2987_v46 = vmul.f32 1.442695, %v2883_v57  ;;  %4498 = vrcp.f32 %v1898_v47  ;;  %v7087_v2 = vmul.f32 0.70710677, %v1555_v18  ;;  %v1469_v4 = vmul.f32 %v7714_v13, %v1381_v48 }
 0x3d7   : > { %v7091_v24 = vmul.f32 0.5, %v7026_v0  ;;  %v2989_v32 = vmul.f32 1.442695, %v2884_v41  ;;  %v7093_v14 = vmul.f32 0.70710677, %v1556_v1  ;;  %v1470_v5 = vmul.f32 %v7715_v7, %v1382_v15 }
 0x3d8   : > { %v7096_v59 = vmul.f32 0.5, %v1517_v3  ;;  %v2991_v49 = vmul.f32 1.442695, %v2885_v38  ;;  %v1783_v58 = vand.u32 2147483647, %v7087_v2  ;;  %v7100_v35 = vadd.f32 %v7716_v54, %v1469_v4 }
 0x3d9   : > { %v7102_v55 = vmul.f32 0.5, %v1518_v60  ;;  %v2993_v53 = vmul.f32 1.442695, %v2886_v61  ;;  %v1784_v33 = vand.u32 2147483647, %v7093_v14  ;;  %v7106_v0 = vadd.f32 %v7717_v20, %v1470_v5 }
 0x3da   : > { %4500 = vpow2.f32 %v2987_v46  ;;  %v1859_v8 = vmul.f32 0.3275911, %v1783_v58  ;;  %v2847_v29 = vmul.f32 %v1783_v58, %v1783_v58  ;;  %v7109_v3 = vmul.f32 0.70710677, %v7100_v35 }
 0x3db   : > { %4502 = vpow2.f32 %v2989_v32  ;;  %v7111_v11 = vmul.f32 0.5, %v1555_v18  ;;  %v1860_v10 = vmul.f32 0.3275911, %v1784_v33  ;;  %v7114_v50 = vmul.f32 0.70710677, %v7106_v0 }
 0x3dc   : > { %4504 = vpow2.f32 %v2991_v49  ;;  %v1935_v16 = vadd.f32 1.0, %v1859_v8  ;;  %v2848_v37 = vmul.f32 %v1784_v33, %v1784_v33  ;;  %v1785_v26 = vand.u32 2147483647, %v7109_v3 }
 0x3dd   : > { %v7116_v60 = vpop.eup %4490  ;;  %4506 = vpow2.f32 %v2993_v53  ;;  %v1936_v17 = vadd.f32 1.0, %v1860_v10  ;;  %v1786_v41 = vand.u32 2147483647, %v7114_v50  ;;  %v2923_v18 = vsub.f32 0.0, %v2847_v29 }
 0x3de   : > { %v7119_v57 = vpop.eup %4492  ;;  %v2123_v51 = vmul.f32 1.0614054, %v7116_v60  ;;  %4508 = vrcp.f32 %v1935_v16  ;;  %v1861_v47 = vmul.f32 0.3275911, %v1785_v26  ;;  %v7124_v48 = vmul.f32 0.5, %v1556_v1 }
 0x3df   : > { %v4495_v27 = vpop.eup %4494  ;;  %v2124_v63 = vmul.f32 1.0614054, %v7119_v57  ;;  %4510 = vrcp.f32 %v1936_v17  ;;  %v1862_v15 = vmul.f32 0.3275911, %v1786_v41  ;;  %v2924_v46 = vsub.f32 0.0, %v2848_v37 }
 0x3e0   : > { %v2199_v38 = vadd.f32 -1.4531521, %v2123_v51  ;;  %v1937_v4 = vadd.f32 1.0, %v1861_v47  ;;  %v2849_v32 = vmul.f32 %v1785_v26, %v1785_v26  ;;  %v2850_v58 = vmul.f32 %v1786_v41, %v1786_v41 }
 0x3e1   : > { %v2200_v61 = vadd.f32 -1.4531521, %v2124_v63  ;;  %v1938_v49 = vadd.f32 1.0, %v1862_v15  ;;  %v1343_v53 = vmul.f32 %v4495_v27, %v1191_v56  ;;  %v3067_v1 = vmul.f32 1.442695, %v2923_v18 }
 0x3e2   : > { %v2275_v5 = vmul.f32 %v7116_v60, %v2199_v38  ;;  %v7130_v33 = vpop.eup %4496  ;;  %4512 = vrcp.f32 %v1937_v4  ;;  %v2925_v29 = vsub.f32 0.0, %v2849_v32  ;;  %v2926_v26 = vsub.f32 0.0, %v2850_v58 }
 0x3e3   : > { %v2276_v8 = vmul.f32 %v7119_v57, %v2200_v61  ;;  %v7133_v10 = vpop.eup %4498  ;;  %v2125_v37 = vmul.f32 1.0614054, %v7130_v33  ;;  %4514 = vrcp.f32 %v1938_v49  ;;  %v3069_v41 = vmul.f32 1.442695, %v2924_v46 }
 0x3e4   : > { %v2351_v16 = vadd.f32 1.4214138, %v2275_v5  ;;  %v2126_v17 = vmul.f32 1.0614054, %v7133_v10  ;;  %v1344_v30 = vmul.f32 %v4495_v27, %v1192_v40  ;;  %v3071_v18 = vmul.f32 1.442695, %v2925_v29 }
 0x3e5   : > { %v2352_v51 = vadd.f32 1.4214138, %v2276_v8  ;;  %v2201_v63 = vadd.f32 -1.4531521, %v2125_v37  ;;  %v1431_v47 = vmul.f32 %v7714_v13, %v1343_v53  ;;  %v3073_v61 = vmul.f32 1.442695, %v2926_v26 }
 0x3e6   : > { %v2427_v56 = vmul.f32 %v7116_v60, %v2351_v16  ;;  %v2202_v15 = vadd.f32 -1.4531521, %v2126_v17  ;;  %v1432_v4 = vmul.f32 %v7715_v7, %v1344_v30  ;;  %4516 = vpow2.f32 %v3067_v1 }
 0x3e7   : > { %v2428_v38 = vmul.f32 %v7119_v57, %v2352_v51  ;;  %v4501_v32 = vpop.eup %4500  ;;  %v2277_v46 = vmul.f32 %v7130_v33, %v2201_v63  ;;  %v7146_v25 = vadd.f32 %v7716_v54, %v1431_v47  ;;  %4518 = vpow2.f32 %v3069_v41 }
 0x3e8   : > { %v2503_v5 = vadd.f32 -0.28449672, %v2427_v56  ;;  %v4503_v36 = vpop.eup %4502  ;;  %v2278_v27 = vmul.f32 %v7133_v10, %v2202_v15  ;;  %v7150_v49 = vadd.f32 %v7717_v20, %v1432_v4  ;;  %4520 = vpow2.f32 %v3071_v18 }
 0x3e9   : > { %7781 = vst [vmem:[#allocation75_spill] sm:$0xff] %v7146_v25  ;;  %v2504_v40 = vadd.f32 -0.28449672, %v2428_v38  ;;  %v4505_v58 = vpop.eup %4504  ;;  %v2353_v8 = vadd.f32 1.4214138, %v2277_v46  ;;  %4522 = vpow2.f32 %v3073_v61  ;;  %vm3263_vm8 = vcmp.lt.f32.partialorder %v7035_v21, 0.0 }
 0x3ea   : > { %7782 = vst [vmem:[#allocation11_spill] sm:$0xff] %v7150_v49  ;;  %v2579_v53 = vmul.f32 %v7116_v60, %v2503_v5  ;;  %v7154_v29 = vmul.f32 0.70710677, %v7146_v25  ;;  %v4507_v1 = vpop.eup %4506  ;;  %v2354_v37 = vadd.f32 1.4214138, %v2278_v27  ;;  %4524 = vrsqrt.f32 %v7072_v6 }
 0x3eb   : > { %v2580_v16 = vmul.f32 %v7119_v57, %v2504_v40  ;;  %v7158_v26 = vmul.f32 0.70710677, %v7150_v49  ;;  %v7160_v51 = vpop.eup %4508  ;;  %v2429_v41 = vmul.f32 %v7130_v33, %v2353_v8  ;;  %vm3264_vm9 = vcmp.lt.f32.partialorder %v7038_v9, 0.0 }
 0x3ec   : > { %7783 = vst [vmem:[#allocation76_spill] sm:$0xff] %v7154_v29  ;;  %v2655_v17 = vadd.f32 0.2548296, %v2579_v53  ;;  %v7164_v30 = vand.u32 2147483647, %v7154_v29  ;;  %v7167_v56 = vpop.eup %4510  ;;  %v2430_v18 = vmul.f32 %v7133_v10, %v2354_v37  ;;  %vm3265_vm10 = vcmp.lt.f32.partialorder %v7057_v62, 0.0 }
 0x3ed   : > { %7784 = vst [vmem:[#allocation12_spill] sm:$0xff] %v7158_v26  ;;  %v2656_v63 = vadd.f32 0.2548296, %v2580_v16  ;;  %v2163_v47 = vmul.f32 1.0614054, %v7160_v51  ;;  %vm3266_vm11 = vcmp.lt.f32.partialorder %v7061_v31, 0.0 }
 0x3ee   : > { %v7173_v38 = vand.u32 2147483647, %v7158_v26  ;;  %v2731_v15 = vmul.f32 %v7116_v60, %v2655_v17  ;;  %v2505_v61 = vadd.f32 -0.28449672, %v2429_v41  ;;  %v2164_v4 = vmul.f32 1.0614054, %v7167_v56 }
 0x3ef   : > { %v1823_v6 = vmul.f32 0.3275911, %v7164_v30  ;;  %v2732_v5 = vmul.f32 %v7119_v57, %v2656_v63  ;;  %v2506_v46 = vadd.f32 -0.28449672, %v2430_v18  ;;  %v2239_v40 = vadd.f32 -1.4531521, %v2163_v47  ;;  %v7181_v53 = vpop.eup %4512 }
 0x3f0   : > { %v1824_v27 = vmul.f32 0.3275911, %v7173_v38  ;;  %v3111_v8 = vmul.f32 %v4501_v32, %v2731_v15  ;;  %v2581_v16 = vmul.f32 %v7130_v33, %v2505_v61  ;;  %v2240_v37 = vadd.f32 -1.4531521, %v2164_v4  ;;  %v7184_v17 = vpop.eup %4514 }
 0x3f1   : > { %v1899_v60 = vadd.f32 1.0, %v1823_v6  ;;  %v3112_v41 = vmul.f32 %v4503_v36, %v2732_v5  ;;  %v2582_v23 = vmul.f32 %v7133_v10, %v2506_v46  ;;  %v2315_v44 = vmul.f32 %v7160_v51, %v2239_v40 }
 0x3f2   : > { %v2165_v57 = vmul.f32 1.0614054, %v7181_v53  ;;  %v3187_v63 = vsub.f32 1.0, %v3111_v8  ;;  %v2657_v18 = vadd.f32 0.2548296, %v2581_v16  ;;  %v2316_v47 = vmul.f32 %v7167_v56, %v2240_v37 }
 0x3f3   : > { %v2166_v26 = vmul.f32 1.0614054, %v7184_v17  ;;  %v3188_v32 = vsub.f32 1.0, %v3112_v41  ;;  %v2658_v15 = vadd.f32 0.2548296, %v2582_v23  ;;  %v1900_v4 = vadd.f32 1.0, %v1824_v27  ;;  %v4517_v40 = vpop.eup %4516 }
 0x3f4   : > { %v2391_v61 = vadd.f32 1.4214138, %v2315_v44  ;;  %v3339_v6 = vsub.f32 0.0, %v3187_v63  ;;  %v2733_v36 = vmul.f32 %v7130_v33, %v2657_v18  ;;  %v2392_v5 = vadd.f32 1.4214138, %v2316_v47  ;;  %v4519_v41 = vpop.eup %4518 }
 0x3f5   : > { %v2241_v46 = vadd.f32 -1.4531521, %v2165_v57  ;;  %v3340_v8 = vsub.f32 0.0, %v3188_v32  ;;  %v2734_v16 = vmul.f32 %v7133_v10, %v2658_v15  ;;  %v2242_v29 = vadd.f32 -1.4531521, %v2166_v26  ;;  %v7200_v18 = vpop.eup %4520 }
 0x3f6   : > { %v2467_v37 = vmul.f32 %v7160_v51, %v2391_v61  ;;  %v3415_v23 = vsel %vm3263_vm8, %v3339_v6, %v3187_v63  ;;  %v3113_v44 = vmul.f32 %v4505_v58, %v2733_v36  ;;  %v2468_v27 = vmul.f32 %v7167_v56, %v2392_v5  ;;  %v4523_v15 = vpop.eup %4522 }
 0x3f7   : > { %v2317_v33 = vmul.f32 %v7181_v53, %v2241_v46  ;;  %v3416_v57 = vsel %vm3264_vm9, %v3340_v8, %v3188_v32  ;;  %v3491_v47 = vadd.f32 1.0, %v3415_v23  ;;  %v3114_v49 = vmul.f32 %v4507_v1, %v2734_v16  ;;  %v4525_v63 = vpop.eup %4524 }
 0x3f8   : > { %v2543_v10 = vadd.f32 -0.28449672, %v2467_v37  ;;  %v3492_v61 = vadd.f32 1.0, %v3416_v57  ;;  %v3189_v26 = vsub.f32 1.0, %v3113_v44  ;;  %v2544_v25 = vadd.f32 -0.28449672, %v2468_v27 }
 0x3f9   : > { %v2318_v21 = vmul.f32 %v7184_v17, %v2242_v29  ;;  %v3567_v58 = vmul.f32 %v3491_v47, %v7084_v19  ;;  %v3190_v6 = vsub.f32 1.0, %v3114_v49  ;;  %v2393_v5 = vadd.f32 1.4214138, %v2317_v33 }
 0x3fa   : > { %v2619_v36 = vmul.f32 %v7160_v51, %v2543_v10  ;;  %v3568_v46 = vmul.f32 %v3492_v61, %v7091_v24  ;;  %v3341_v9 = vsub.f32 0.0, %v3189_v26  ;;  %v2620_v1 = vmul.f32 %v7167_v56, %v2544_v25 }
 0x3fb   : > { %v2394_v32 = vadd.f32 1.4214138, %v2318_v21  ;;  %v3342_v8 = vsub.f32 0.0, %v3190_v6  ;;  %v2469_v37 = vmul.f32 %v7181_v53, %v2393_v5  ;;  %4526 = vrcp.f32 %v1899_v60 }
 0x3fc   : > { %v2695_v16 = vadd.f32 0.2548296, %v2619_v36  ;;  %v4075_v29 = vpack.c.bf16 %v3568_v46, %v3567_v58  ;;  %v3417_v19 = vsel %vm3265_vm10, %v3341_v9, %v3189_v26  ;;  %v2696_v49 = vadd.f32 0.2548296, %v2620_v1 }
 0x3fd   : > { %v2470_v23 = vmul.f32 %v7184_v17, %v2394_v32  ;;  %v3418_v24 = vsel %vm3266_vm11, %v3342_v8, %v3190_v6  ;;  %v3493_v44 = vadd.f32 1.0, %v3417_v19  ;;  %v2545_v25 = vadd.f32 -0.28449672, %v2469_v37 }
 0x3fe   : > { %v2771_v27 = vmul.f32 %v7160_v51, %v2695_v16  ;;  %3857 = vst [vmem:[%s5649_s9 + $0x70] sm:$0xff] %v4075_v29  ;;  %v3494_v33 = vadd.f32 1.0, %v3418_v24  ;;  %v2772_v57 = vmul.f32 %v7167_v56, %v2696_v49  ;;  %4528 = vrcp.f32 %v1900_v4 }
 0x3ff   : > { %v2546_v47 = vadd.f32 -0.28449672, %v2470_v23  ;;  %v3569_v60 = vmul.f32 %v3493_v44, %v7096_v59  ;;  %vm3303_vm12 = vcmp.lt.f32.partialorder %v7087_v2, 0.0  ;;  %v2621_v10 = vmul.f32 %v7181_v53, %v2545_v25 }
 0x400   : > { %v3151_v62 = vmul.f32 %v4517_v40, %v2771_v27  ;;  %v3570_v31 = vmul.f32 %v3494_v33, %v7102_v55  ;;  %v3152_v61 = vmul.f32 %v4519_v41, %v2772_v57  ;;  %v2811_v26 = vmul.f32 %v7164_v30, %v7164_v30 }
 0x401   : > { %v2622_v51 = vmul.f32 %v7184_v17, %v2546_v47  ;;  %vm3304_vm13 = vcmp.lt.f32.partialorder %v7093_v14, 0.0  ;;  %v1633_v56 = vmul.f32 0.5, %v7100_v35  ;;  %v2697_v59 = vadd.f32 0.2548296, %v2621_v10  ;;  %v952_v10 = vpop.xlane.xlu1 %951 }
 0x402   : > { %v3227_v21 = vsub.f32 1.0, %v3151_v62  ;;  %v4076_v4 = vpack.c.bf16 %v3570_v31, %v3569_v60  ;;  %v3228_v40 = vsub.f32 1.0, %v3152_v61  ;;  %v2812_v6 = vmul.f32 %v7173_v38, %v7173_v38 }
 0x403   : > { %v2698_v58 = vadd.f32 0.2548296, %v2622_v51  ;;  %v1634_v41 = vmul.f32 0.5, %v7106_v0  ;;  %v2773_v36 = vmul.f32 %v7181_v53, %v2697_v59  ;;  %v7785_v30 = vsub.f32 %v7779_v45, %v7010_v22 }
 0x404   : > { %v3379_v55 = vsub.f32 0.0, %v3227_v21  ;;  %3858 = vst [vmem:[%s5649_s9 + $0x78] sm:$0xff] %v4076_v4  ;;  %v3380_v46 = vsub.f32 0.0, %v3228_v40  ;;  %v2887_v9 = vsub.f32 0.0, %v2811_v26  ;;  %v7786_v1 = vsub.f32 %v7780_v34, %v7010_v22 }
 0x405   : > { %v1345_v5 = vmul.f32 %v4525_v63, %v7785_v30  ;;  %v2774_v35 = vmul.f32 %v7184_v17, %v2698_v58  ;;  %v3153_v0 = vmul.f32 %v7200_v18, %v2773_v36  ;;  %vm3305_vm14 = vcmp.lt.f32.partialorder %v7109_v3, 0.0 }
 0x406   : > { %v1346_v32 = vmul.f32 %v4525_v63, %v7786_v1  ;;  %v3455_v38 = vsel %vm3303_vm12, %v3379_v55, %v3227_v21  ;;  %v3456_v45 = vsel %vm3304_vm13, %v3380_v46, %v3228_v40  ;;  %v2888_v17 = vsub.f32 0.0, %v2812_v6 }
 0x407   : > { %v1433_v53 = vmul.f32 %v7714_v13, %v1345_v5  ;;  %v3531_v8 = vadd.f32 1.0, %v3455_v38  ;;  %v3154_v16 = vmul.f32 %v4523_v15, %v2774_v35  ;;  %v3532_v37 = vadd.f32 1.0, %v3456_v45 }
 0x408   : > { %v3229_v29 = vsub.f32 1.0, %v3153_v0  ;;  %v1434_v22 = vmul.f32 %v7715_v7, %v1346_v32  ;;  %v7250_v2 = vpop.eup %4526  ;;  %v2995_v19 = vmul.f32 1.442695, %v2887_v9  ;;  %v1101_v14 = vsub.f32 %v7070_v43, %v7068_v39  ;;  %v1003_v9 = vpop.xlane.xlu0 %1002 }
 0x409   : > { %v7248_v34 = vadd.f32 %v7716_v54, %v1433_v53  ;;  %v3607_v18 = vmul.f32 %v3531_v8, %v7111_v11  ;;  %v3230_v63 = vsub.f32 1.0, %v3154_v16  ;;  %v3608_v49 = vmul.f32 %v3532_v37, %v7124_v48 }
 0x40a   : > { %v3381_v15 = vsub.f32 0.0, %v3229_v29  ;;  %v2127_v23 = vmul.f32 1.0614054, %v7250_v2  ;;  %v7258_v24 = vadd.f32 %v7717_v20, %v1434_v22  ;;  %vm3306_vm15 = vcmp.lt.f32.partialorder %v7114_v50, 0.0 }
 0x40b   : > { %v3382_v44 = vsub.f32 0.0, %v3230_v63  ;;  %v2997_v27 = vmul.f32 1.442695, %v2888_v17  ;;  %v7262_v11 = vmul.f32 0.70710677, %v7248_v34  ;;  %v4529_v25 = vpop.eup %4528  ;;  %v4095_v33 = vpack.c.bf16 %v3608_v49, %v3607_v18 }
 0x40c   : > { %v3457_v39 = vsel %vm3305_vm14, %v3381_v15, %v3229_v29  ;;  %v2203_v43 = vadd.f32 -1.4531521, %v2127_v23  ;;  %v1139_v48 = vmax.f32 %v1101_v14, 0.0  ;;  %v2128_v60 = vmul.f32 1.0614054, %v4529_v25  ;;  %v1006_v14 = vpop.xlane.xlu1 %1005 }
 0x40d   : > { %v3458_v57 = vsel %vm3306_vm15, %v3382_v44, %v3230_v63  ;;  %v3533_v47 = vadd.f32 1.0, %v3457_v39  ;;  %v7267_v62 = vmul.f32 0.70710677, %v7258_v24  ;;  %3877 = vst [vmem:[%s5649_s9 + $0x110] sm:$0xff] %v4095_v33  ;;  %4530 = vpow2.f32 %v2995_v19 }
 0x40e   : > { %v3534_v50 = vadd.f32 1.0, %v3458_v57  ;;  %v2279_v31 = vmul.f32 %v7250_v2, %v2203_v43  ;;  %v1749_v61 = vand.u32 2147483647, %v7262_v11  ;;  %v7273_v3 = vmul.f32 0.00390625, %v6969_v28 }
 0x40f   : > { %v3609_v51 = vmul.f32 %v3533_v47, %v1633_v56  ;;  %v2204_v26 = vadd.f32 -1.4531521, %v2128_v60  ;;  %v1750_v21 = vand.u32 2147483647, %v7267_v62  ;;  %v1026_v58 = vmul.f32 0.00390625, %v952_v10  ;;  %v7787_v47 = vld [vmem:[#allocation68_spill] sm:$0xff] }
 0x410   : > { %v3610_v59 = vmul.f32 %v3534_v50, %v1634_v41  ;;  %v2355_v4 = vadd.f32 1.4214138, %v2279_v31  ;;  %v1825_v40 = vmul.f32 0.3275911, %v1749_v61  ;;  %4532 = vpow2.f32 %v2997_v27  ;;  %v7788_v10 = vld [vmem:[#allocation75_spill] sm:$0xff] }
 0x411   : > { %v2280_v6 = vmul.f32 %v4529_v25, %v2204_v26  ;;  %v1826_v55 = vmul.f32 0.3275911, %v1750_v21  ;;  %v1253_v36 = vadd.f32 1e-05, %v1139_v48  ;;  %v1064_v28 = vmul.f32 %v7048_v12, %v7048_v12 }
 0x412   : > { %v4096_v30 = vpack.c.bf16 %v3610_v59, %v3609_v51  ;;  %v2431_v5 = vmul.f32 %v7250_v2, %v2355_v4  ;;  %v1901_v46 = vadd.f32 1.0, %v1825_v40  ;;  %v1081_v53 = vmul.f32 %v7273_v3, %v7273_v3  ;;  %v7791_v59 = vld [vmem:[#allocation76_spill] sm:$0xff] }
 0x413   : > { %v2356_v56 = vadd.f32 1.4214138, %v2280_v6  ;;  %v1902_v35 = vadd.f32 1.0, %v1826_v55  ;;  %4534 = vrsqrt.f32 %v1253_v36  ;;  %v1102_v1 = vsub.f32 %v1026_v58, %v1064_v28 }
 0x414   : > { %3878 = vst [vmem:[%s5649_s9 + $0x118] sm:$0xff] %v4096_v30  ;;  %v2507_v41 = vadd.f32 -0.28449672, %v2431_v5  ;;  %4536 = vrcp.f32 %v1901_v46  ;;  %v1043_v45 = vmul.f32 0.00390625, %v1003_v9  ;;  %v2813_v17 = vmul.f32 %v1749_v61, %v1749_v61  ;;  %v7789_v61 = vld [vmem:[#allocation69_spill] sm:$0xff] }
 0x415   : > { %v2432_v32 = vmul.f32 %v4529_v25, %v2356_v56  ;;  %4538 = vrcp.f32 %v1902_v35  ;;  %v1140_v0 = vmax.f32 %v1102_v1, 0.0  ;;  %v2814_v63 = vmul.f32 %v1750_v21, %v1750_v21  ;;  %v7790_v21 = vld [vmem:[#allocation11_spill] sm:$0xff]  ;;  %v7792_v1 = vld [vmem:[#allocation12_spill] sm:$0xff] }
 0x416   : > { %v2583_v38 = vmul.f32 %v7250_v2, %v2507_v41  ;;  %v1119_v29 = vsub.f32 %v1043_v45, %v1081_v53  ;;  %v7285_v15 = vmul.f32 0.00390625, %v6977_v42  ;;  %v2889_v27 = vsub.f32 0.0, %v2813_v17 }
 0x417   : > { %v2508_v8 = vadd.f32 -0.28449672, %v2432_v32  ;;  %v1254_v37 = vadd.f32 1e-05, %v1140_v0  ;;  %v1044_v39 = vmul.f32 0.00390625, %v1006_v14  ;;  %v2890_v57 = vsub.f32 0.0, %v2814_v63 }
 0x418   : > { %v2659_v16 = vadd.f32 0.2548296, %v2583_v38  ;;  %v1157_v19 = vmax.f32 %v1119_v29, 0.0  ;;  %v1195_v60 = vsub.f32 %v7787_v47, %v7042_v52  ;;  %v1595_v50 = vmul.f32 0.5, %v7788_v10  ;;  %v7793_v63 = vld [vmem:[#allocation70_spill] sm:$0xff] }
 0x419   : > { %v2584_v22 = vmul.f32 %v4529_v25, %v2508_v8  ;;  %4540 = vrsqrt.f32 %v1254_v37  ;;  %v1196_v51 = vsub.f32 %v7789_v61, %v7042_v52  ;;  %v1082_v42 = vmul.f32 %v7285_v15, %v7285_v15 }
 0x41a   : > { %v2735_v18 = vmul.f32 %v7250_v2, %v2659_v16  ;;  %v4531_v49 = vpop.eup %4530  ;;  %v1271_v2 = vadd.f32 1e-05, %v1157_v19  ;;  %vm3267_vm0 = vcmp.lt.f32.partialorder %v7791_v59, 0.0  ;;  %v2999_v40 = vmul.f32 1.442695, %v2889_v27 }
 0x41b   : > { %v2660_v23 = vadd.f32 0.2548296, %v2584_v22  ;;  %v1120_v30 = vsub.f32 %v1044_v39, %v1082_v42  ;;  %v3001_v28 = vmul.f32 1.442695, %v2890_v57  ;;  %vm3268_vm1 = vcmp.lt.f32.partialorder %v7792_v1, 0.0 }
 0x41c   : > { %v3115_v44 = vmul.f32 %v4531_v49, %v2735_v18  ;;  %4542 = vrsqrt.f32 %v1271_v2  ;;  %v1197_v19 = vsub.f32 %v7793_v63, %v7048_v12  ;;  %vm3269_vm2 = vcmp.lt.f32.partialorder %v7262_v11, 0.0 }
 0x41d   : > { %v2736_v33 = vmul.f32 %v4529_v25, %v2660_v23  ;;  %v4533_v43 = vpop.eup %4532  ;;  %v1596_v25 = vmul.f32 0.5, %v7790_v21  ;;  %4544 = vpow2.f32 %v2999_v40  ;;  %v1158_v8 = vmax.f32 %v1120_v30, 0.0 }
 0x41e   : > { %v3191_v48 = vsub.f32 1.0, %v3115_v44  ;;  %4546 = vpow2.f32 %v3001_v28  ;;  %v7796_v28 = vld [vmem:[#allocation63_spill] sm:$0xff]  ;;  %vm3270_vm3 = vcmp.lt.f32.partialorder %v7267_v62, 0.0  ;;  %v1598_v11 = vmul.f32 0.5, %v7258_v24 }
 0x41f   : > { %v3116_v31 = vmul.f32 %v4533_v43, %v2736_v33  ;;  %v7794_v33 = vld [vmem:[#allocation71_spill] sm:$0xff]  ;;  %v1272_v2 = vadd.f32 1e-05, %v1158_v8 }
 0x420   : > { %v4535_v26 = vpop.eup %4534  ;;  %v3343_v4 = vsub.f32 0.0, %v3191_v48  ;;  %v1198_v39 = vsub.f32 %v7794_v33, %v7048_v12 }
 0x421   : > { %v7296_v58 = vpop.eup %4536  ;;  %v3192_v6 = vsub.f32 1.0, %v3116_v31  ;;  %v1347_v55 = vmul.f32 %v4535_v26, %v1195_v60  ;;  %v1348_v36 = vmul.f32 %v4535_v26, %v1196_v51  ;;  %4548 = vrsqrt.f32 %v1272_v2 }
 0x422   : > { %v7298_v5 = vpop.eup %4538  ;;  %v3419_v46 = vsel %vm3267_vm0, %v3343_v4, %v3191_v48  ;;  %v2129_v52 = vmul.f32 1.0614054, %v7296_v58 }
 0x423   : > { %v3344_v56 = vsub.f32 0.0, %v3192_v6  ;;  %v3495_v35 = vadd.f32 1.0, %v3419_v46  ;;  %v2130_v9 = vmul.f32 1.0614054, %v7298_v5  ;;  %v1435_v41 = vmul.f32 %v7714_v13, %v1347_v55 }
 0x424   : > { %v2205_v32 = vadd.f32 -1.4531521, %v2129_v52  ;;  %v1436_v38 = vmul.f32 %v7715_v7, %v1348_v36  ;;  %v7795_v36 = vld [vmem:[#allocation62_spill] sm:$0xff] }
 0x425   : > { %v3420_v0 = vsel %vm3268_vm1, %v3344_v56, %v3192_v6  ;;  %v2206_v53 = vadd.f32 -1.4531521, %v2130_v9  ;;  %v7306_v45 = vadd.f32 %v7716_v54, %v1435_v41  ;;  %v3571_v17 = vmul.f32 %v3495_v35, %v1595_v50 }
 0x426   : > { %v3496_v16 = vadd.f32 1.0, %v3420_v0  ;;  %v2281_v37 = vmul.f32 %v7296_v58, %v2205_v32  ;;  %v7310_v29 = vadd.f32 %v7717_v20, %v1436_v38  ;;  %v4541_v22 = vpop.eup %4540  ;;  %v1231_v30 = vsub.f32 %v7795_v36, %v7273_v3 }
 0x427   : > { %v2282_v18 = vmul.f32 %v7298_v5, %v2206_v53  ;;  %v7316_v14 = vmul.f32 0.70710677, %v7306_v45  ;;  %v1349_v48 = vmul.f32 %v4541_v22, %v1197_v19  ;;  %v1350_v31 = vmul.f32 %v4541_v22, %v1198_v39 }
 0x428   : > { %v3572_v49 = vmul.f32 %v3496_v16, %v1596_v25  ;;  %v2357_v23 = vadd.f32 1.4214138, %v2281_v37  ;;  %v7319_v44 = vmul.f32 0.70710677, %v7310_v29  ;;  %v1232_v56 = vsub.f32 %v7796_v28, %v7273_v3 }
 0x429   : > { %v2358_v27 = vadd.f32 1.4214138, %v2282_v18  ;;  %v1751_v43 = vand.u32 2147483647, %v7316_v14  ;;  %v1437_v42 = vmul.f32 %v7714_v13, %v1349_v48  ;;  %v1438_v21 = vmul.f32 %v7715_v7, %v1350_v31  ;;  %v4543_v40 = vpop.eup %4542 }
 0x42a   : > { %v4077_v57 = vpack.c.bf16 %v3572_v49, %v3571_v17  ;;  %v2433_v47 = vmul.f32 %v7296_v58, %v2357_v23  ;;  %v1752_v60 = vand.u32 2147483647, %v7319_v44  ;;  %v4545_v52 = vpop.eup %4544  ;;  %v1383_v38 = vmul.f32 %v4543_v40, %v1231_v30 }
 0x42b   : > { %v2434_v10 = vmul.f32 %v7298_v5, %v2358_v27  ;;  %v1827_v50 = vmul.f32 0.3275911, %v1751_v43  ;;  %v7332_v4 = vadd.f32 %v7716_v54, %v1437_v42  ;;  %v7336_v55 = vadd.f32 %v7717_v20, %v1438_v21  ;;  %v4547_v16 = vpop.eup %4546 }
 0x42c   : > { %3859 = vst [vmem:[%s5649_s9 + $0x80] sm:$0xff] %v4077_v57  ;;  %v2509_v61 = vadd.f32 -0.28449672, %v2433_v47  ;;  %v1828_v51 = vmul.f32 0.3275911, %v1752_v60  ;;  %v2815_v1 = vmul.f32 %v1751_v43, %v1751_v43  ;;  %v1384_v8 = vmul.f32 %v4543_v40, %v1232_v56  ;;  %v7798_v57 = vld [vmem:[#allocation67_spill] sm:$0xff] }
 0x42d   : > { %v2510_v26 = vadd.f32 -0.28449672, %v2434_v10  ;;  %v1903_v12 = vadd.f32 1.0, %v1827_v50  ;;  %v7343_v9 = vmul.f32 0.70710677, %v7332_v4  ;;  %v2816_v37 = vmul.f32 %v1752_v60, %v1752_v60 }
 0x42e   : > { %v2585_v25 = vmul.f32 %v7296_v58, %v2509_v61  ;;  %v1904_v59 = vadd.f32 1.0, %v1828_v51  ;;  %v7347_v32 = vmul.f32 0.70710677, %v7336_v55  ;;  %v1471_v22 = vmul.f32 %v7714_v13, %v1383_v38  ;;  %v4549_v42 = vpop.eup %4548 }
 0x42f   : > { %v2586_v6 = vmul.f32 %v7298_v5, %v2510_v26  ;;  %4550 = vrcp.f32 %v1903_v12  ;;  %v1753_v53 = vand.u32 2147483647, %v7343_v9  ;;  %v2891_v49 = vsub.f32 0.0, %v2815_v1 }
 0x430   : > { %v2661_v46 = vadd.f32 0.2548296, %v2585_v25  ;;  %4552 = vrcp.f32 %v1904_v59  ;;  %v1754_v3 = vand.u32 2147483647, %v7347_v32  ;;  %v7355_v27 = vadd.f32 %v7716_v54, %v1471_v22 }
 0x431   : > { %v2662_v35 = vadd.f32 0.2548296, %v2586_v6  ;;  %v1829_v63 = vmul.f32 0.3275911, %v1753_v53  ;;  %v1234_v47 = vsub.f32 %v7798_v57, %v7285_v15  ;;  %v2892_v2 = vsub.f32 0.0, %v2816_v37 }
 0x432   : > { %v2737_v41 = vmul.f32 %v7296_v58, %v2661_v46  ;;  %v1472_v58 = vmul.f32 %v7715_v7, %v1384_v8  ;;  %v1830_v23 = vmul.f32 0.3275911, %v1754_v3  ;;  %v3003_v61 = vmul.f32 1.442695, %v2891_v49 }
 0x433   : > { %v2738_v0 = vmul.f32 %v7298_v5, %v2662_v35  ;;  %v7797_v5 = vld [vmem:[#allocation66_spill] sm:$0xff]  ;;  %v1905_v43 = vadd.f32 1.0, %v1829_v63  ;;  %v7367_v51 = vmul.f32 0.70710677, %v7355_v27  ;;  %v1597_v26 = vmul.f32 0.5, %v7248_v34 }
 0x434   : > { %v3117_v17 = vmul.f32 %v4545_v52, %v2737_v41  ;;  %v1233_v33 = vsub.f32 %v7797_v5, %v7285_v15  ;;  %v7360_v48 = vadd.f32 %v7717_v20, %v1472_v58  ;;  %v1906_v10 = vadd.f32 1.0, %v1830_v23 }
 0x435   : > { %v3118_v18 = vmul.f32 %v4547_v16, %v2738_v0  ;;  %4554 = vrcp.f32 %v1905_v43  ;;  %v3005_v59 = vmul.f32 1.442695, %v2892_v2  ;;  %v1787_v40 = vand.u32 2147483647, %v7367_v51 }
 0x436   : > { %v3193_v19 = vsub.f32 1.0, %v3117_v17  ;;  %4556 = vrcp.f32 %v1906_v10  ;;  %v7371_v21 = vmul.f32 0.70710677, %v7360_v48  ;;  %v2817_v46 = vmul.f32 %v1753_v53, %v1753_v53 }
 0x437   : > { %v3194_v39 = vsub.f32 1.0, %v3118_v18  ;;  %4558 = vpow2.f32 %v3003_v61  ;;  %v1863_v56 = vmul.f32 0.3275911, %v1787_v40  ;;  %v2818_v24 = vmul.f32 %v1754_v3, %v1754_v3 }
 0x438   : > { %v3345_v60 = vsub.f32 0.0, %v3193_v19  ;;  %v1788_v34 = vand.u32 2147483647, %v7371_v21  ;;  %v1385_v1 = vmul.f32 %v4549_v42, %v1233_v33  ;;  %4560 = vpow2.f32 %v3005_v59 }
 0x439   : > { %v3346_v50 = vsub.f32 0.0, %v3194_v39  ;;  %v1939_v8 = vadd.f32 1.0, %v1863_v56  ;;  %v2893_v17 = vsub.f32 0.0, %v2817_v46  ;;  %v1386_v37 = vmul.f32 %v4549_v42, %v1234_v47 }
 0x43a   : > { %v3421_v31 = vsel %vm3269_vm2, %v3345_v60, %v3193_v19  ;;  %v1864_v41 = vmul.f32 0.3275911, %v1788_v34  ;;  %v1473_v18 = vmul.f32 %v7714_v13, %v1385_v1  ;;  %v2894_v58 = vsub.f32 0.0, %v2818_v24 }
 0x43b   : > { %v3422_v12 = vsel %vm3270_vm3, %v3346_v50, %v3194_v39  ;;  %v3497_v15 = vadd.f32 1.0, %v3421_v31  ;;  %4562 = vrcp.f32 %v1939_v8  ;;  %v1474_v3 = vmul.f32 %v7715_v7, %v1386_v37 }
 0x43c   : > { %v7373_v25 = vpop.eup %4550  ;;  %v3498_v62 = vadd.f32 1.0, %v3422_v12  ;;  %v1940_v53 = vadd.f32 1.0, %v1864_v41  ;;  %v7388_v49 = vadd.f32 %v7716_v54, %v1473_v18  ;;  %v3007_v5 = vmul.f32 1.442695, %v2893_v17 }
 0x43d   : > { %v7377_v6 = vpop.eup %4552  ;;  %v3573_v36 = vmul.f32 %v3497_v15, %v1597_v26  ;;  %v2131_v30 = vmul.f32 1.0614054, %v7373_v25  ;;  %v7392_v33 = vadd.f32 %v7717_v20, %v1474_v3  ;;  %v7397_v43 = vmul.f32 0.5, %v7306_v45 }
 0x43e   : > { %v3574_v52 = vmul.f32 %v3498_v62, %v1598_v11  ;;  %v2132_v28 = vmul.f32 1.0614054, %v7377_v6  ;;  %4564 = vrcp.f32 %v1940_v53  ;;  %v2851_v57 = vmul.f32 %v1787_v40, %v1787_v40 }
 0x43f   : > { %v2207_v35 = vadd.f32 -1.4531521, %v2131_v30  ;;  %v7401_v7 = vmul.f32 0.70710677, %v7388_v49  ;;  %v3009_v2 = vmul.f32 1.442695, %v2894_v58  ;;  %v2852_v10 = vmul.f32 %v1788_v34, %v1788_v34 }
 0x440   : > { %v4078_v38 = vpack.c.bf16 %v3574_v52, %v3573_v36  ;;  %v2208_v0 = vadd.f32 -1.4531521, %v2132_v28  ;;  %v7408_v31 = vmul.f32 0.70710677, %v7392_v33  ;;  %4566 = vpow2.f32 %v3007_v5 }
 0x441   : > { %v2283_v16 = vmul.f32 %v7373_v25, %v2207_v35  ;;  %v1789_v42 = vand.u32 2147483647, %v7401_v7  ;;  %v2927_v15 = vsub.f32 0.0, %v2851_v57  ;;  %v2928_v36 = vsub.f32 0.0, %v2852_v10 }
 0x442   : > { %3860 = vst [vmem:[%s5649_s9 + $0x88] sm:$0xff] %v4078_v38  ;;  %v2284_v22 = vmul.f32 %v7377_v6, %v2208_v0  ;;  %v7394_v39 = vpop.eup %4554  ;;  %v1790_v11 = vand.u32 2147483647, %v7408_v31  ;;  %4568 = vpow2.f32 %v3009_v2  ;;  %vm3271_vm4 = vcmp.lt.f32.partialorder %v7316_v14, 0.0 }
 0x443   : > { %v2359_v63 = vadd.f32 1.4214138, %v2283_v16  ;;  %v7403_v47 = vpop.eup %4556  ;;  %v2133_v60 = vmul.f32 1.0614054, %v7394_v39  ;;  %v1865_v30 = vmul.f32 0.3275911, %v1789_v42  ;;  %v2853_v10 = vmul.f32 %v1789_v42, %v1789_v42 }
 0x444   : > { %v2360_v19 = vadd.f32 1.4214138, %v2284_v22  ;;  %v2134_v50 = vmul.f32 1.0614054, %v7403_v47  ;;  %v4559_v62 = vpop.eup %4558  ;;  %v1866_v52 = vmul.f32 0.3275911, %v1790_v11 }
 0x445   : > { %v2435_v23 = vmul.f32 %v7373_v25, %v2359_v63  ;;  %v2209_v61 = vadd.f32 -1.4531521, %v2133_v60  ;;  %v4561_v28 = vpop.eup %4560  ;;  %v1941_v24 = vadd.f32 1.0, %v1865_v30  ;;  %v3075_v38 = vmul.f32 1.442695, %v2927_v15 }
 0x446   : > { %v2436_v13 = vmul.f32 %v7377_v6, %v2360_v19  ;;  %v2210_v12 = vadd.f32 -1.4531521, %v2134_v50  ;;  %v1942_v0 = vadd.f32 1.0, %v1866_v52  ;;  %v3077_v53 = vmul.f32 1.442695, %v2928_v36 }
 0x447   : > { %v2511_v54 = vadd.f32 -0.28449672, %v2435_v23  ;;  %v2285_v40 = vmul.f32 %v7394_v39, %v2209_v61  ;;  %4570 = vrcp.f32 %v1941_v24  ;;  %vm3272_vm5 = vcmp.lt.f32.partialorder %v7319_v44, 0.0 }
 0x448   : > { %v2512_v20 = vadd.f32 -0.28449672, %v2436_v13  ;;  %v2286_v34 = vmul.f32 %v7403_v47, %v2210_v12  ;;  %v7419_v8 = vpop.eup %4562  ;;  %4572 = vrcp.f32 %v1942_v0  ;;  %v2854_v61 = vmul.f32 %v1790_v11, %v1790_v11 }
 0x449   : > { %v2587_v45 = vmul.f32 %v7373_v25, %v2511_v54  ;;  %v2361_v35 = vadd.f32 1.4214138, %v2285_v40  ;;  %v2167_v18 = vmul.f32 1.0614054, %v7419_v8  ;;  %4574 = vpow2.f32 %v3075_v38 }
 0x44a   : > { %v2588_v26 = vmul.f32 %v7377_v6, %v2512_v20  ;;  %v2362_v1 = vadd.f32 1.4214138, %v2286_v34  ;;  %4576 = vpow2.f32 %v3077_v53  ;;  %v1600_v40 = vmul.f32 0.5, %v7310_v29 }
 0x44b   : > { %v2663_v59 = vadd.f32 0.2548296, %v2587_v45  ;;  %v2437_v17 = vmul.f32 %v7394_v39, %v2361_v35  ;;  %v7422_v37 = vpop.eup %4564  ;;  %v2243_v23 = vadd.f32 -1.4531521, %v2167_v18  ;;  %v2929_v11 = vsub.f32 0.0, %v2853_v10 }
 0x44c   : > { %v2664_v46 = vadd.f32 0.2548296, %v2588_v26  ;;  %v2168_v58 = vmul.f32 1.0614054, %v7422_v37  ;;  %v2930_v35 = vsub.f32 0.0, %v2854_v61  ;;  %vm3273_vm6 = vcmp.lt.f32.partialorder %v7343_v9, 0.0 }
 0x44d   : > { %v2739_v56 = vmul.f32 %v7373_v25, %v2663_v59  ;;  %v2438_v25 = vmul.f32 %v7403_v47, %v2362_v1  ;;  %v2319_v2 = vmul.f32 %v7419_v8, %v2243_v23  ;;  %v4567_v26 = vpop.eup %4566  ;;  %vm3274_vm7 = vcmp.lt.f32.partialorder %v7347_v32, 0.0 }
 0x44e   : > { %v2740_v41 = vmul.f32 %v7377_v6, %v2664_v46  ;;  %v2513_v6 = vadd.f32 -0.28449672, %v2437_v17  ;;  %v2244_v57 = vadd.f32 -1.4531521, %v2168_v58  ;;  %v3079_v17 = vmul.f32 1.442695, %v2929_v11 }
 0x44f   : > { %v3119_v16 = vmul.f32 %v4559_v62, %v2739_v56  ;;  %v2514_v19 = vadd.f32 -0.28449672, %v2438_v25  ;;  %v2395_v59 = vadd.f32 1.4214138, %v2319_v2  ;;  %v4569_v52 = vpop.eup %4568  ;;  %vm3307_vm8 = vcmp.lt.f32.partialorder %v7367_v51, 0.0 }
 0x450   : > { %v3120_v22 = vmul.f32 %v4561_v28, %v2740_v41  ;;  %v2589_v13 = vmul.f32 %v7394_v39, %v2513_v6  ;;  %v2320_v45 = vmul.f32 %v7422_v37, %v2244_v57  ;;  %4578 = vpow2.f32 %v3079_v17 }
 0x451   : > { %v3195_v63 = vsub.f32 1.0, %v3119_v16  ;;  %v2590_v60 = vmul.f32 %v7403_v47, %v2514_v19  ;;  %v2471_v34 = vmul.f32 %v7419_v8, %v2395_v59  ;;  %vm3308_vm9 = vcmp.lt.f32.partialorder %v7371_v21, 0.0 }
 0x452   : > { %v3196_v3 = vsub.f32 1.0, %v3120_v22  ;;  %v2665_v50 = vadd.f32 0.2548296, %v2589_v13  ;;  %v2396_v42 = vadd.f32 1.4214138, %v2320_v45  ;;  %vm3309_vm10 = vcmp.lt.f32.partialorder %v7401_v7, 0.0 }
 0x453   : > { %v3347_v5 = vsub.f32 0.0, %v3195_v63  ;;  %v2666_v62 = vadd.f32 0.2548296, %v2590_v60  ;;  %v2547_v29 = vadd.f32 -0.28449672, %v2471_v34  ;;  %vm3310_vm11 = vcmp.lt.f32.partialorder %v7408_v31, 0.0 }
 0x454   : > { %v3348_v54 = vsub.f32 0.0, %v3196_v3  ;;  %v2741_v30 = vmul.f32 %v7394_v39, %v2665_v50  ;;  %v2472_v56 = vmul.f32 %v7422_v37, %v2396_v42  ;;  %v1601_v39 = vmul.f32 0.5, %v7332_v4 }
 0x455   : > { %v3423_v20 = vsel %vm3271_vm4, %v3347_v5, %v3195_v63  ;;  %v2742_v46 = vmul.f32 %v7403_v47, %v2666_v62  ;;  %v1602_v47 = vmul.f32 0.5, %v7336_v55  ;;  %v2623_v16 = vmul.f32 %v7419_v8, %v2547_v29 }
 0x456   : > { %v3424_v12 = vsel %vm3272_vm5, %v3348_v54, %v3196_v3  ;;  %v3499_v15 = vadd.f32 1.0, %v3423_v20  ;;  %v3121_v44 = vmul.f32 %v4567_v26, %v2741_v30  ;;  %v2548_v38 = vadd.f32 -0.28449672, %v2472_v56 }
 0x457   : > { %v3500_v36 = vadd.f32 1.0, %v3424_v12  ;;  %v3122_v24 = vmul.f32 %v4569_v52, %v2742_v46  ;;  %v3081_v63 = vmul.f32 1.442695, %v2930_v35  ;;  %v2699_v4 = vadd.f32 0.2548296, %v2623_v16 }
 0x458   : > { %v3575_v14 = vmul.f32 %v3499_v15, %v7397_v43  ;;  %v3197_v1 = vsub.f32 1.0, %v3121_v44  ;;  %v4571_v43 = vpop.eup %4570  ;;  %v2624_v25 = vmul.f32 %v7422_v37, %v2548_v38  ;;  %v1635_v46 = vmul.f32 0.5, %v7355_v27 }
 0x459   : > { %v3576_v28 = vmul.f32 %v3500_v36, %v1600_v40  ;;  %v3198_v0 = vsub.f32 1.0, %v3122_v24  ;;  %v4573_v53 = vpop.eup %4572  ;;  %v2169_v18 = vmul.f32 1.0614054, %v4571_v43  ;;  %v2775_v54 = vmul.f32 %v7419_v8, %v2699_v4 }
 0x45a   : > { %v3349_v22 = vsub.f32 0.0, %v3197_v1  ;;  %v2170_v58 = vmul.f32 1.0614054, %v4573_v53  ;;  %v4575_v3 = vpop.eup %4574  ;;  %v2700_v19 = vadd.f32 0.2548296, %v2624_v25  ;;  %4580 = vpow2.f32 %v3081_v63 }
 0x45b   : > { %v4079_v41 = vpack.c.bf16 %v3576_v28, %v3575_v14  ;;  %v3350_v6 = vsub.f32 0.0, %v3198_v0  ;;  %v2245_v23 = vadd.f32 -1.4531521, %v2169_v18  ;;  %v4577_v5 = vpop.eup %4576  ;;  %v3155_v50 = vmul.f32 %v4575_v3, %v2775_v54 }
 0x45c   : > { %v3425_v55 = vsel %vm3273_vm6, %v3349_v22, %v3197_v1  ;;  %v2246_v60 = vadd.f32 -1.4531521, %v2170_v58  ;;  %v2776_v10 = vmul.f32 %v7422_v37, %v2700_v19  ;;  %v1636_v28 = vmul.f32 0.5, %v7360_v48 }
 0x45d   : > { %3861 = vst [vmem:[%s5649_s9 + $0x90] sm:$0xff] %v4079_v41  ;;  %v3426_v13 = vsel %vm3274_vm7, %v3350_v6, %v3198_v0  ;;  %v3501_v57 = vadd.f32 1.0, %v3425_v55  ;;  %v2321_v20 = vmul.f32 %v4571_v43, %v2245_v23  ;;  %v3231_v12 = vsub.f32 1.0, %v3155_v50 }
 0x45e   : > { %v3502_v2 = vadd.f32 1.0, %v3426_v13  ;;  %v2322_v45 = vmul.f32 %v4573_v53, %v2246_v60  ;;  %v3156_v61 = vmul.f32 %v4577_v5, %v2776_v10 }
 0x45f   : > { %v3577_v9 = vmul.f32 %v3501_v57, %v1601_v39  ;;  %v2397_v26 = vadd.f32 1.4214138, %v2321_v20  ;;  %v3383_v8 = vsub.f32 0.0, %v3231_v12  ;;  %v4579_v39 = vpop.eup %4578 }
 0x460   : > { %v3578_v32 = vmul.f32 %v3502_v2, %v1602_v47  ;;  %v2398_v15 = vadd.f32 1.4214138, %v2322_v45  ;;  %v3232_v59 = vsub.f32 1.0, %v3156_v61 }
 0x461   : > { %v2473_v40 = vmul.f32 %v4571_v43, %v2397_v26  ;;  %v3459_v42 = vsel %vm3307_vm8, %v3383_v8, %v3231_v12 }
 0x462   : > { %v4080_v62 = vpack.c.bf16 %v3578_v32, %v3577_v9  ;;  %v2474_v36 = vmul.f32 %v4573_v53, %v2398_v15  ;;  %v3384_v37 = vsub.f32 0.0, %v3232_v59  ;;  %v3535_v11 = vadd.f32 1.0, %v3459_v42 }
 0x463   : > { %v2549_v30 = vadd.f32 -0.28449672, %v2473_v40 }
 0x464   : > { %3862 = vst [vmem:[%s5649_s9 + $0x98] sm:$0xff] %v4080_v62  ;;  %v2550_v14 = vadd.f32 -0.28449672, %v2474_v36  ;;  %v3460_v34 = vsel %vm3308_vm9, %v3384_v37, %v3232_v59  ;;  %v3611_v35 = vmul.f32 %v3535_v11, %v1635_v46 }
 0x465   : > { %v2625_v52 = vmul.f32 %v4571_v43, %v2549_v30  ;;  %v3536_v44 = vadd.f32 1.0, %v3460_v34 }
 0x466   : > { %v2626_v56 = vmul.f32 %v4573_v53, %v2550_v14 }
 0x467   : > { %v2701_v24 = vadd.f32 0.2548296, %v2625_v52  ;;  %v3612_v29 = vmul.f32 %v3536_v44, %v1636_v28  ;;  %v4581_v38 = vpop.eup %4580 }
 0x468   : > { %v2702_v51 = vadd.f32 0.2548296, %v2626_v56 }
 0x469   : > { %v2777_v41 = vmul.f32 %v4571_v43, %v2701_v24  ;;  %v4097_v1 = vpack.c.bf16 %v3612_v29, %v3611_v35  ;;  %v1637_v43 = vmul.f32 0.5, %v7388_v49 }
 0x46a   : > { %v2778_v21 = vmul.f32 %v4573_v53, %v2702_v51  ;;  %v1638_v53 = vmul.f32 0.5, %v7392_v33 }
 0x46b   : > { %v3157_v47 = vmul.f32 %v4579_v39, %v2777_v41  ;;  %3879 = vst [vmem:[%s5649_s9 + $0x120] sm:$0xff] %v4097_v1 }
 0x46c   : > { %v3158_v27 = vmul.f32 %v4581_v38, %v2778_v21 }
 0x46d   : > { %v3233_v0 = vsub.f32 1.0, %v3157_v47 }
 0x46e   : > { %v3234_v16 = vsub.f32 1.0, %v3158_v27 }
 0x46f   : > { %v3385_v17 = vsub.f32 0.0, %v3233_v0 }
 0x470   : > { %v3386_v48 = vsub.f32 0.0, %v3234_v16 }
 0x471   : > { %v3461_v22 = vsel %vm3309_vm10, %v3385_v17, %v3233_v0 }
 0x472   : > { %v3462_v25 = vsel %vm3310_vm11, %v3386_v48, %v3234_v16  ;;  %v3537_v18 = vadd.f32 1.0, %v3461_v22 }
 0x473   : > { %v3538_v63 = vadd.f32 1.0, %v3462_v25 }
 0x474   : > { %v3613_v6 = vmul.f32 %v3537_v18, %v1637_v43 }
 0x475   : > { %v3614_v4 = vmul.f32 %v3538_v63, %v1638_v53  ;;  %3888 = sbr.rel (!%p7799_p4) target bundleno = 1173 (0x495), region = 52 }
 0x477   : > { %v4098_v58 = vpack.c.bf16 %v3614_v4, %v3613_v6 }
 0x479   : > { %3880 = vst [vmem:[%s5649_s9 + $0x128] sm:$0xff] %v4098_v58 }
 0x47a   : > { %s7809_s12 = smov (!%p3891_p13, %s3890_s12), 38 }
 0x47b   : > { %s7466_s14 = sshll.u32 %s7809_s12, 7 }
 0x47c   : > { %s3896_s15 = ssub.s32 4864, %s7466_s14 }
 0x47d   : > { %3897 = vsyncadd %s3882_s28, %s3896_s15  ;;  %p4053_p5 = scmp.ne.s32.totalorder %s7466_s14, 0  ;;  %s4102_s30 = smul.u32 4864, %s4765_s22 }
 0x47e   : > { %s3903_s17 = sshll.u32 %s5649_s9, 4  ;;  %s4711_s25 = smov [#allocation7]   ;;  %s7479_s17 = int_to_ptr.vmem [resolvable:$true] %s3903_s17 }
 0x47f   : > { %s7477_s29 = scalar_lea.hbm %s7529_s5, %s4102_s30  ;;  %s4634_s7 = scalar_lea.vmem %s7479_s17, %s7466_s14 }
 0x480   : > { %p4635_p1 = scmp.ne.s32.totalorder %s7479_s17, %s4634_s7  ;;  %s4638_s8 = sshll.u32 %s4711_s25, 4  ;;  %s4639_s8 = int_to_ptr.vmem [resolvable:$false] %s4638_s8 }
 0x481   : > { %s4640_s22 = scalar_lea.vmem %s4639_s8, 9728  ;;  %p4641_p3 = scmp.lt.s32.totalorder %s7479_s17, %s4639_s8 }
 0x482   : > { %p4636_p0 = pnand %p4635_p1, %p4053_p5  ;;  %p4642_p8 = scmp.lt.s32.totalorder %s4640_s22, %s4634_s7 }
 0x484   : > { %p4637_p7 = pneg %p4636_p0  ;;  %p4643_p9 = por %p4642_p8, %p4641_p3 }
 0x486   : > { %p4644_p6 = pnand %p4643_p9, %p4637_p7 }
 0x488   : > { %4647 = shalt.err (!%p4644_p6)
}
 0x489   : > { %s4648_s10 = scalar_lea.hbm %s7477_s29, %s7466_s14  ;;  %s4652_s11 = scalar_lea.hbm %s7529_s5, 9600 }
 0x48a   : > { %p4649_p11 = scmp.ne.s32.totalorder %s7477_s29, %s4648_s10  ;;  %p4653_p10 = scmp.lt.s32.totalorder %s7477_s29, %s7529_s5 }
 0x48b   : > { %p4654_p4 = scmp.lt.s32.totalorder %s4652_s11, %s4648_s10 }
 0x48c   : > { %p4650_p12 = pnand %p4649_p11, %p4053_p5 }
 0x48d   : > { %p4655_p13 = por %p4654_p4, %p4653_p10 }
 0x48e   : > { %p4651_p2 = pneg %p4650_p12 }
 0x490   : > { %p4656_p1 = pnand %p4655_p13, %p4651_p2 }
 0x492   : > { %4659 = shalt.err (!%p4656_p1)
}
 0x493   : > { %s4712_s30 = smov 128   ;;  %s4713_s23 = smov 8  }
 0x494   : > { %3909 = dma.vmem_to_hbm [thread:$0]  (%p4053_p5), %s7479_s17, %s7466_s14, %s7477_s29, %s3882_s28, %s4712_s30, %s4712_s30, %s4713_s23  }
 0x495 PF: > { %s3918_s26 = sand.u32 1, %s4690_s18   ;;  %p7800_p0 = scmp.ne.s32.totalorder %s7643_s6, 0 }
 0x496   : > { %p7801_p7 = scmp.ge.s32.totalorder %s4702_s21, 2  ;;  %s3919_s7 = scalar_lea.sflag [#allocation4], %s3918_s26 }
 0x498   : > { %p4132_p3 = pnand %p7801_p7, %p7800_p0 }
 0x49a   : > { %p4133_p8 = pneg %p4132_p3 }
 0x49c   : > { %4685 = dma.done.wait (%p4133_p8), %s3919_s7, 4864  }
 0x49d   : > { %4687 = vsyncadd (%p4133_p8), %s3919_s7, 4294962432  ;;  %p19_p9 = scmp.ge.s32.totalorder %s4769_s24, 4   ;;  %s7802_s18 = smov %s4694_s19 }
 0x49e   : > { %s7803_s19 = smov %s4698_s20  ;;  %s7804_s20 = smov %s4781_s27 }
 0x49f   : > { %s7805_s21 = smov %s4769_s24  ;;  %21 = sbr.rel (!%p19_p9) target bundleno = 6 (0x6), region = 89 }
 0x4a4   :  { %3924 = vsyncpa [#allocation3], 1 }
 0x4a5   :  { %3926 = vsyncpa [#allocation3 + $0x1], 1 }
 0x4a6   :  { %3927 = vsyncpa [#allocation6], 1 }
 0x4a7   :  { %3928 = vsyncpa [#allocation4], 1 }
 0x4a8   :  { %3930 = vsyncpa [#allocation4 + $0x1], 1 }

</bundles_post_ra>
